<compile_context>
chip_gen: v5e
topology: v5e:2x2
jax: 0.10.0
libtpu: 0.0.40
codegen_flags: <defaults>
</compile_context>

<pallas_src>
import functools
import math

import jax
import jax.numpy as jnp
import numpy as np
from jax.experimental import pallas as pl
from jax.experimental.pallas import tpu as pltpu

EPS = 1e-12  # BERT LayerNorm eps


def _layernorm(v, g, b):
    """LayerNorm over the last dim, computed in f32."""
    mu = jnp.mean(v, axis=-1, keepdims=True)
    var = jnp.mean((v - mu) ** 2, axis=-1, keepdims=True)
    return (v - mu) * jax.lax.rsqrt(var + EPS) * g + b


def _head_grouping(num_heads, head_dim):
    """Heads per group so a group's q/k/v column block is a whole number of
    128-lane tiles whenever possible (unmasked scratch stores; no lane-dim
    dynamic slicing anywhere in the head loop)."""
    if head_dim % 128 == 0:
        return 1
    base = 128 // math.gcd(head_dim, 128)
    if num_heads % base == 0:
        return base
    return num_heads          # fallback: one full-width group (static inner loop)


def _mlp_chunk_rows(seq_len, target):
    """Largest row chunk <= target that divides seq_len and is a multiple of 8."""
    if seq_len <= target:
        return seq_len
    t = max(8, (target // 8) * 8)
    for c in range(t, 0, -8):
        if seq_len % c == 0:
            return c
    return seq_len


def flexbert_layer_kernel(x_ref, mask_ref,
                          ln1g_ref, ln1b_ref,
                          wq_ref, wk_ref, wv_ref,
                          bq_ref, bk_ref, bv_ref,
                          wo_ref, bo_ref,
                          ln2g_ref, ln2b_ref,
                          wi_ref, bi_ref, wm_ref, bm_ref,
                          out_ref,
                          q_sc, k_sc, v_sc, acc_sc,
                          *, num_heads, heads_per_group, mlp_chunk, compute_dtype):
    """One FlexBertPaddedPreNormLayer for a single sequence.

    x_ref:    (1, S, D)   hidden states            mask_ref: (1, 1, S) key mask
    wq/wk/wv: (D, D)      wo_ref: (H, hd, D)       wi: (D, I)  wm: (I, D)
    biases / norm params: (1, *) f32 rows
    q/k/v_sc: (G, S, gw)  compute_dtype head-group staging scratch
    acc_sc:   (S, D) f32  O-projection accumulator, then attn_out storage
    """
    f32 = jnp.float32
    cd = compute_dtype
    S, D = x_ref.shape[1], x_ref.shape[2]
    hd = D // num_heads
    gh = heads_per_group
    n_groups = num_heads // gh
    gw = gh * hd
    scale = 1.0 / math.sqrt(hd)

    x = x_ref[0].astype(f32)                                    # (S, D)
    key_bias = jnp.where(mask_ref[0] > 0.0, 0.0, -1e9)          # (1, S) f32

    # --- attn_norm (pre-norm) + full-width lane-dense QKV projections ---
    h = _layernorm(x, ln1g_ref[...], ln1b_ref[...]).astype(cd)
    # NOTE: 1/sqrt(hd) folded into q (also scales bq) == scaling the scores.
    q = (jnp.dot(h, wq_ref[...], preferred_element_type=f32) + bq_ref[...]) * scale
    k = jnp.dot(h, wk_ref[...], preferred_element_type=f32) + bk_ref[...]
    v = jnp.dot(h, wv_ref[...], preferred_element_type=f32) + bv_ref[...]

    # One slab-level cast each, then (S, gw) stores into head-group-major
    # scratch so the attention loop only uses leading-dim dynamic indexing.
    q = q.astype(cd)
    k = k.astype(cd)
    v = v.astype(cd)
    for g in range(n_groups):                                   # static: stores only
        lo = g * gw
        q_sc[g] = q[:, lo:lo + gw]
        k_sc[g] = k[:, lo:lo + gw]
        v_sc[g] = v[:, lo:lo + gw]

    acc_sc[...] = jnp.zeros_like(acc_sc)

    # --- attention: fori_loop over head groups (bounded live ranges) ---
    def group_body(g, carry):
        qg = q_sc[g]                                            # (S, gw) compute_dtype
        kg = k_sc[g]
        vg = v_sc[g]
        for j in range(gh):                                     # static within group
            sl = slice(j * hd, (j + 1) * hd)
            s = jax.lax.dot_general(qg[:, sl], kg[:, sl], (((1,), (1,)), ((), ())),
                                    preferred_element_type=f32)            # (S, S)
            s = s + key_bias
            s = s - jnp.max(s, axis=-1, keepdims=True)
            p = jnp.exp(s)                                      # f32 softmax stats
            p = p * pl.reciprocal(jnp.sum(p, axis=-1, keepdims=True), approx=True)
            ctx_h = jnp.dot(p.astype(cd), vg[:, sl],
                            preferred_element_type=f32)                    # (S, hd)
            # Per-head output projection accumulated into the f32 (S, D)
            # accumulator: D-wide lane-dense matmul, no narrow ctx stores.
            acc_sc[...] += jnp.dot(ctx_h.astype(cd), wo_ref[g * gh + j],
                                   preferred_element_type=f32)
        return carry

    jax.lax.fori_loop(0, n_groups, group_body, 0)

    attn_out = x + acc_sc[...] + bo_ref[...]                    # (S, D) f32
    acc_sc[...] = attn_out                                      # reuse as attn_out

    # --- mlp_norm (pre-norm) + MLP + residual, tiled over row chunks ---
    def mlp_rows(ao):
        h2 = _layernorm(ao, ln2g_ref[...], ln2b_ref[...])
        ff = jnp.dot(h2.astype(cd), wi_ref[...],
                     preferred_element_type=f32) + bi_ref[...]
        # TODO(synk): PyTorch nn.GELU default is exact erf; tanh approx used here.
        ff = jax.nn.gelu(ff, approximate=True)
        mlp = jnp.dot(ff.astype(cd), wm_ref[...],
                      preferred_element_type=f32) + bm_ref[...]
        return ao + mlp

    n_chunks = S // mlp_chunk
    if n_chunks == 1:
        out_ref[0] = mlp_rows(acc_sc[...]).astype(out_ref.dtype)
    else:
        def mlp_body(ci, carry):
            r0 = pl.multiple_of(ci * mlp_chunk, mlp_chunk)
            rows = acc_sc[pl.ds(r0, mlp_chunk), :]
            out_ref[0, pl.ds(r0, mlp_chunk), :] = mlp_rows(rows).astype(out_ref.dtype)
            return carry

        jax.lax.fori_loop(0, n_chunks, mlp_body, 0)


def flexbert_padded_prenorm_layer(hidden_states, attn_mask, params, *,
                                  num_heads, compute_dtype=jnp.bfloat16,
                                  mlp_chunk_rows=256):
    """FlexBertPaddedPreNormLayer.forward. hidden_states: (B,S,D), attn_mask: (B,S)|None."""
    B, S, D = hidden_states.shape
    I = params["Wi"].shape[1]
    assert D % num_heads == 0, "hidden dim must be divisible by num_heads"
    hd = D // num_heads

    gh = _head_grouping(num_heads, hd)
    n_groups = num_heads // gh
    gw = gh * hd
    mlp_chunk = _mlp_chunk_rows(S, mlp_chunk_rows)

    if attn_mask is None:
        mask = jnp.ones((B, S), jnp.float32)
    else:
        mask = attn_mask.astype(jnp.float32)
    mask3 = mask[:, None, :]                                    # (B, 1, S)

    cd = compute_dtype
    cd_bytes = jnp.dtype(cd).itemsize
    x_bytes = jnp.dtype(hidden_states.dtype).itemsize

    Wq = params["Wq"].astype(cd)
    Wk = params["Wk"].astype(cd)
    Wv = params["Wv"].astype(cd)
    Wo = params["Wo"].astype(cd).reshape(num_heads, hd, D)      # per-head row blocks
    Wi = params["Wi"].astype(cd)
    Wm = params["Wm"].astype(cd)

    kernel = functools.partial(
        flexbert_layer_kernel, num_heads=num_heads, heads_per_group=gh,
        mlp_chunk=mlp_chunk, compute_dtype=cd)

    # Advisory cost estimate so XLA can schedule neighbouring ops around this call.
    weight_bytes = int((4 * D * D + 2 * D * I) * cd_bytes + (8 * D + I) * 4)
    cost = pl.CostEstimate(
        flops=int(B * (8 * S * D * D + 4 * S * S * D + 4 * S * D * I)),
        transcendentals=int(B * (num_heads * S * S + S * I)),
        bytes_accessed=int(weight_bytes + 2 * B * S * D * x_bytes + B * S * 4))

    def build(single_buffer_weights):
        # Batch-invariant blocks (weights/biases/norm params) do not need the
        # default double-buffering — single-buffer them to halve weight VMEM.
        const_kw = ({"pipeline_mode": pl.Buffered(1)}
                    if single_buffer_weights else {})

        def const(shape):
            n = len(shape)
            return pl.BlockSpec(shape, lambda b, n=n: (0,) * n, **const_kw)

        in_specs = [
            pl.BlockSpec((1, S, D), lambda b: (b, 0, 0)),       # hidden states
            pl.BlockSpec((1, 1, S), lambda b: (b, 0, 0)),       # (1,S) key-mask row
            const((1, D)), const((1, D)),                       # attn_norm gamma/beta
            const((D, D)), const((D, D)), const((D, D)),        # Wq / Wk / Wv
            const((1, D)), const((1, D)), const((1, D)),        # bq / bk / bv
            const((num_heads, hd, D)), const((1, D)),           # Wo (per-head) / bo
            const((1, D)), const((1, D)),                       # mlp_norm gamma/beta
            const((D, I)), const((1, I)), const((I, D)), const((1, D)),   # MLP
        ]

        # Shape-derived VMEM budget (weights x buffer count + pipelined I/O +
        # staging scratch + largest live activations), capped by physical VMEM.
        wbuf = 1 if single_buffer_weights else 2
        io_bytes = 2 * 2 * S * D * x_bytes + 2 * S * 4
        scratch_bytes = 3 * n_groups * S * gw * cd_bytes + S * D * 4
        live_bytes = 3 * S * D * 4 + 2 * mlp_chunk * I * 4 + 2 * S * S * 4
        budget = int(1.25 * (wbuf * weight_bytes + io_bytes + scratch_bytes
                             + live_bytes)) + (4 << 20)
        budget = max(budget, 32 << 20)
        try:
            vmem_cap = int(pltpu.get_tpu_info().vmem_capacity_bytes)
        except Exception:
            vmem_cap = 64 << 20                                 # v7x per-TC floor
        budget = min(budget, int(vmem_cap * 0.9))

        return pl.pallas_call(
            kernel,
            out_shape=jax.ShapeDtypeStruct((B, S, D), hidden_states.dtype),
            grid=(B,),      # NOTE: keep B >= 2 (ideally even) for v7x's 2 TCs
            in_specs=in_specs,
            out_specs=pl.BlockSpec((1, S, D), lambda b: (b, 0, 0)),
            scratch_shapes=[
                pltpu.VMEM((n_groups, S, gw), cd),              # q staging
                pltpu.VMEM((n_groups, S, gw), cd),              # k staging
                pltpu.VMEM((n_groups, S, gw), cd),              # v staging
                pltpu.VMEM((S, D), jnp.float32),                # O-proj acc / attn_out
            ],
            compiler_params=pltpu.CompilerParams(
                dimension_semantics=("parallel",),
                vmem_limit_bytes=budget),
            cost_estimate=cost,
        )

    args = (hidden_states, mask3,
            params["ln1_g"], params["ln1_b"],
            Wq, Wk, Wv,
            params["bq"], params["bk"], params["bv"],
            Wo, params["bo"],
            params["ln2_g"], params["ln2_b"],
            Wi, params["bi"], Wm, params["bm"])

    try:
        return build(single_buffer_weights=True)(*args)
    except Exception:
        # Fallback for JAX versions without BlockSpec pipeline_mode / Buffered(1).
        return build(single_buffer_weights=False)(*args)


# ------------------------- parameter construction ---------------------------

def init_layer_params(key, D, I):
    ks = jax.random.split(key, 12)
    std = 0.02
    f32 = jnp.float32
    return {
        "Wq": jax.random.normal(ks[0], (D, D), f32) * std,
        "Wk": jax.random.normal(ks[1], (D, D), f32) * std,
        "Wv": jax.random.normal(ks[2], (D, D), f32) * std,
        "Wo": jax.random.normal(ks[3], (D, D), f32) * std,
        "Wi": jax.random.normal(ks[4], (D, I), f32) * std,
        "Wm": jax.random.normal(ks[5], (I, D), f32) * std,
        "bq": jax.random.normal(ks[6], (1, D), f32) * std,
        "bk": jax.random.normal(ks[7], (1, D), f32) * std,
        "bv": jax.random.normal(ks[8], (1, D), f32) * std,
        "bo": jax.random.normal(ks[9], (1, D), f32) * std,
        "bi": jax.random.normal(ks[10], (1, I), f32) * std,
        "bm": jax.random.normal(ks[11], (1, D), f32) * std,
        "ln1_g": jnp.ones((1, D), f32), "ln1_b": jnp.zeros((1, D), f32),
        "ln2_g": jnp.ones((1, D), f32), "ln2_b": jnp.zeros((1, D), f32),
    }


# --------------------------- pure-JAX reference ------------------------------

def ref_layer(x, mask, p, num_heads):
    B, S, D = x.shape
    hd = D // num_heads

    def ln(v, g, b):
        mu = v.mean(-1, keepdims=True)
        var = ((v - mu) ** 2).mean(-1, keepdims=True)
        return (v - mu) / jnp.sqrt(var + EPS) * g + b

    bias = jnp.where(mask > 0, 0.0, -1e9)[:, None, None, :]     # (B,1,1,S)
    h = ln(x, p["ln1_g"], p["ln1_b"])
    q = (h @ p["Wq"] + p["bq"]).reshape(B, S, num_heads, hd)
    k = (h @ p["Wk"] + p["bk"]).reshape(B, S, num_heads, hd)
    v = (h @ p["Wv"] + p["bv"]).reshape(B, S, num_heads, hd)
    s = jnp.einsum("bqhd,bkhd->bhqk", q, k) / math.sqrt(hd) + bias
    a = jax.nn.softmax(s, axis=-1)
    ctx = jnp.einsum("bhqk,bkhd->bqhd", a, v).reshape(B, S, D)
    attn_out = x + ctx @ p["Wo"] + p["bo"]
    h2 = ln(attn_out, p["ln2_g"], p["ln2_b"])
    mlp = jax.nn.gelu(h2 @ p["Wi"] + p["bi"], approximate=True) @ p["Wm"] + p["bm"]
    return attn_out + mlp


# --------------------------------- main --------------------------------------

if __name__ == "__main__":
    base_key = jax.random.PRNGKey(0)

    def run_case(case_id, B, S, D, H, I, lengths, mlp_chunk_rows):
        k_x, k_p = jax.random.split(jax.random.fold_in(base_key, case_id))
        x = jax.random.normal(k_x, (B, S, D), jnp.float32)
        mask = jnp.asarray(
            (np.arange(S)[None, :] < np.asarray(lengths)[:, None]).astype(np.float32))
        params = init_layer_params(k_p, D, I)

        ref = jax.block_until_ready(ref_layer(x, mask, params, H))

        # f32 compute path (tight check).
        out_f32 = jax.block_until_ready(flexbert_padded_prenorm_layer(
            x, mask, params, num_heads=H, compute_dtype=jnp.float32,
            mlp_chunk_rows=mlp_chunk_rows))
        np.testing.assert_allclose(np.asarray(out_f32), np.asarray(ref),
                                   atol=5e-3, rtol=5e-3)

        # Default production path (bf16 operands, f32 accumulation); looser tol.
        out_bf16 = jax.block_until_ready(flexbert_padded_prenorm_layer(
            x, mask, params, num_heads=H, mlp_chunk_rows=mlp_chunk_rows))
        np.testing.assert_allclose(np.asarray(out_bf16), np.asarray(ref),
                                   atol=5e-2, rtol=5e-2)

    # Small config from the module spec (single head group, single MLP chunk).
    run_case(0, B=2, S=8, D=32, H=4, I=64, lengths=[8, 5], mlp_chunk_rows=256)
    # Config exercising the grouped-head fori_loop path (hd=64 -> 2 heads/group,
    # 128-lane-aligned groups) and the chunked-MLP path (2 row chunks of 8).
    run_case(1, B=2, S=16, D=256, H=4, I=512, lengths=[16, 11], mlp_chunk_rows=8)

    print("KERNEL_OK")
</pallas_src>

<mosaic_0001>
module attributes {stable_mosaic.version = 11 : i64} {
  func.func @flexbert_layer_kernel(%arg0: i32, %arg1: memref<1x8x32xf32, #tpu.memory_space<vmem>>, %arg2: memref<1x1x8xf32, #tpu.memory_space<vmem>>, %arg3: memref<1x32xf32, #tpu.memory_space<vmem>>, %arg4: memref<1x32xf32, #tpu.memory_space<vmem>>, %arg5: memref<32x32xf32, #tpu.memory_space<vmem>>, %arg6: memref<32x32xf32, #tpu.memory_space<vmem>>, %arg7: memref<32x32xf32, #tpu.memory_space<vmem>>, %arg8: memref<1x32xf32, #tpu.memory_space<vmem>>, %arg9: memref<1x32xf32, #tpu.memory_space<vmem>>, %arg10: memref<1x32xf32, #tpu.memory_space<vmem>>, %arg11: memref<4x8x32xf32, #tpu.memory_space<vmem>>, %arg12: memref<1x32xf32, #tpu.memory_space<vmem>>, %arg13: memref<1x32xf32, #tpu.memory_space<vmem>>, %arg14: memref<1x32xf32, #tpu.memory_space<vmem>>, %arg15: memref<32x64xf32, #tpu.memory_space<vmem>>, %arg16: memref<1x64xf32, #tpu.memory_space<vmem>>, %arg17: memref<64x32xf32, #tpu.memory_space<vmem>>, %arg18: memref<1x32xf32, #tpu.memory_space<vmem>>, %arg19: memref<1x8x32xf32, #tpu.memory_space<vmem>>, %arg20: memref<1x8x32xf32, #tpu.memory_space<vmem>>, %arg21: memref<1x8x32xf32, #tpu.memory_space<vmem>>, %arg22: memref<1x8x32xf32, #tpu.memory_space<vmem>>, %arg23: memref<8x32xf32, #tpu.memory_space<vmem>>) attributes {dimension_semantics = [#tpu.dimension_semantics<parallel>], iteration_bounds = array<i64: 2>, scalar_prefetch = 0 : i64, scratch_operands = 4 : i64, tpu.core_type = #tpu.core_type<tc>, window_params = [{transform_indices = @transform_0, window_bounds = array<i64: 1, 8, 32>}, {transform_indices = @transform_1, window_bounds = array<i64: 1, 1, 8>}, {pipeline_mode = #tpu.pipeline_mode<synchronous>, transform_indices = @transform_2, window_bounds = array<i64: 1, 32>}, {pipeline_mode = #tpu.pipeline_mode<synchronous>, transform_indices = @transform_3, window_bounds = array<i64: 1, 32>}, {pipeline_mode = #tpu.pipeline_mode<synchronous>, transform_indices = @transform_4, window_bounds = array<i64: 32, 32>}, {pipeline_mode = #tpu.pipeline_mode<synchronous>, transform_indices = @transform_5, window_bounds = array<i64: 32, 32>}, {pipeline_mode = #tpu.pipeline_mode<synchronous>, transform_indices = @transform_6, window_bounds = array<i64: 32, 32>}, {pipeline_mode = #tpu.pipeline_mode<synchronous>, transform_indices = @transform_7, window_bounds = array<i64: 1, 32>}, {pipeline_mode = #tpu.pipeline_mode<synchronous>, transform_indices = @transform_8, window_bounds = array<i64: 1, 32>}, {pipeline_mode = #tpu.pipeline_mode<synchronous>, transform_indices = @transform_9, window_bounds = array<i64: 1, 32>}, {pipeline_mode = #tpu.pipeline_mode<synchronous>, transform_indices = @transform_10, window_bounds = array<i64: 4, 8, 32>}, {pipeline_mode = #tpu.pipeline_mode<synchronous>, transform_indices = @transform_11, window_bounds = array<i64: 1, 32>}, {pipeline_mode = #tpu.pipeline_mode<synchronous>, transform_indices = @transform_12, window_bounds = array<i64: 1, 32>}, {pipeline_mode = #tpu.pipeline_mode<synchronous>, transform_indices = @transform_13, window_bounds = array<i64: 1, 32>}, {pipeline_mode = #tpu.pipeline_mode<synchronous>, transform_indices = @transform_14, window_bounds = array<i64: 32, 64>}, {pipeline_mode = #tpu.pipeline_mode<synchronous>, transform_indices = @transform_15, window_bounds = array<i64: 1, 64>}, {pipeline_mode = #tpu.pipeline_mode<synchronous>, transform_indices = @transform_16, window_bounds = array<i64: 64, 32>}, {pipeline_mode = #tpu.pipeline_mode<synchronous>, transform_indices = @transform_17, window_bounds = array<i64: 1, 32>}, {transform_indices = @transform_18, window_bounds = array<i64: 1, 8, 32>}]} {
    %c0 = arith.constant 0 : index
    %c0_0 = arith.constant 0 : index
    %c0_1 = arith.constant 0 : index
    %0 = vector.load %arg1[%c0, %c0_0, %c0_1] : memref<1x8x32xf32, #tpu.memory_space<vmem>>, vector<1x8x32xf32>
    %1 = vector.shape_cast %0 : vector<1x8x32xf32> to vector<8x32xf32>
    %c0_2 = arith.constant 0 : index
    %c0_3 = arith.constant 0 : index
    %c0_4 = arith.constant 0 : index
    %2 = vector.load %arg2[%c0_2, %c0_3, %c0_4] : memref<1x1x8xf32, #tpu.memory_space<vmem>>, vector<1x1x8xf32>
    %3 = vector.shape_cast %2 : vector<1x1x8xf32> to vector<1x8xf32>
    %cst = arith.constant 0.000000e+00 : f32
    %4 = vector.broadcast %cst : f32 to vector<1x8xf32>
    %5 = arith.cmpf ogt, %3, %4 : vector<1x8xf32>
    %cst_5 = arith.constant 0.000000e+00 : f32
    %cst_6 = arith.constant -1.000000e+09 : f32
    %6 = vector.broadcast %cst_5 : f32 to vector<1x8xf32>
    %7 = vector.broadcast %cst_6 : f32 to vector<1x8xf32>
    %8 = arith.select %5, %6, %7 : vector<1x8xi1>, vector<1x8xf32>
    %c0_7 = arith.constant 0 : index
    %c0_8 = arith.constant 0 : index
    %9 = vector.load %arg3[%c0_7, %c0_8] : memref<1x32xf32, #tpu.memory_space<vmem>>, vector<1x32xf32>
    %c0_9 = arith.constant 0 : index
    %c0_10 = arith.constant 0 : index
    %10 = vector.load %arg4[%c0_9, %c0_10] : memref<1x32xf32, #tpu.memory_space<vmem>>, vector<1x32xf32>
    %cst_11 = arith.constant dense<0.000000e+00> : vector<8xf32>
    %11 = vector.multi_reduction <add>, %1, %cst_11 [1] : vector<8x32xf32> to vector<8xf32>
    %12 = vector.shape_cast %11 : vector<8xf32> to vector<8x1xf32>
    %cst_12 = arith.constant 3.200000e+01 : f32
    %13 = vector.broadcast %cst_12 : f32 to vector<8x1xf32>
    %14 = arith.divf %12, %13 : vector<8x1xf32>
    %15 = vector.broadcast %14 : vector<8x1xf32> to vector<8x32xf32>
    %16 = arith.subf %1, %15 : vector<8x32xf32>
    %17 = arith.mulf %16, %16 : vector<8x32xf32>
    %cst_13 = arith.constant dense<0.000000e+00> : vector<8xf32>
    %18 = vector.multi_reduction <add>, %17, %cst_13 [1] : vector<8x32xf32> to vector<8xf32>
    %19 = vector.shape_cast %18 : vector<8xf32> to vector<8x1xf32>
    %cst_14 = arith.constant 3.200000e+01 : f32
    %20 = vector.broadcast %cst_14 : f32 to vector<8x1xf32>
    %21 = arith.divf %19, %20 : vector<8x1xf32>
    %22 = vector.broadcast %14 : vector<8x1xf32> to vector<8x32xf32>
    %23 = arith.subf %1, %22 : vector<8x32xf32>
    %cst_15 = arith.constant 9.99999996E-13 : f32
    %24 = vector.broadcast %cst_15 : f32 to vector<8x1xf32>
    %25 = arith.addf %21, %24 : vector<8x1xf32>
    %26 = math.rsqrt %25 : vector<8x1xf32>
    %27 = vector.broadcast %26 : vector<8x1xf32> to vector<8x32xf32>
    %28 = arith.mulf %23, %27 : vector<8x32xf32>
    %29 = vector.broadcast %9 : vector<1x32xf32> to vector<8x32xf32>
    %30 = arith.mulf %28, %29 : vector<8x32xf32>
    %31 = vector.broadcast %10 : vector<1x32xf32> to vector<8x32xf32>
    %32 = arith.addf %30, %31 : vector<8x32xf32>
    %c0_16 = arith.constant 0 : index
    %c0_17 = arith.constant 0 : index
    %33 = vector.load %arg5[%c0_16, %c0_17] : memref<32x32xf32, #tpu.memory_space<vmem>>, vector<32x32xf32>
    %cst_18 = arith.constant dense<0.000000e+00> : vector<8x32xf32>
    %34 = tpu.matmul %32, %33, %cst_18 {dimension_numbers = #tpu.dot_dimension_numbers<[1], [0], [0], [1], [0, 0, 1, 1], [], []>} : vector<8x32xf32>, vector<32x32xf32>, vector<8x32xf32> -> vector<8x32xf32>
    %c0_19 = arith.constant 0 : index
    %c0_20 = arith.constant 0 : index
    %35 = vector.load %arg8[%c0_19, %c0_20] : memref<1x32xf32, #tpu.memory_space<vmem>>, vector<1x32xf32>
    %36 = vector.broadcast %35 : vector<1x32xf32> to vector<8x32xf32>
    %37 = arith.addf %34, %36 : vector<8x32xf32>
    %cst_21 = arith.constant 0.353553385 : f32
    %38 = vector.broadcast %cst_21 : f32 to vector<8x32xf32>
    %39 = arith.mulf %37, %38 : vector<8x32xf32>
    %c0_22 = arith.constant 0 : index
    %c0_23 = arith.constant 0 : index
    %40 = vector.load %arg6[%c0_22, %c0_23] : memref<32x32xf32, #tpu.memory_space<vmem>>, vector<32x32xf32>
    %cst_24 = arith.constant dense<0.000000e+00> : vector<8x32xf32>
    %41 = tpu.matmul %32, %40, %cst_24 {dimension_numbers = #tpu.dot_dimension_numbers<[1], [0], [0], [1], [0, 0, 1, 1], [], []>} : vector<8x32xf32>, vector<32x32xf32>, vector<8x32xf32> -> vector<8x32xf32>
    %c0_25 = arith.constant 0 : index
    %c0_26 = arith.constant 0 : index
    %42 = vector.load %arg9[%c0_25, %c0_26] : memref<1x32xf32, #tpu.memory_space<vmem>>, vector<1x32xf32>
    %43 = vector.broadcast %42 : vector<1x32xf32> to vector<8x32xf32>
    %44 = arith.addf %41, %43 : vector<8x32xf32>
    %c0_27 = arith.constant 0 : index
    %c0_28 = arith.constant 0 : index
    %45 = vector.load %arg7[%c0_27, %c0_28] : memref<32x32xf32, #tpu.memory_space<vmem>>, vector<32x32xf32>
    %cst_29 = arith.constant dense<0.000000e+00> : vector<8x32xf32>
    %46 = tpu.matmul %32, %45, %cst_29 {dimension_numbers = #tpu.dot_dimension_numbers<[1], [0], [0], [1], [0, 0, 1, 1], [], []>} : vector<8x32xf32>, vector<32x32xf32>, vector<8x32xf32> -> vector<8x32xf32>
    %c0_30 = arith.constant 0 : index
    %c0_31 = arith.constant 0 : index
    %47 = vector.load %arg10[%c0_30, %c0_31] : memref<1x32xf32, #tpu.memory_space<vmem>>, vector<1x32xf32>
    %48 = vector.broadcast %47 : vector<1x32xf32> to vector<8x32xf32>
    %49 = arith.addf %46, %48 : vector<8x32xf32>
    %c0_32 = arith.constant 0 : index
    %c0_33 = arith.constant 0 : index
    %c0_34 = arith.constant 0 : index
    %50 = vector.load %arg20[%c0_32, %c0_33, %c0_34] : memref<1x8x32xf32, #tpu.memory_space<vmem>>, vector<1x8x32xf32>
    %51 = vector.shape_cast %50 : vector<1x8x32xf32> to vector<8x32xf32>
    %52 = vector.shape_cast %39 : vector<8x32xf32> to vector<1x8x32xf32>
    tpu.vector_store %arg20[%c0_32, %c0_33, %c0_34], %52 {strides = array<i32>} : memref<1x8x32xf32, #tpu.memory_space<vmem>>, vector<1x8x32xf32>,
    %c0_35 = arith.constant 0 : index
    %c0_36 = arith.constant 0 : index
    %c0_37 = arith.constant 0 : index
    %53 = vector.load %arg21[%c0_35, %c0_36, %c0_37] : memref<1x8x32xf32, #tpu.memory_space<vmem>>, vector<1x8x32xf32>
    %54 = vector.shape_cast %53 : vector<1x8x32xf32> to vector<8x32xf32>
    %55 = vector.shape_cast %44 : vector<8x32xf32> to vector<1x8x32xf32>
    tpu.vector_store %arg21[%c0_35, %c0_36, %c0_37], %55 {strides = array<i32>} : memref<1x8x32xf32, #tpu.memory_space<vmem>>, vector<1x8x32xf32>,
    %c0_38 = arith.constant 0 : index
    %c0_39 = arith.constant 0 : index
    %c0_40 = arith.constant 0 : index
    %56 = vector.load %arg22[%c0_38, %c0_39, %c0_40] : memref<1x8x32xf32, #tpu.memory_space<vmem>>, vector<1x8x32xf32>
    %57 = vector.shape_cast %56 : vector<1x8x32xf32> to vector<8x32xf32>
    %58 = vector.shape_cast %49 : vector<8x32xf32> to vector<1x8x32xf32>
    tpu.vector_store %arg22[%c0_38, %c0_39, %c0_40], %58 {strides = array<i32>} : memref<1x8x32xf32, #tpu.memory_space<vmem>>, vector<1x8x32xf32>,
    %cst_41 = arith.constant 0.000000e+00 : f32
    %59 = vector.broadcast %cst_41 : f32 to vector<8x32xf32>
    %c0_42 = arith.constant 0 : index
    %c0_43 = arith.constant 0 : index
    %60 = vector.load %arg23[%c0_42, %c0_43] : memref<8x32xf32, #tpu.memory_space<vmem>>, vector<8x32xf32>
    tpu.vector_store %arg23[%c0_42, %c0_43], %59 {strides = array<i32>} : memref<8x32xf32, #tpu.memory_space<vmem>>, vector<8x32xf32>,
    %c0_i32 = arith.constant 0 : i32
    %61 = arith.index_cast %c0_i32 : i32 to index
    %c0_44 = arith.constant 0 : index
    %c0_45 = arith.constant 0 : index
    %62 = vector.load %arg20[%61, %c0_44, %c0_45] : memref<1x8x32xf32, #tpu.memory_space<vmem>>, vector<1x8x32xf32>
    %63 = vector.shape_cast %62 : vector<1x8x32xf32> to vector<8x32xf32>
    %64 = arith.index_cast %c0_i32 : i32 to index
    %c0_46 = arith.constant 0 : index
    %c0_47 = arith.constant 0 : index
    %65 = vector.load %arg21[%64, %c0_46, %c0_47] : memref<1x8x32xf32, #tpu.memory_space<vmem>>, vector<1x8x32xf32>
    %66 = vector.shape_cast %65 : vector<1x8x32xf32> to vector<8x32xf32>
    %67 = arith.index_cast %c0_i32 : i32 to index
    %c0_48 = arith.constant 0 : index
    %c0_49 = arith.constant 0 : index
    %68 = vector.load %arg22[%67, %c0_48, %c0_49] : memref<1x8x32xf32, #tpu.memory_space<vmem>>, vector<1x8x32xf32>
    %69 = vector.shape_cast %68 : vector<1x8x32xf32> to vector<8x32xf32>
    %70 = vector.extract_strided_slice %63 {offsets = [0, 0], sizes = [8, 8], strides = [1, 1]} : vector<8x32xf32> to vector<8x8xf32>
    %71 = vector.extract_strided_slice %66 {offsets = [0, 0], sizes = [8, 8], strides = [1, 1]} : vector<8x32xf32> to vector<8x8xf32>
    %cst_50 = arith.constant dense<0.000000e+00> : vector<8x8xf32>
    %72 = tpu.matmul %70, %71, %cst_50 {dimension_numbers = #tpu.dot_dimension_numbers<[1], [1], [0], [0], [0, 0, 1, 0], [], []>} : vector<8x8xf32>, vector<8x8xf32>, vector<8x8xf32> -> vector<8x8xf32>
    %73 = vector.broadcast %8 : vector<1x8xf32> to vector<8x8xf32>
    %74 = arith.addf %72, %73 : vector<8x8xf32>
    %cst_51 = arith.constant dense<0xFF800000> : vector<8xf32>
    %75 = vector.multi_reduction <maximumf>, %74, %cst_51 [1] : vector<8x8xf32> to vector<8xf32>
    %76 = vector.shape_cast %75 : vector<8xf32> to vector<8x1xf32>
    %77 = vector.broadcast %76 : vector<8x1xf32> to vector<8x8xf32>
    %78 = arith.subf %74, %77 : vector<8x8xf32>
    %79 = math.exp %78 : vector<8x8xf32>
    %cst_52 = arith.constant dense<0.000000e+00> : vector<8xf32>
    %80 = vector.multi_reduction <add>, %79, %cst_52 [1] : vector<8x8xf32> to vector<8xf32>
    %81 = vector.shape_cast %80 : vector<8xf32> to vector<8x1xf32>
    %82 = tpu.reciprocal %81 {approx = true} : vector<8x1xf32> -> vector<8x1xf32>
    %83 = vector.broadcast %82 : vector<8x1xf32> to vector<8x8xf32>
    %84 = arith.mulf %79, %83 : vector<8x8xf32>
    %85 = vector.extract_strided_slice %69 {offsets = [0, 0], sizes = [8, 8], strides = [1, 1]} : vector<8x32xf32> to vector<8x8xf32>
    %cst_53 = arith.constant dense<0.000000e+00> : vector<8x8xf32>
    %86 = tpu.matmul %84, %85, %cst_53 {dimension_numbers = #tpu.dot_dimension_numbers<[1], [0], [0], [1], [0, 0, 1, 1], [], []>} : vector<8x8xf32>, vector<8x8xf32>, vector<8x8xf32> -> vector<8x8xf32>
    %c0_54 = arith.constant 0 : index
    %c0_55 = arith.constant 0 : index
    %87 = vector.load %arg23[%c0_54, %c0_55] : memref<8x32xf32, #tpu.memory_space<vmem>>, vector<8x32xf32>
    %c4_i32 = arith.constant 4 : i32
    %88 = arith.muli %c0_i32, %c4_i32 : i32
    %c0_i32_56 = arith.constant 0 : i32
    %89 = arith.addi %88, %c0_i32_56 : i32
    %90 = arith.index_cast %89 : i32 to index
    %c0_57 = arith.constant 0 : index
    %c0_58 = arith.constant 0 : index
    %91 = vector.load %arg11[%90, %c0_57, %c0_58] : memref<4x8x32xf32, #tpu.memory_space<vmem>>, vector<1x8x32xf32>
    %92 = vector.shape_cast %91 : vector<1x8x32xf32> to vector<8x32xf32>
    %cst_59 = arith.constant dense<0.000000e+00> : vector<8x32xf32>
    %93 = tpu.matmul %86, %92, %cst_59 {dimension_numbers = #tpu.dot_dimension_numbers<[1], [0], [0], [1], [0, 0, 1, 1], [], []>} : vector<8x8xf32>, vector<8x32xf32>, vector<8x32xf32> -> vector<8x32xf32>
    %94 = arith.addf %87, %93 : vector<8x32xf32>
    %c0_60 = arith.constant 0 : index
    %c0_61 = arith.constant 0 : index
    %95 = vector.load %arg23[%c0_60, %c0_61] : memref<8x32xf32, #tpu.memory_space<vmem>>, vector<8x32xf32>
    tpu.vector_store %arg23[%c0_60, %c0_61], %94 {strides = array<i32>} : memref<8x32xf32, #tpu.memory_space<vmem>>, vector<8x32xf32>,
    %96 = vector.extract_strided_slice %63 {offsets = [0, 8], sizes = [8, 8], strides = [1, 1]} : vector<8x32xf32> to vector<8x8xf32>
    %97 = vector.extract_strided_slice %66 {offsets = [0, 8], sizes = [8, 8], strides = [1, 1]} : vector<8x32xf32> to vector<8x8xf32>
    %cst_62 = arith.constant dense<0.000000e+00> : vector<8x8xf32>
    %98 = tpu.matmul %96, %97, %cst_62 {dimension_numbers = #tpu.dot_dimension_numbers<[1], [1], [0], [0], [0, 0, 1, 0], [], []>} : vector<8x8xf32>, vector<8x8xf32>, vector<8x8xf32> -> vector<8x8xf32>
    %99 = vector.broadcast %8 : vector<1x8xf32> to vector<8x8xf32>
    %100 = arith.addf %98, %99 : vector<8x8xf32>
    %cst_63 = arith.constant dense<0xFF800000> : vector<8xf32>
    %101 = vector.multi_reduction <maximumf>, %100, %cst_63 [1] : vector<8x8xf32> to vector<8xf32>
    %102 = vector.shape_cast %101 : vector<8xf32> to vector<8x1xf32>
    %103 = vector.broadcast %102 : vector<8x1xf32> to vector<8x8xf32>
    %104 = arith.subf %100, %103 : vector<8x8xf32>
    %105 = math.exp %104 : vector<8x8xf32>
    %cst_64 = arith.constant dense<0.000000e+00> : vector<8xf32>
    %106 = vector.multi_reduction <add>, %105, %cst_64 [1] : vector<8x8xf32> to vector<8xf32>
    %107 = vector.shape_cast %106 : vector<8xf32> to vector<8x1xf32>
    %108 = tpu.reciprocal %107 {approx = true} : vector<8x1xf32> -> vector<8x1xf32>
    %109 = vector.broadcast %108 : vector<8x1xf32> to vector<8x8xf32>
    %110 = arith.mulf %105, %109 : vector<8x8xf32>
    %111 = vector.extract_strided_slice %69 {offsets = [0, 8], sizes = [8, 8], strides = [1, 1]} : vector<8x32xf32> to vector<8x8xf32>
    %cst_65 = arith.constant dense<0.000000e+00> : vector<8x8xf32>
    %112 = tpu.matmul %110, %111, %cst_65 {dimension_numbers = #tpu.dot_dimension_numbers<[1], [0], [0], [1], [0, 0, 1, 1], [], []>} : vector<8x8xf32>, vector<8x8xf32>, vector<8x8xf32> -> vector<8x8xf32>
    %c0_66 = arith.constant 0 : index
    %c0_67 = arith.constant 0 : index
    %113 = vector.load %arg23[%c0_66, %c0_67] : memref<8x32xf32, #tpu.memory_space<vmem>>, vector<8x32xf32>
    %c4_i32_68 = arith.constant 4 : i32
    %114 = arith.muli %c0_i32, %c4_i32_68 : i32
    %c1_i32 = arith.constant 1 : i32
    %115 = arith.addi %114, %c1_i32 : i32
    %116 = arith.index_cast %115 : i32 to index
    %c0_69 = arith.constant 0 : index
    %c0_70 = arith.constant 0 : index
    %117 = vector.load %arg11[%116, %c0_69, %c0_70] : memref<4x8x32xf32, #tpu.memory_space<vmem>>, vector<1x8x32xf32>
    %118 = vector.shape_cast %117 : vector<1x8x32xf32> to vector<8x32xf32>
    %cst_71 = arith.constant dense<0.000000e+00> : vector<8x32xf32>
    %119 = tpu.matmul %112, %118, %cst_71 {dimension_numbers = #tpu.dot_dimension_numbers<[1], [0], [0], [1], [0, 0, 1, 1], [], []>} : vector<8x8xf32>, vector<8x32xf32>, vector<8x32xf32> -> vector<8x32xf32>
    %120 = arith.addf %113, %119 : vector<8x32xf32>
    %c0_72 = arith.constant 0 : index
    %c0_73 = arith.constant 0 : index
    %121 = vector.load %arg23[%c0_72, %c0_73] : memref<8x32xf32, #tpu.memory_space<vmem>>, vector<8x32xf32>
    tpu.vector_store %arg23[%c0_72, %c0_73], %120 {strides = array<i32>} : memref<8x32xf32, #tpu.memory_space<vmem>>, vector<8x32xf32>,
    %122 = vector.extract_strided_slice %63 {offsets = [0, 16], sizes = [8, 8], strides = [1, 1]} : vector<8x32xf32> to vector<8x8xf32>
    %123 = vector.extract_strided_slice %66 {offsets = [0, 16], sizes = [8, 8], strides = [1, 1]} : vector<8x32xf32> to vector<8x8xf32>
    %cst_74 = arith.constant dense<0.000000e+00> : vector<8x8xf32>
    %124 = tpu.matmul %122, %123, %cst_74 {dimension_numbers = #tpu.dot_dimension_numbers<[1], [1], [0], [0], [0, 0, 1, 0], [], []>} : vector<8x8xf32>, vector<8x8xf32>, vector<8x8xf32> -> vector<8x8xf32>
    %125 = vector.broadcast %8 : vector<1x8xf32> to vector<8x8xf32>
    %126 = arith.addf %124, %125 : vector<8x8xf32>
    %cst_75 = arith.constant dense<0xFF800000> : vector<8xf32>
    %127 = vector.multi_reduction <maximumf>, %126, %cst_75 [1] : vector<8x8xf32> to vector<8xf32>
    %128 = vector.shape_cast %127 : vector<8xf32> to vector<8x1xf32>
    %129 = vector.broadcast %128 : vector<8x1xf32> to vector<8x8xf32>
    %130 = arith.subf %126, %129 : vector<8x8xf32>
    %131 = math.exp %130 : vector<8x8xf32>
    %cst_76 = arith.constant dense<0.000000e+00> : vector<8xf32>
    %132 = vector.multi_reduction <add>, %131, %cst_76 [1] : vector<8x8xf32> to vector<8xf32>
    %133 = vector.shape_cast %132 : vector<8xf32> to vector<8x1xf32>
    %134 = tpu.reciprocal %133 {approx = true} : vector<8x1xf32> -> vector<8x1xf32>
    %135 = vector.broadcast %134 : vector<8x1xf32> to vector<8x8xf32>
    %136 = arith.mulf %131, %135 : vector<8x8xf32>
    %137 = vector.extract_strided_slice %69 {offsets = [0, 16], sizes = [8, 8], strides = [1, 1]} : vector<8x32xf32> to vector<8x8xf32>
    %cst_77 = arith.constant dense<0.000000e+00> : vector<8x8xf32>
    %138 = tpu.matmul %136, %137, %cst_77 {dimension_numbers = #tpu.dot_dimension_numbers<[1], [0], [0], [1], [0, 0, 1, 1], [], []>} : vector<8x8xf32>, vector<8x8xf32>, vector<8x8xf32> -> vector<8x8xf32>
    %c0_78 = arith.constant 0 : index
    %c0_79 = arith.constant 0 : index
    %139 = vector.load %arg23[%c0_78, %c0_79] : memref<8x32xf32, #tpu.memory_space<vmem>>, vector<8x32xf32>
    %c4_i32_80 = arith.constant 4 : i32
    %140 = arith.muli %c0_i32, %c4_i32_80 : i32
    %c2_i32 = arith.constant 2 : i32
    %141 = arith.addi %140, %c2_i32 : i32
    %142 = arith.index_cast %141 : i32 to index
    %c0_81 = arith.constant 0 : index
    %c0_82 = arith.constant 0 : index
    %143 = vector.load %arg11[%142, %c0_81, %c0_82] : memref<4x8x32xf32, #tpu.memory_space<vmem>>, vector<1x8x32xf32>
    %144 = vector.shape_cast %143 : vector<1x8x32xf32> to vector<8x32xf32>
    %cst_83 = arith.constant dense<0.000000e+00> : vector<8x32xf32>
    %145 = tpu.matmul %138, %144, %cst_83 {dimension_numbers = #tpu.dot_dimension_numbers<[1], [0], [0], [1], [0, 0, 1, 1], [], []>} : vector<8x8xf32>, vector<8x32xf32>, vector<8x32xf32> -> vector<8x32xf32>
    %146 = arith.addf %139, %145 : vector<8x32xf32>
    %c0_84 = arith.constant 0 : index
    %c0_85 = arith.constant 0 : index
    %147 = vector.load %arg23[%c0_84, %c0_85] : memref<8x32xf32, #tpu.memory_space<vmem>>, vector<8x32xf32>
    tpu.vector_store %arg23[%c0_84, %c0_85], %146 {strides = array<i32>} : memref<8x32xf32, #tpu.memory_space<vmem>>, vector<8x32xf32>,
    %148 = vector.extract_strided_slice %63 {offsets = [0, 24], sizes = [8, 8], strides = [1, 1]} : vector<8x32xf32> to vector<8x8xf32>
    %149 = vector.extract_strided_slice %66 {offsets = [0, 24], sizes = [8, 8], strides = [1, 1]} : vector<8x32xf32> to vector<8x8xf32>
    %cst_86 = arith.constant dense<0.000000e+00> : vector<8x8xf32>
    %150 = tpu.matmul %148, %149, %cst_86 {dimension_numbers = #tpu.dot_dimension_numbers<[1], [1], [0], [0], [0, 0, 1, 0], [], []>} : vector<8x8xf32>, vector<8x8xf32>, vector<8x8xf32> -> vector<8x8xf32>
    %151 = vector.broadcast %8 : vector<1x8xf32> to vector<8x8xf32>
    %152 = arith.addf %150, %151 : vector<8x8xf32>
    %cst_87 = arith.constant dense<0xFF800000> : vector<8xf32>
    %153 = vector.multi_reduction <maximumf>, %152, %cst_87 [1] : vector<8x8xf32> to vector<8xf32>
    %154 = vector.shape_cast %153 : vector<8xf32> to vector<8x1xf32>
    %155 = vector.broadcast %154 : vector<8x1xf32> to vector<8x8xf32>
    %156 = arith.subf %152, %155 : vector<8x8xf32>
    %157 = math.exp %156 : vector<8x8xf32>
    %cst_88 = arith.constant dense<0.000000e+00> : vector<8xf32>
    %158 = vector.multi_reduction <add>, %157, %cst_88 [1] : vector<8x8xf32> to vector<8xf32>
    %159 = vector.shape_cast %158 : vector<8xf32> to vector<8x1xf32>
    %160 = tpu.reciprocal %159 {approx = true} : vector<8x1xf32> -> vector<8x1xf32>
    %161 = vector.broadcast %160 : vector<8x1xf32> to vector<8x8xf32>
    %162 = arith.mulf %157, %161 : vector<8x8xf32>
    %163 = vector.extract_strided_slice %69 {offsets = [0, 24], sizes = [8, 8], strides = [1, 1]} : vector<8x32xf32> to vector<8x8xf32>
    %cst_89 = arith.constant dense<0.000000e+00> : vector<8x8xf32>
    %164 = tpu.matmul %162, %163, %cst_89 {dimension_numbers = #tpu.dot_dimension_numbers<[1], [0], [0], [1], [0, 0, 1, 1], [], []>} : vector<8x8xf32>, vector<8x8xf32>, vector<8x8xf32> -> vector<8x8xf32>
    %c0_90 = arith.constant 0 : index
    %c0_91 = arith.constant 0 : index
    %165 = vector.load %arg23[%c0_90, %c0_91] : memref<8x32xf32, #tpu.memory_space<vmem>>, vector<8x32xf32>
    %c4_i32_92 = arith.constant 4 : i32
    %166 = arith.muli %c0_i32, %c4_i32_92 : i32
    %c3_i32 = arith.constant 3 : i32
    %167 = arith.addi %166, %c3_i32 : i32
    %168 = arith.index_cast %167 : i32 to index
    %c0_93 = arith.constant 0 : index
    %c0_94 = arith.constant 0 : index
    %169 = vector.load %arg11[%168, %c0_93, %c0_94] : memref<4x8x32xf32, #tpu.memory_space<vmem>>, vector<1x8x32xf32>
    %170 = vector.shape_cast %169 : vector<1x8x32xf32> to vector<8x32xf32>
    %cst_95 = arith.constant dense<0.000000e+00> : vector<8x32xf32>
    %171 = tpu.matmul %164, %170, %cst_95 {dimension_numbers = #tpu.dot_dimension_numbers<[1], [0], [0], [1], [0, 0, 1, 1], [], []>} : vector<8x8xf32>, vector<8x32xf32>, vector<8x32xf32> -> vector<8x32xf32>
    %172 = arith.addf %165, %171 : vector<8x32xf32>
    %c0_96 = arith.constant 0 : index
    %c0_97 = arith.constant 0 : index
    %173 = vector.load %arg23[%c0_96, %c0_97] : memref<8x32xf32, #tpu.memory_space<vmem>>, vector<8x32xf32>
    tpu.vector_store %arg23[%c0_96, %c0_97], %172 {strides = array<i32>} : memref<8x32xf32, #tpu.memory_space<vmem>>, vector<8x32xf32>,
    %c1_i32_98 = arith.constant 1 : i32
    %c0_99 = arith.constant 0 : index
    %c0_100 = arith.constant 0 : index
    %174 = vector.load %arg23[%c0_99, %c0_100] : memref<8x32xf32, #tpu.memory_space<vmem>>, vector<8x32xf32>
    %175 = arith.addf %1, %174 : vector<8x32xf32>
    %c0_101 = arith.constant 0 : index
    %c0_102 = arith.constant 0 : index
    %176 = vector.load %arg12[%c0_101, %c0_102] : memref<1x32xf32, #tpu.memory_space<vmem>>, vector<1x32xf32>
    %177 = vector.broadcast %176 : vector<1x32xf32> to vector<8x32xf32>
    %178 = arith.addf %175, %177 : vector<8x32xf32>
    %c0_103 = arith.constant 0 : index
    %c0_104 = arith.constant 0 : index
    %179 = vector.load %arg23[%c0_103, %c0_104] : memref<8x32xf32, #tpu.memory_space<vmem>>, vector<8x32xf32>
    tpu.vector_store %arg23[%c0_103, %c0_104], %178 {strides = array<i32>} : memref<8x32xf32, #tpu.memory_space<vmem>>, vector<8x32xf32>,
    %c0_105 = arith.constant 0 : index
    %c0_106 = arith.constant 0 : index
    %180 = vector.load %arg23[%c0_105, %c0_106] : memref<8x32xf32, #tpu.memory_space<vmem>>, vector<8x32xf32>
    %c0_107 = arith.constant 0 : index
    %c0_108 = arith.constant 0 : index
    %181 = vector.load %arg13[%c0_107, %c0_108] : memref<1x32xf32, #tpu.memory_space<vmem>>, vector<1x32xf32>
    %c0_109 = arith.constant 0 : index
    %c0_110 = arith.constant 0 : index
    %182 = vector.load %arg14[%c0_109, %c0_110] : memref<1x32xf32, #tpu.memory_space<vmem>>, vector<1x32xf32>
    %cst_111 = arith.constant dense<0.000000e+00> : vector<8xf32>
    %183 = vector.multi_reduction <add>, %180, %cst_111 [1] : vector<8x32xf32> to vector<8xf32>
    %184 = vector.shape_cast %183 : vector<8xf32> to vector<8x1xf32>
    %cst_112 = arith.constant 3.200000e+01 : f32
    %185 = vector.broadcast %cst_112 : f32 to vector<8x1xf32>
    %186 = arith.divf %184, %185 : vector<8x1xf32>
    %187 = vector.broadcast %186 : vector<8x1xf32> to vector<8x32xf32>
    %188 = arith.subf %180, %187 : vector<8x32xf32>
    %189 = arith.mulf %188, %188 : vector<8x32xf32>
    %cst_113 = arith.constant dense<0.000000e+00> : vector<8xf32>
    %190 = vector.multi_reduction <add>, %189, %cst_113 [1] : vector<8x32xf32> to vector<8xf32>
    %191 = vector.shape_cast %190 : vector<8xf32> to vector<8x1xf32>
    %cst_114 = arith.constant 3.200000e+01 : f32
    %192 = vector.broadcast %cst_114 : f32 to vector<8x1xf32>
    %193 = arith.divf %191, %192 : vector<8x1xf32>
    %194 = vector.broadcast %186 : vector<8x1xf32> to vector<8x32xf32>
    %195 = arith.subf %180, %194 : vector<8x32xf32>
    %cst_115 = arith.constant 9.99999996E-13 : f32
    %196 = vector.broadcast %cst_115 : f32 to vector<8x1xf32>
    %197 = arith.addf %193, %196 : vector<8x1xf32>
    %198 = math.rsqrt %197 : vector<8x1xf32>
    %199 = vector.broadcast %198 : vector<8x1xf32> to vector<8x32xf32>
    %200 = arith.mulf %195, %199 : vector<8x32xf32>
    %201 = vector.broadcast %181 : vector<1x32xf32> to vector<8x32xf32>
    %202 = arith.mulf %200, %201 : vector<8x32xf32>
    %203 = vector.broadcast %182 : vector<1x32xf32> to vector<8x32xf32>
    %204 = arith.addf %202, %203 : vector<8x32xf32>
    %c0_116 = arith.constant 0 : index
    %c0_117 = arith.constant 0 : index
    %205 = vector.load %arg15[%c0_116, %c0_117] : memref<32x64xf32, #tpu.memory_space<vmem>>, vector<32x64xf32>
    %cst_118 = arith.constant dense<0.000000e+00> : vector<8x64xf32>
    %206 = tpu.matmul %204, %205, %cst_118 {dimension_numbers = #tpu.dot_dimension_numbers<[1], [0], [0], [1], [0, 0, 1, 1], [], []>} : vector<8x32xf32>, vector<32x64xf32>, vector<8x64xf32> -> vector<8x64xf32>
    %c0_119 = arith.constant 0 : index
    %c0_120 = arith.constant 0 : index
    %207 = vector.load %arg16[%c0_119, %c0_120] : memref<1x64xf32, #tpu.memory_space<vmem>>, vector<1x64xf32>
    %208 = vector.broadcast %207 : vector<1x64xf32> to vector<8x64xf32>
    %209 = arith.addf %206, %208 : vector<8x64xf32>
    %210 = arith.mulf %209, %209 : vector<8x64xf32>
    %211 = arith.mulf %209, %210 : vector<8x64xf32>
    %cst_121 = arith.constant 4.471500e-02 : f32
    %212 = vector.broadcast %cst_121 : f32 to vector<8x64xf32>
    %213 = arith.mulf %212, %211 : vector<8x64xf32>
    %214 = arith.addf %209, %213 : vector<8x64xf32>
    %cst_122 = arith.constant 0.797884583 : f32
    %215 = vector.broadcast %cst_122 : f32 to vector<8x64xf32>
    %216 = arith.mulf %215, %214 : vector<8x64xf32>
    %217 = math.tanh %216 : vector<8x64xf32>
    %cst_123 = arith.constant 1.000000e+00 : f32
    %218 = vector.broadcast %cst_123 : f32 to vector<8x64xf32>
    %219 = arith.addf %218, %217 : vector<8x64xf32>
    %cst_124 = arith.constant 5.000000e-01 : f32
    %220 = vector.broadcast %cst_124 : f32 to vector<8x64xf32>
    %221 = arith.mulf %220, %219 : vector<8x64xf32>
    %222 = arith.mulf %209, %221 : vector<8x64xf32>
    %c0_125 = arith.constant 0 : index
    %c0_126 = arith.constant 0 : index
    %223 = vector.load %arg17[%c0_125, %c0_126] : memref<64x32xf32, #tpu.memory_space<vmem>>, vector<64x32xf32>
    %cst_127 = arith.constant dense<0.000000e+00> : vector<8x32xf32>
    %224 = tpu.matmul %222, %223, %cst_127 {dimension_numbers = #tpu.dot_dimension_numbers<[1], [0], [0], [1], [0, 0, 1, 1], [], []>} : vector<8x64xf32>, vector<64x32xf32>, vector<8x32xf32> -> vector<8x32xf32>
    %c0_128 = arith.constant 0 : index
    %c0_129 = arith.constant 0 : index
    %225 = vector.load %arg18[%c0_128, %c0_129] : memref<1x32xf32, #tpu.memory_space<vmem>>, vector<1x32xf32>
    %226 = vector.broadcast %225 : vector<1x32xf32> to vector<8x32xf32>
    %227 = arith.addf %224, %226 : vector<8x32xf32>
    %228 = arith.addf %180, %227 : vector<8x32xf32>
    %c0_130 = arith.constant 0 : index
    %c0_131 = arith.constant 0 : index
    %c0_132 = arith.constant 0 : index
    %229 = vector.load %arg19[%c0_130, %c0_131, %c0_132] : memref<1x8x32xf32, #tpu.memory_space<vmem>>, vector<1x8x32xf32>
    %230 = vector.shape_cast %229 : vector<1x8x32xf32> to vector<8x32xf32>
    %231 = vector.shape_cast %228 : vector<8x32xf32> to vector<1x8x32xf32>
    tpu.vector_store %arg19[%c0_130, %c0_131, %c0_132], %231 {strides = array<i32>} : memref<1x8x32xf32, #tpu.memory_space<vmem>>, vector<1x8x32xf32>,
    return
  }
  func.func @transform_0(%arg0: i32) -> (i32, i32, i32) {
    %c0_i32 = arith.constant 0 : i32
    %c0_i32_0 = arith.constant 0 : i32
    %c0_i32_1 = arith.constant 0 : i32
    return %arg0, %c0_i32, %c0_i32_0 : i32, i32, i32
  }
  func.func @transform_1(%arg0: i32) -> (i32, i32, i32) {
    %c0_i32 = arith.constant 0 : i32
    %c0_i32_0 = arith.constant 0 : i32
    %c0_i32_1 = arith.constant 0 : i32
    return %arg0, %c0_i32, %c0_i32_0 : i32, i32, i32
  }
  func.func @transform_2(%arg0: i32) -> (i32, i32) {
    %c0_i32 = arith.constant 0 : i32
    %c0_i32_0 = arith.constant 0 : i32
    %c0_i32_1 = arith.constant 0 : i32
    return %c0_i32, %c0_i32_0 : i32, i32
  }
  func.func @transform_3(%arg0: i32) -> (i32, i32) {
    %c0_i32 = arith.constant 0 : i32
    %c0_i32_0 = arith.constant 0 : i32
    %c0_i32_1 = arith.constant 0 : i32
    return %c0_i32, %c0_i32_0 : i32, i32
  }
  func.func @transform_4(%arg0: i32) -> (i32, i32) {
    %c0_i32 = arith.constant 0 : i32
    %c0_i32_0 = arith.constant 0 : i32
    %c0_i32_1 = arith.constant 0 : i32
    return %c0_i32, %c0_i32_0 : i32, i32
  }
  func.func @transform_5(%arg0: i32) -> (i32, i32) {
    %c0_i32 = arith.constant 0 : i32
    %c0_i32_0 = arith.constant 0 : i32
    %c0_i32_1 = arith.constant 0 : i32
    return %c0_i32, %c0_i32_0 : i32, i32
  }
  func.func @transform_6(%arg0: i32) -> (i32, i32) {
    %c0_i32 = arith.constant 0 : i32
    %c0_i32_0 = arith.constant 0 : i32
    %c0_i32_1 = arith.constant 0 : i32
    return %c0_i32, %c0_i32_0 : i32, i32
  }
  func.func @transform_7(%arg0: i32) -> (i32, i32) {
    %c0_i32 = arith.constant 0 : i32
    %c0_i32_0 = arith.constant 0 : i32
    %c0_i32_1 = arith.constant 0 : i32
    return %c0_i32, %c0_i32_0 : i32, i32
  }
  func.func @transform_8(%arg0: i32) -> (i32, i32) {
    %c0_i32 = arith.constant 0 : i32
    %c0_i32_0 = arith.constant 0 : i32
    %c0_i32_1 = arith.constant 0 : i32
    return %c0_i32, %c0_i32_0 : i32, i32
  }
  func.func @transform_9(%arg0: i32) -> (i32, i32) {
    %c0_i32 = arith.constant 0 : i32
    %c0_i32_0 = arith.constant 0 : i32
    %c0_i32_1 = arith.constant 0 : i32
    return %c0_i32, %c0_i32_0 : i32, i32
  }
  func.func @transform_10(%arg0: i32) -> (i32, i32, i32) {
    %c0_i32 = arith.constant 0 : i32
    %c0_i32_0 = arith.constant 0 : i32
    %c0_i32_1 = arith.constant 0 : i32
    %c0_i32_2 = arith.constant 0 : i32
    return %c0_i32, %c0_i32_0, %c0_i32_1 : i32, i32, i32
  }
  func.func @transform_11(%arg0: i32) -> (i32, i32) {
    %c0_i32 = arith.constant 0 : i32
    %c0_i32_0 = arith.constant 0 : i32
    %c0_i32_1 = arith.constant 0 : i32
    return %c0_i32, %c0_i32_0 : i32, i32
  }
  func.func @transform_12(%arg0: i32) -> (i32, i32) {
    %c0_i32 = arith.constant 0 : i32
    %c0_i32_0 = arith.constant 0 : i32
    %c0_i32_1 = arith.constant 0 : i32
    return %c0_i32, %c0_i32_0 : i32, i32
  }
  func.func @transform_13(%arg0: i32) -> (i32, i32) {
    %c0_i32 = arith.constant 0 : i32
    %c0_i32_0 = arith.constant 0 : i32
    %c0_i32_1 = arith.constant 0 : i32
    return %c0_i32, %c0_i32_0 : i32, i32
  }
  func.func @transform_14(%arg0: i32) -> (i32, i32) {
    %c0_i32 = arith.constant 0 : i32
    %c0_i32_0 = arith.constant 0 : i32
    %c0_i32_1 = arith.constant 0 : i32
    return %c0_i32, %c0_i32_0 : i32, i32
  }
  func.func @transform_15(%arg0: i32) -> (i32, i32) {
    %c0_i32 = arith.constant 0 : i32
    %c0_i32_0 = arith.constant 0 : i32
    %c0_i32_1 = arith.constant 0 : i32
    return %c0_i32, %c0_i32_0 : i32, i32
  }
  func.func @transform_16(%arg0: i32) -> (i32, i32) {
    %c0_i32 = arith.constant 0 : i32
    %c0_i32_0 = arith.constant 0 : i32
    %c0_i32_1 = arith.constant 0 : i32
    return %c0_i32, %c0_i32_0 : i32, i32
  }
  func.func @transform_17(%arg0: i32) -> (i32, i32) {
    %c0_i32 = arith.constant 0 : i32
    %c0_i32_0 = arith.constant 0 : i32
    %c0_i32_1 = arith.constant 0 : i32
    return %c0_i32, %c0_i32_0 : i32, i32
  }
  func.func @transform_18(%arg0: i32) -> (i32, i32, i32) {
    %c0_i32 = arith.constant 0 : i32
    %c0_i32_0 = arith.constant 0 : i32
    %c0_i32_1 = arith.constant 0 : i32
    return %arg0, %c0_i32, %c0_i32_0 : i32, i32, i32
  }
}

module attributes {stable_mosaic.version = 11 : i64} {
  func.func @flexbert_layer_kernel(%arg0: i32, %arg1: memref<1x8x32xf32, #tpu.memory_space<vmem>>, %arg2: memref<1x1x8xf32, #tpu.memory_space<vmem>>, %arg3: memref<1x32xf32, #tpu.memory_space<vmem>>, %arg4: memref<1x32xf32, #tpu.memory_space<vmem>>, %arg5: memref<32x32xf32, #tpu.memory_space<vmem>>, %arg6: memref<32x32xf32, #tpu.memory_space<vmem>>, %arg7: memref<32x32xf32, #tpu.memory_space<vmem>>, %arg8: memref<1x32xf32, #tpu.memory_space<vmem>>, %arg9: memref<1x32xf32, #tpu.memory_space<vmem>>, %arg10: memref<1x32xf32, #tpu.memory_space<vmem>>, %arg11: memref<4x8x32xf32, #tpu.memory_space<vmem>>, %arg12: memref<1x32xf32, #tpu.memory_space<vmem>>, %arg13: memref<1x32xf32, #tpu.memory_space<vmem>>, %arg14: memref<1x32xf32, #tpu.memory_space<vmem>>, %arg15: memref<32x64xf32, #tpu.memory_space<vmem>>, %arg16: memref<1x64xf32, #tpu.memory_space<vmem>>, %arg17: memref<64x32xf32, #tpu.memory_space<vmem>>, %arg18: memref<1x32xf32, #tpu.memory_space<vmem>>, %arg19: memref<1x8x32xf32, #tpu.memory_space<vmem>>, %arg20: memref<1x8x32xf32, #tpu.memory_space<vmem>>, %arg21: memref<1x8x32xf32, #tpu.memory_space<vmem>>, %arg22: memref<1x8x32xf32, #tpu.memory_space<vmem>>, %arg23: memref<8x32xf32, #tpu.memory_space<vmem>>) attributes {dimension_semantics = [#tpu.dimension_semantics<parallel>], iteration_bounds = array<i64: 2>, scalar_prefetch = 0 : i64, scratch_operands = 4 : i64, tpu.core_type = #tpu.core_type<tc>, window_params = [{transform_indices = @transform_0, window_bounds = array<i64: 1, 8, 32>}, {transform_indices = @transform_1, window_bounds = array<i64: 1, 1, 8>}, {pipeline_mode = #tpu.pipeline_mode<synchronous>, transform_indices = @transform_2, window_bounds = array<i64: 1, 32>}, {pipeline_mode = #tpu.pipeline_mode<synchronous>, transform_indices = @transform_3, window_bounds = array<i64: 1, 32>}, {pipeline_mode = #tpu.pipeline_mode<synchronous>, transform_indices = @transform_4, window_bounds = array<i64: 32, 32>}, {pipeline_mode = #tpu.pipeline_mode<synchronous>, transform_indices = @transform_5, window_bounds = array<i64: 32, 32>}, {pipeline_mode = #tpu.pipeline_mode<synchronous>, transform_indices = @transform_6, window_bounds = array<i64: 32, 32>}, {pipeline_mode = #tpu.pipeline_mode<synchronous>, transform_indices = @transform_7, window_bounds = array<i64: 1, 32>}, {pipeline_mode = #tpu.pipeline_mode<synchronous>, transform_indices = @transform_8, window_bounds = array<i64: 1, 32>}, {pipeline_mode = #tpu.pipeline_mode<synchronous>, transform_indices = @transform_9, window_bounds = array<i64: 1, 32>}, {pipeline_mode = #tpu.pipeline_mode<synchronous>, transform_indices = @transform_10, window_bounds = array<i64: 4, 8, 32>}, {pipeline_mode = #tpu.pipeline_mode<synchronous>, transform_indices = @transform_11, window_bounds = array<i64: 1, 32>}, {pipeline_mode = #tpu.pipeline_mode<synchronous>, transform_indices = @transform_12, window_bounds = array<i64: 1, 32>}, {pipeline_mode = #tpu.pipeline_mode<synchronous>, transform_indices = @transform_13, window_bounds = array<i64: 1, 32>}, {pipeline_mode = #tpu.pipeline_mode<synchronous>, transform_indices = @transform_14, window_bounds = array<i64: 32, 64>}, {pipeline_mode = #tpu.pipeline_mode<synchronous>, transform_indices = @transform_15, window_bounds = array<i64: 1, 64>}, {pipeline_mode = #tpu.pipeline_mode<synchronous>, transform_indices = @transform_16, window_bounds = array<i64: 64, 32>}, {pipeline_mode = #tpu.pipeline_mode<synchronous>, transform_indices = @transform_17, window_bounds = array<i64: 1, 32>}, {transform_indices = @transform_18, window_bounds = array<i64: 1, 8, 32>}]} {
    %c0 = arith.constant 0 : index
    %c0_0 = arith.constant 0 : index
    %c0_1 = arith.constant 0 : index
    %0 = vector.load %arg1[%c0, %c0_0, %c0_1] : memref<1x8x32xf32, #tpu.memory_space<vmem>>, vector<1x8x32xf32>
    %1 = vector.shape_cast %0 : vector<1x8x32xf32> to vector<8x32xf32>
    %c0_2 = arith.constant 0 : index
    %c0_3 = arith.constant 0 : index
    %c0_4 = arith.constant 0 : index
    %2 = vector.load %arg2[%c0_2, %c0_3, %c0_4] : memref<1x1x8xf32, #tpu.memory_space<vmem>>, vector<1x1x8xf32>
    %3 = vector.shape_cast %2 : vector<1x1x8xf32> to vector<1x8xf32>
    %cst = arith.constant 0.000000e+00 : f32
    %4 = vector.broadcast %cst : f32 to vector<1x8xf32>
    %5 = arith.cmpf ogt, %3, %4 : vector<1x8xf32>
    %cst_5 = arith.constant 0.000000e+00 : f32
    %cst_6 = arith.constant -1.000000e+09 : f32
    %6 = vector.broadcast %cst_5 : f32 to vector<1x8xf32>
    %7 = vector.broadcast %cst_6 : f32 to vector<1x8xf32>
    %8 = arith.select %5, %6, %7 : vector<1x8xi1>, vector<1x8xf32>
    %c0_7 = arith.constant 0 : index
    %c0_8 = arith.constant 0 : index
    %9 = vector.load %arg3[%c0_7, %c0_8] : memref<1x32xf32, #tpu.memory_space<vmem>>, vector<1x32xf32>
    %c0_9 = arith.constant 0 : index
    %c0_10 = arith.constant 0 : index
    %10 = vector.load %arg4[%c0_9, %c0_10] : memref<1x32xf32, #tpu.memory_space<vmem>>, vector<1x32xf32>
    %cst_11 = arith.constant dense<0.000000e+00> : vector<8xf32>
    %11 = vector.multi_reduction <add>, %1, %cst_11 [1] : vector<8x32xf32> to vector<8xf32>
    %12 = vector.shape_cast %11 : vector<8xf32> to vector<8x1xf32>
    %cst_12 = arith.constant 3.200000e+01 : f32
    %13 = vector.broadcast %cst_12 : f32 to vector<8x1xf32>
    %14 = arith.divf %12, %13 : vector<8x1xf32>
    %15 = vector.broadcast %14 : vector<8x1xf32> to vector<8x32xf32>
    %16 = arith.subf %1, %15 : vector<8x32xf32>
    %17 = arith.mulf %16, %16 : vector<8x32xf32>
    %cst_13 = arith.constant dense<0.000000e+00> : vector<8xf32>
    %18 = vector.multi_reduction <add>, %17, %cst_13 [1] : vector<8x32xf32> to vector<8xf32>
    %19 = vector.shape_cast %18 : vector<8xf32> to vector<8x1xf32>
    %cst_14 = arith.constant 3.200000e+01 : f32
    %20 = vector.broadcast %cst_14 : f32 to vector<8x1xf32>
    %21 = arith.divf %19, %20 : vector<8x1xf32>
    %22 = vector.broadcast %14 : vector<8x1xf32> to vector<8x32xf32>
    %23 = arith.subf %1, %22 : vector<8x32xf32>
    %cst_15 = arith.constant 9.99999996E-13 : f32
    %24 = vector.broadcast %cst_15 : f32 to vector<8x1xf32>
    %25 = arith.addf %21, %24 : vector<8x1xf32>
    %26 = math.rsqrt %25 : vector<8x1xf32>
    %27 = vector.broadcast %26 : vector<8x1xf32> to vector<8x32xf32>
    %28 = arith.mulf %23, %27 : vector<8x32xf32>
    %29 = vector.broadcast %9 : vector<1x32xf32> to vector<8x32xf32>
    %30 = arith.mulf %28, %29 : vector<8x32xf32>
    %31 = vector.broadcast %10 : vector<1x32xf32> to vector<8x32xf32>
    %32 = arith.addf %30, %31 : vector<8x32xf32>
    %c0_16 = arith.constant 0 : index
    %c0_17 = arith.constant 0 : index
    %33 = vector.load %arg5[%c0_16, %c0_17] : memref<32x32xf32, #tpu.memory_space<vmem>>, vector<32x32xf32>
    %cst_18 = arith.constant dense<0.000000e+00> : vector<8x32xf32>
    %34 = tpu.matmul %32, %33, %cst_18 {dimension_numbers = #tpu.dot_dimension_numbers<[1], [0], [0], [1], [0, 0, 1, 1], [], []>} : vector<8x32xf32>, vector<32x32xf32>, vector<8x32xf32> -> vector<8x32xf32>
    %c0_19 = arith.constant 0 : index
    %c0_20 = arith.constant 0 : index
    %35 = vector.load %arg8[%c0_19, %c0_20] : memref<1x32xf32, #tpu.memory_space<vmem>>, vector<1x32xf32>
    %36 = vector.broadcast %35 : vector<1x32xf32> to vector<8x32xf32>
    %37 = arith.addf %34, %36 : vector<8x32xf32>
    %cst_21 = arith.constant 0.353553385 : f32
    %38 = vector.broadcast %cst_21 : f32 to vector<8x32xf32>
    %39 = arith.mulf %37, %38 : vector<8x32xf32>
    %c0_22 = arith.constant 0 : index
    %c0_23 = arith.constant 0 : index
    %40 = vector.load %arg6[%c0_22, %c0_23] : memref<32x32xf32, #tpu.memory_space<vmem>>, vector<32x32xf32>
    %cst_24 = arith.constant dense<0.000000e+00> : vector<8x32xf32>
    %41 = tpu.matmul %32, %40, %cst_24 {dimension_numbers = #tpu.dot_dimension_numbers<[1], [0], [0], [1], [0, 0, 1, 1], [], []>} : vector<8x32xf32>, vector<32x32xf32>, vector<8x32xf32> -> vector<8x32xf32>
    %c0_25 = arith.constant 0 : index
    %c0_26 = arith.constant 0 : index
    %42 = vector.load %arg9[%c0_25, %c0_26] : memref<1x32xf32, #tpu.memory_space<vmem>>, vector<1x32xf32>
    %43 = vector.broadcast %42 : vector<1x32xf32> to vector<8x32xf32>
    %44 = arith.addf %41, %43 : vector<8x32xf32>
    %c0_27 = arith.constant 0 : index
    %c0_28 = arith.constant 0 : index
    %45 = vector.load %arg7[%c0_27, %c0_28] : memref<32x32xf32, #tpu.memory_space<vmem>>, vector<32x32xf32>
    %cst_29 = arith.constant dense<0.000000e+00> : vector<8x32xf32>
    %46 = tpu.matmul %32, %45, %cst_29 {dimension_numbers = #tpu.dot_dimension_numbers<[1], [0], [0], [1], [0, 0, 1, 1], [], []>} : vector<8x32xf32>, vector<32x32xf32>, vector<8x32xf32> -> vector<8x32xf32>
    %c0_30 = arith.constant 0 : index
    %c0_31 = arith.constant 0 : index
    %47 = vector.load %arg10[%c0_30, %c0_31] : memref<1x32xf32, #tpu.memory_space<vmem>>, vector<1x32xf32>
    %48 = vector.broadcast %47 : vector<1x32xf32> to vector<8x32xf32>
    %49 = arith.addf %46, %48 : vector<8x32xf32>
    %c0_32 = arith.constant 0 : index
    %c0_33 = arith.constant 0 : index
    %c0_34 = arith.constant 0 : index
    %50 = vector.load %arg20[%c0_32, %c0_33, %c0_34] : memref<1x8x32xf32, #tpu.memory_space<vmem>>, vector<1x8x32xf32>
    %51 = vector.shape_cast %50 : vector<1x8x32xf32> to vector<8x32xf32>
    %52 = vector.shape_cast %39 : vector<8x32xf32> to vector<1x8x32xf32>
    tpu.vector_store %arg20[%c0_32, %c0_33, %c0_34], %52 {strides = array<i32>} : memref<1x8x32xf32, #tpu.memory_space<vmem>>, vector<1x8x32xf32>,
    %c0_35 = arith.constant 0 : index
    %c0_36 = arith.constant 0 : index
    %c0_37 = arith.constant 0 : index
    %53 = vector.load %arg21[%c0_35, %c0_36, %c0_37] : memref<1x8x32xf32, #tpu.memory_space<vmem>>, vector<1x8x32xf32>
    %54 = vector.shape_cast %53 : vector<1x8x32xf32> to vector<8x32xf32>
    %55 = vector.shape_cast %44 : vector<8x32xf32> to vector<1x8x32xf32>
    tpu.vector_store %arg21[%c0_35, %c0_36, %c0_37], %55 {strides = array<i32>} : memref<1x8x32xf32, #tpu.memory_space<vmem>>, vector<1x8x32xf32>,
    %c0_38 = arith.constant 0 : index
    %c0_39 = arith.constant 0 : index
    %c0_40 = arith.constant 0 : index
    %56 = vector.load %arg22[%c0_38, %c0_39, %c0_40] : memref<1x8x32xf32, #tpu.memory_space<vmem>>, vector<1x8x32xf32>
    %57 = vector.shape_cast %56 : vector<1x8x32xf32> to vector<8x32xf32>
    %58 = vector.shape_cast %49 : vector<8x32xf32> to vector<1x8x32xf32>
    tpu.vector_store %arg22[%c0_38, %c0_39, %c0_40], %58 {strides = array<i32>} : memref<1x8x32xf32, #tpu.memory_space<vmem>>, vector<1x8x32xf32>,
    %cst_41 = arith.constant 0.000000e+00 : f32
    %59 = vector.broadcast %cst_41 : f32 to vector<8x32xf32>
    %c0_42 = arith.constant 0 : index
    %c0_43 = arith.constant 0 : index
    %60 = vector.load %arg23[%c0_42, %c0_43] : memref<8x32xf32, #tpu.memory_space<vmem>>, vector<8x32xf32>
    tpu.vector_store %arg23[%c0_42, %c0_43], %59 {strides = array<i32>} : memref<8x32xf32, #tpu.memory_space<vmem>>, vector<8x32xf32>,
    %c0_i32 = arith.constant 0 : i32
    %61 = arith.index_cast %c0_i32 : i32 to index
    %c0_44 = arith.constant 0 : index
    %c0_45 = arith.constant 0 : index
    %62 = vector.load %arg20[%61, %c0_44, %c0_45] : memref<1x8x32xf32, #tpu.memory_space<vmem>>, vector<1x8x32xf32>
    %63 = vector.shape_cast %62 : vector<1x8x32xf32> to vector<8x32xf32>
    %64 = arith.index_cast %c0_i32 : i32 to index
    %c0_46 = arith.constant 0 : index
    %c0_47 = arith.constant 0 : index
    %65 = vector.load %arg21[%64, %c0_46, %c0_47] : memref<1x8x32xf32, #tpu.memory_space<vmem>>, vector<1x8x32xf32>
    %66 = vector.shape_cast %65 : vector<1x8x32xf32> to vector<8x32xf32>
    %67 = arith.index_cast %c0_i32 : i32 to index
    %c0_48 = arith.constant 0 : index
    %c0_49 = arith.constant 0 : index
    %68 = vector.load %arg22[%67, %c0_48, %c0_49] : memref<1x8x32xf32, #tpu.memory_space<vmem>>, vector<1x8x32xf32>
    %69 = vector.shape_cast %68 : vector<1x8x32xf32> to vector<8x32xf32>
    %70 = vector.extract_strided_slice %63 {offsets = [0, 0], sizes = [8, 8], strides = [1, 1]} : vector<8x32xf32> to vector<8x8xf32>
    %71 = vector.extract_strided_slice %66 {offsets = [0, 0], sizes = [8, 8], strides = [1, 1]} : vector<8x32xf32> to vector<8x8xf32>
    %cst_50 = arith.constant dense<0.000000e+00> : vector<8x8xf32>
    %72 = tpu.matmul %70, %71, %cst_50 {dimension_numbers = #tpu.dot_dimension_numbers<[1], [1], [0], [0], [0, 0, 1, 0], [], []>} : vector<8x8xf32>, vector<8x8xf32>, vector<8x8xf32> -> vector<8x8xf32>
    %73 = vector.broadcast %8 : vector<1x8xf32> to vector<8x8xf32>
    %74 = arith.addf %72, %73 : vector<8x8xf32>
    %cst_51 = arith.constant dense<0xFF800000> : vector<8xf32>
    %75 = vector.multi_reduction <maximumf>, %74, %cst_51 [1] : vector<8x8xf32> to vector<8xf32>
    %76 = vector.shape_cast %75 : vector<8xf32> to vector<8x1xf32>
    %77 = vector.broadcast %76 : vector<8x1xf32> to vector<8x8xf32>
    %78 = arith.subf %74, %77 : vector<8x8xf32>
    %79 = math.exp %78 : vector<8x8xf32>
    %cst_52 = arith.constant dense<0.000000e+00> : vector<8xf32>
    %80 = vector.multi_reduction <add>, %79, %cst_52 [1] : vector<8x8xf32> to vector<8xf32>
    %81 = vector.shape_cast %80 : vector<8xf32> to vector<8x1xf32>
    %82 = tpu.reciprocal %81 {approx = true} : vector<8x1xf32> -> vector<8x1xf32>
    %83 = vector.broadcast %82 : vector<8x1xf32> to vector<8x8xf32>
    %84 = arith.mulf %79, %83 : vector<8x8xf32>
    %85 = vector.extract_strided_slice %69 {offsets = [0, 0], sizes = [8, 8], strides = [1, 1]} : vector<8x32xf32> to vector<8x8xf32>
    %cst_53 = arith.constant dense<0.000000e+00> : vector<8x8xf32>
    %86 = tpu.matmul %84, %85, %cst_53 {dimension_numbers = #tpu.dot_dimension_numbers<[1], [0], [0], [1], [0, 0, 1, 1], [], []>} : vector<8x8xf32>, vector<8x8xf32>, vector<8x8xf32> -> vector<8x8xf32>
    %c0_54 = arith.constant 0 : index
    %c0_55 = arith.constant 0 : index
    %87 = vector.load %arg23[%c0_54, %c0_55] : memref<8x32xf32, #tpu.memory_space<vmem>>, vector<8x32xf32>
    %c4_i32 = arith.constant 4 : i32
    %88 = arith.muli %c0_i32, %c4_i32 : i32
    %c0_i32_56 = arith.constant 0 : i32
    %89 = arith.addi %88, %c0_i32_56 : i32
    %90 = arith.index_cast %89 : i32 to index
    %c0_57 = arith.constant 0 : index
    %c0_58 = arith.constant 0 : index
    %91 = vector.load %arg11[%90, %c0_57, %c0_58] : memref<4x8x32xf32, #tpu.memory_space<vmem>>, vector<1x8x32xf32>
    %92 = vector.shape_cast %91 : vector<1x8x32xf32> to vector<8x32xf32>
    %cst_59 = arith.constant dense<0.000000e+00> : vector<8x32xf32>
    %93 = tpu.matmul %86, %92, %cst_59 {dimension_numbers = #tpu.dot_dimension_numbers<[1], [0], [0], [1], [0, 0, 1, 1], [], []>} : vector<8x8xf32>, vector<8x32xf32>, vector<8x32xf32> -> vector<8x32xf32>
    %94 = arith.addf %87, %93 : vector<8x32xf32>
    %c0_60 = arith.constant 0 : index
    %c0_61 = arith.constant 0 : index
    %95 = vector.load %arg23[%c0_60, %c0_61] : memref<8x32xf32, #tpu.memory_space<vmem>>, vector<8x32xf32>
    tpu.vector_store %arg23[%c0_60, %c0_61], %94 {strides = array<i32>} : memref<8x32xf32, #tpu.memory_space<vmem>>, vector<8x32xf32>,
    %96 = vector.extract_strided_slice %63 {offsets = [0, 8], sizes = [8, 8], strides = [1, 1]} : vector<8x32xf32> to vector<8x8xf32>
    %97 = vector.extract_strided_slice %66 {offsets = [0, 8], sizes = [8, 8], strides = [1, 1]} : vector<8x32xf32> to vector<8x8xf32>
    %cst_62 = arith.constant dense<0.000000e+00> : vector<8x8xf32>
    %98 = tpu.matmul %96, %97, %cst_62 {dimension_numbers = #tpu.dot_dimension_numbers<[1], [1], [0], [0], [0, 0, 1, 0], [], []>} : vector<8x8xf32>, vector<8x8xf32>, vector<8x8xf32> -> vector<8x8xf32>
    %99 = vector.broadcast %8 : vector<1x8xf32> to vector<8x8xf32>
    %100 = arith.addf %98, %99 : vector<8x8xf32>
    %cst_63 = arith.constant dense<0xFF800000> : vector<8xf32>
    %101 = vector.multi_reduction <maximumf>, %100, %cst_63 [1] : vector<8x8xf32> to vector<8xf32>
    %102 = vector.shape_cast %101 : vector<8xf32> to vector<8x1xf32>
    %103 = vector.broadcast %102 : vector<8x1xf32> to vector<8x8xf32>
    %104 = arith.subf %100, %103 : vector<8x8xf32>
    %105 = math.exp %104 : vector<8x8xf32>
    %cst_64 = arith.constant dense<0.000000e+00> : vector<8xf32>
    %106 = vector.multi_reduction <add>, %105, %cst_64 [1] : vector<8x8xf32> to vector<8xf32>
    %107 = vector.shape_cast %106 : vector<8xf32> to vector<8x1xf32>
    %108 = tpu.reciprocal %107 {approx = true} : vector<8x1xf32> -> vector<8x1xf32>
    %109 = vector.broadcast %108 : vector<8x1xf32> to vector<8x8xf32>
    %110 = arith.mulf %105, %109 : vector<8x8xf32>
    %111 = vector.extract_strided_slice %69 {offsets = [0, 8], sizes = [8, 8], strides = [1, 1]} : vector<8x32xf32> to vector<8x8xf32>
    %cst_65 = arith.constant dense<0.000000e+00> : vector<8x8xf32>
    %112 = tpu.matmul %110, %111, %cst_65 {dimension_numbers = #tpu.dot_dimension_numbers<[1], [0], [0], [1], [0, 0, 1, 1], [], []>} : vector<8x8xf32>, vector<8x8xf32>, vector<8x8xf32> -> vector<8x8xf32>
    %c0_66 = arith.constant 0 : index
    %c0_67 = arith.constant 0 : index
    %113 = vector.load %arg23[%c0_66, %c0_67] : memref<8x32xf32, #tpu.memory_space<vmem>>, vector<8x32xf32>
    %c4_i32_68 = arith.constant 4 : i32
    %114 = arith.muli %c0_i32, %c4_i32_68 : i32
    %c1_i32 = arith.constant 1 : i32
    %115 = arith.addi %114, %c1_i32 : i32
    %116 = arith.index_cast %115 : i32 to index
    %c0_69 = arith.constant 0 : index
    %c0_70 = arith.constant 0 : index
    %117 = vector.load %arg11[%116, %c0_69, %c0_70] : memref<4x8x32xf32, #tpu.memory_space<vmem>>, vector<1x8x32xf32>
    %118 = vector.shape_cast %117 : vector<1x8x32xf32> to vector<8x32xf32>
    %cst_71 = arith.constant dense<0.000000e+00> : vector<8x32xf32>
    %119 = tpu.matmul %112, %118, %cst_71 {dimension_numbers = #tpu.dot_dimension_numbers<[1], [0], [0], [1], [0, 0, 1, 1], [], []>} : vector<8x8xf32>, vector<8x32xf32>, vector<8x32xf32> -> vector<8x32xf32>
    %120 = arith.addf %113, %119 : vector<8x32xf32>
    %c0_72 = arith.constant 0 : index
    %c0_73 = arith.constant 0 : index
    %121 = vector.load %arg23[%c0_72, %c0_73] : memref<8x32xf32, #tpu.memory_space<vmem>>, vector<8x32xf32>
    tpu.vector_store %arg23[%c0_72, %c0_73], %120 {strides = array<i32>} : memref<8x32xf32, #tpu.memory_space<vmem>>, vector<8x32xf32>,
    %122 = vector.extract_strided_slice %63 {offsets = [0, 16], sizes = [8, 8], strides = [1, 1]} : vector<8x32xf32> to vector<8x8xf32>
    %123 = vector.extract_strided_slice %66 {offsets = [0, 16], sizes = [8, 8], strides = [1, 1]} : vector<8x32xf32> to vector<8x8xf32>
    %cst_74 = arith.constant dense<0.000000e+00> : vector<8x8xf32>
    %124 = tpu.matmul %122, %123, %cst_74 {dimension_numbers = #tpu.dot_dimension_numbers<[1], [1], [0], [0], [0, 0, 1, 0], [], []>} : vector<8x8xf32>, vector<8x8xf32>, vector<8x8xf32> -> vector<8x8xf32>
    %125 = vector.broadcast %8 : vector<1x8xf32> to vector<8x8xf32>
    %126 = arith.addf %124, %125 : vector<8x8xf32>
    %cst_75 = arith.constant dense<0xFF800000> : vector<8xf32>
    %127 = vector.multi_reduction <maximumf>, %126, %cst_75 [1] : vector<8x8xf32> to vector<8xf32>
    %128 = vector.shape_cast %127 : vector<8xf32> to vector<8x1xf32>
    %129 = vector.broadcast %128 : vector<8x1xf32> to vector<8x8xf32>
    %130 = arith.subf %126, %129 : vector<8x8xf32>
    %131 = math.exp %130 : vector<8x8xf32>
    %cst_76 = arith.constant dense<0.000000e+00> : vector<8xf32>
    %132 = vector.multi_reduction <add>, %131, %cst_76 [1] : vector<8x8xf32> to vector<8xf32>
    %133 = vector.shape_cast %132 : vector<8xf32> to vector<8x1xf32>
    %134 = tpu.reciprocal %133 {approx = true} : vector<8x1xf32> -> vector<8x1xf32>
    %135 = vector.broadcast %134 : vector<8x1xf32> to vector<8x8xf32>
    %136 = arith.mulf %131, %135 : vector<8x8xf32>
    %137 = vector.extract_strided_slice %69 {offsets = [0, 16], sizes = [8, 8], strides = [1, 1]} : vector<8x32xf32> to vector<8x8xf32>
    %cst_77 = arith.constant dense<0.000000e+00> : vector<8x8xf32>
    %138 = tpu.matmul %136, %137, %cst_77 {dimension_numbers = #tpu.dot_dimension_numbers<[1], [0], [0], [1], [0, 0, 1, 1], [], []>} : vector<8x8xf32>, vector<8x8xf32>, vector<8x8xf32> -> vector<8x8xf32>
    %c0_78 = arith.constant 0 : index
    %c0_79 = arith.constant 0 : index
    %139 = vector.load %arg23[%c0_78, %c0_79] : memref<8x32xf32, #tpu.memory_space<vmem>>, vector<8x32xf32>
    %c4_i32_80 = arith.constant 4 : i32
    %140 = arith.muli %c0_i32, %c4_i32_80 : i32
    %c2_i32 = arith.constant 2 : i32
    %141 = arith.addi %140, %c2_i32 : i32
    %142 = arith.index_cast %141 : i32 to index
    %c0_81 = arith.constant 0 : index
    %c0_82 = arith.constant 0 : index
    %143 = vector.load %arg11[%142, %c0_81, %c0_82] : memref<4x8x32xf32, #tpu.memory_space<vmem>>, vector<1x8x32xf32>
    %144 = vector.shape_cast %143 : vector<1x8x32xf32> to vector<8x32xf32>
    %cst_83 = arith.constant dense<0.000000e+00> : vector<8x32xf32>
    %145 = tpu.matmul %138, %144, %cst_83 {dimension_numbers = #tpu.dot_dimension_numbers<[1], [0], [0], [1], [0, 0, 1, 1], [], []>} : vector<8x8xf32>, vector<8x32xf32>, vector<8x32xf32> -> vector<8x32xf32>
    %146 = arith.addf %139, %145 : vector<8x32xf32>
    %c0_84 = arith.constant 0 : index
    %c0_85 = arith.constant 0 : index
    %147 = vector.load %arg23[%c0_84, %c0_85] : memref<8x32xf32, #tpu.memory_space<vmem>>, vector<8x32xf32>
    tpu.vector_store %arg23[%c0_84, %c0_85], %146 {strides = array<i32>} : memref<8x32xf32, #tpu.memory_space<vmem>>, vector<8x32xf32>,
    %148 = vector.extract_strided_slice %63 {offsets = [0, 24], sizes = [8, 8], strides = [1, 1]} : vector<8x32xf32> to vector<8x8xf32>
    %149 = vector.extract_strided_slice %66 {offsets = [0, 24], sizes = [8, 8], strides = [1, 1]} : vector<8x32xf32> to vector<8x8xf32>
    %cst_86 = arith.constant dense<0.000000e+00> : vector<8x8xf32>
    %150 = tpu.matmul %148, %149, %cst_86 {dimension_numbers = #tpu.dot_dimension_numbers<[1], [1], [0], [0], [0, 0, 1, 0], [], []>} : vector<8x8xf32>, vector<8x8xf32>, vector<8x8xf32> -> vector<8x8xf32>
    %151 = vector.broadcast %8 : vector<1x8xf32> to vector<8x8xf32>
    %152 = arith.addf %150, %151 : vector<8x8xf32>
    %cst_87 = arith.constant dense<0xFF800000> : vector<8xf32>
    %153 = vector.multi_reduction <maximumf>, %152, %cst_87 [1] : vector<8x8xf32> to vector<8xf32>
    %154 = vector.shape_cast %153 : vector<8xf32> to vector<8x1xf32>
    %155 = vector.broadcast %154 : vector<8x1xf32> to vector<8x8xf32>
    %156 = arith.subf %152, %155 : vector<8x8xf32>
    %157 = math.exp %156 : vector<8x8xf32>
    %cst_88 = arith.constant dense<0.000000e+00> : vector<8xf32>
    %158 = vector.multi_reduction <add>, %157, %cst_88 [1] : vector<8x8xf32> to vector<8xf32>
    %159 = vector.shape_cast %158 : vector<8xf32> to vector<8x1xf32>
    %160 = tpu.reciprocal %159 {approx = true} : vector<8x1xf32> -> vector<8x1xf32>
    %161 = vector.broadcast %160 : vector<8x1xf32> to vector<8x8xf32>
    %162 = arith.mulf %157, %161 : vector<8x8xf32>
    %163 = vector.extract_strided_slice %69 {offsets = [0, 24], sizes = [8, 8], strides = [1, 1]} : vector<8x32xf32> to vector<8x8xf32>
    %cst_89 = arith.constant dense<0.000000e+00> : vector<8x8xf32>
    %164 = tpu.matmul %162, %163, %cst_89 {dimension_numbers = #tpu.dot_dimension_numbers<[1], [0], [0], [1], [0, 0, 1, 1], [], []>} : vector<8x8xf32>, vector<8x8xf32>, vector<8x8xf32> -> vector<8x8xf32>
    %c0_90 = arith.constant 0 : index
    %c0_91 = arith.constant 0 : index
    %165 = vector.load %arg23[%c0_90, %c0_91] : memref<8x32xf32, #tpu.memory_space<vmem>>, vector<8x32xf32>
    %c4_i32_92 = arith.constant 4 : i32
    %166 = arith.muli %c0_i32, %c4_i32_92 : i32
    %c3_i32 = arith.constant 3 : i32
    %167 = arith.addi %166, %c3_i32 : i32
    %168 = arith.index_cast %167 : i32 to index
    %c0_93 = arith.constant 0 : index
    %c0_94 = arith.constant 0 : index
    %169 = vector.load %arg11[%168, %c0_93, %c0_94] : memref<4x8x32xf32, #tpu.memory_space<vmem>>, vector<1x8x32xf32>
    %170 = vector.shape_cast %169 : vector<1x8x32xf32> to vector<8x32xf32>
    %cst_95 = arith.constant dense<0.000000e+00> : vector<8x32xf32>
    %171 = tpu.matmul %164, %170, %cst_95 {dimension_numbers = #tpu.dot_dimension_numbers<[1], [0], [0], [1], [0, 0, 1, 1], [], []>} : vector<8x8xf32>, vector<8x32xf32>, vector<8x32xf32> -> vector<8x32xf32>
    %172 = arith.addf %165, %171 : vector<8x32xf32>
    %c0_96 = arith.constant 0 : index
    %c0_97 = arith.constant 0 : index
    %173 = vector.load %arg23[%c0_96, %c0_97] : memref<8x32xf32, #tpu.memory_space<vmem>>, vector<8x32xf32>
    tpu.vector_store %arg23[%c0_96, %c0_97], %172 {strides = array<i32>} : memref<8x32xf32, #tpu.memory_space<vmem>>, vector<8x32xf32>,
    %c1_i32_98 = arith.constant 1 : i32
    %c0_99 = arith.constant 0 : index
    %c0_100 = arith.constant 0 : index
    %174 = vector.load %arg23[%c0_99, %c0_100] : memref<8x32xf32, #tpu.memory_space<vmem>>, vector<8x32xf32>
    %175 = arith.addf %1, %174 : vector<8x32xf32>
    %c0_101 = arith.constant 0 : index
    %c0_102 = arith.constant 0 : index
    %176 = vector.load %arg12[%c0_101, %c0_102] : memref<1x32xf32, #tpu.memory_space<vmem>>, vector<1x32xf32>
    %177 = vector.broadcast %176 : vector<1x32xf32> to vector<8x32xf32>
    %178 = arith.addf %175, %177 : vector<8x32xf32>
    %c0_103 = arith.constant 0 : index
    %c0_104 = arith.constant 0 : index
    %179 = vector.load %arg23[%c0_103, %c0_104] : memref<8x32xf32, #tpu.memory_space<vmem>>, vector<8x32xf32>
    tpu.vector_store %arg23[%c0_103, %c0_104], %178 {strides = array<i32>} : memref<8x32xf32, #tpu.memory_space<vmem>>, vector<8x32xf32>,
    %c0_105 = arith.constant 0 : index
    %c0_106 = arith.constant 0 : index
    %180 = vector.load %arg23[%c0_105, %c0_106] : memref<8x32xf32, #tpu.memory_space<vmem>>, vector<8x32xf32>
    %c0_107 = arith.constant 0 : index
    %c0_108 = arith.constant 0 : index
    %181 = vector.load %arg13[%c0_107, %c0_108] : memref<1x32xf32, #tpu.memory_space<vmem>>, vector<1x32xf32>
    %c0_109 = arith.constant 0 : index
    %c0_110 = arith.constant 0 : index
    %182 = vector.load %arg14[%c0_109, %c0_110] : memref<1x32xf32, #tpu.memory_space<vmem>>, vector<1x32xf32>
    %cst_111 = arith.constant dense<0.000000e+00> : vector<8xf32>
    %183 = vector.multi_reduction <add>, %180, %cst_111 [1] : vector<8x32xf32> to vector<8xf32>
    %184 = vector.shape_cast %183 : vector<8xf32> to vector<8x1xf32>
    %cst_112 = arith.constant 3.200000e+01 : f32
    %185 = vector.broadcast %cst_112 : f32 to vector<8x1xf32>
    %186 = arith.divf %184, %185 : vector<8x1xf32>
    %187 = vector.broadcast %186 : vector<8x1xf32> to vector<8x32xf32>
    %188 = arith.subf %180, %187 : vector<8x32xf32>
    %189 = arith.mulf %188, %188 : vector<8x32xf32>
    %cst_113 = arith.constant dense<0.000000e+00> : vector<8xf32>
    %190 = vector.multi_reduction <add>, %189, %cst_113 [1] : vector<8x32xf32> to vector<8xf32>
    %191 = vector.shape_cast %190 : vector<8xf32> to vector<8x1xf32>
    %cst_114 = arith.constant 3.200000e+01 : f32
    %192 = vector.broadcast %cst_114 : f32 to vector<8x1xf32>
    %193 = arith.divf %191, %192 : vector<8x1xf32>
    %194 = vector.broadcast %186 : vector<8x1xf32> to vector<8x32xf32>
    %195 = arith.subf %180, %194 : vector<8x32xf32>
    %cst_115 = arith.constant 9.99999996E-13 : f32
    %196 = vector.broadcast %cst_115 : f32 to vector<8x1xf32>
    %197 = arith.addf %193, %196 : vector<8x1xf32>
    %198 = math.rsqrt %197 : vector<8x1xf32>
    %199 = vector.broadcast %198 : vector<8x1xf32> to vector<8x32xf32>
    %200 = arith.mulf %195, %199 : vector<8x32xf32>
    %201 = vector.broadcast %181 : vector<1x32xf32> to vector<8x32xf32>
    %202 = arith.mulf %200, %201 : vector<8x32xf32>
    %203 = vector.broadcast %182 : vector<1x32xf32> to vector<8x32xf32>
    %204 = arith.addf %202, %203 : vector<8x32xf32>
    %c0_116 = arith.constant 0 : index
    %c0_117 = arith.constant 0 : index
    %205 = vector.load %arg15[%c0_116, %c0_117] : memref<32x64xf32, #tpu.memory_space<vmem>>, vector<32x64xf32>
    %cst_118 = arith.constant dense<0.000000e+00> : vector<8x64xf32>
    %206 = tpu.matmul %204, %205, %cst_118 {dimension_numbers = #tpu.dot_dimension_numbers<[1], [0], [0], [1], [0, 0, 1, 1], [], []>} : vector<8x32xf32>, vector<32x64xf32>, vector<8x64xf32> -> vector<8x64xf32>
    %c0_119 = arith.constant 0 : index
    %c0_120 = arith.constant 0 : index
    %207 = vector.load %arg16[%c0_119, %c0_120] : memref<1x64xf32, #tpu.memory_space<vmem>>, vector<1x64xf32>
    %208 = vector.broadcast %207 : vector<1x64xf32> to vector<8x64xf32>
    %209 = arith.addf %206, %208 : vector<8x64xf32>
    %210 = arith.mulf %209, %209 : vector<8x64xf32>
    %211 = arith.mulf %209, %210 : vector<8x64xf32>
    %cst_121 = arith.constant 4.471500e-02 : f32
    %212 = vector.broadcast %cst_121 : f32 to vector<8x64xf32>
    %213 = arith.mulf %212, %211 : vector<8x64xf32>
    %214 = arith.addf %209, %213 : vector<8x64xf32>
    %cst_122 = arith.constant 0.797884583 : f32
    %215 = vector.broadcast %cst_122 : f32 to vector<8x64xf32>
    %216 = arith.mulf %215, %214 : vector<8x64xf32>
    %217 = math.tanh %216 : vector<8x64xf32>
    %cst_123 = arith.constant 1.000000e+00 : f32
    %218 = vector.broadcast %cst_123 : f32 to vector<8x64xf32>
    %219 = arith.addf %218, %217 : vector<8x64xf32>
    %cst_124 = arith.constant 5.000000e-01 : f32
    %220 = vector.broadcast %cst_124 : f32 to vector<8x64xf32>
    %221 = arith.mulf %220, %219 : vector<8x64xf32>
    %222 = arith.mulf %209, %221 : vector<8x64xf32>
    %c0_125 = arith.constant 0 : index
    %c0_126 = arith.constant 0 : index
    %223 = vector.load %arg17[%c0_125, %c0_126] : memref<64x32xf32, #tpu.memory_space<vmem>>, vector<64x32xf32>
    %cst_127 = arith.constant dense<0.000000e+00> : vector<8x32xf32>
    %224 = tpu.matmul %222, %223, %cst_127 {dimension_numbers = #tpu.dot_dimension_numbers<[1], [0], [0], [1], [0, 0, 1, 1], [], []>} : vector<8x64xf32>, vector<64x32xf32>, vector<8x32xf32> -> vector<8x32xf32>
    %c0_128 = arith.constant 0 : index
    %c0_129 = arith.constant 0 : index
    %225 = vector.load %arg18[%c0_128, %c0_129] : memref<1x32xf32, #tpu.memory_space<vmem>>, vector<1x32xf32>
    %226 = vector.broadcast %225 : vector<1x32xf32> to vector<8x32xf32>
    %227 = arith.addf %224, %226 : vector<8x32xf32>
    %228 = arith.addf %180, %227 : vector<8x32xf32>
    %c0_130 = arith.constant 0 : index
    %c0_131 = arith.constant 0 : index
    %c0_132 = arith.constant 0 : index
    %229 = vector.load %arg19[%c0_130, %c0_131, %c0_132] : memref<1x8x32xf32, #tpu.memory_space<vmem>>, vector<1x8x32xf32>
    %230 = vector.shape_cast %229 : vector<1x8x32xf32> to vector<8x32xf32>
    %231 = vector.shape_cast %228 : vector<8x32xf32> to vector<1x8x32xf32>
    tpu.vector_store %arg19[%c0_130, %c0_131, %c0_132], %231 {strides = array<i32>} : memref<1x8x32xf32, #tpu.memory_space<vmem>>, vector<1x8x32xf32>,
    return
  }
  func.func @transform_0(%arg0: i32) -> (i32, i32, i32) {
    %c0_i32 = arith.constant 0 : i32
    %c0_i32_0 = arith.constant 0 : i32
    %c0_i32_1 = arith.constant 0 : i32
    return %arg0, %c0_i32, %c0_i32_0 : i32, i32, i32
  }
  func.func @transform_1(%arg0: i32) -> (i32, i32, i32) {
    %c0_i32 = arith.constant 0 : i32
    %c0_i32_0 = arith.constant 0 : i32
    %c0_i32_1 = arith.constant 0 : i32
    return %arg0, %c0_i32, %c0_i32_0 : i32, i32, i32
  }
  func.func @transform_2(%arg0: i32) -> (i32, i32) {
    %c0_i32 = arith.constant 0 : i32
    %c0_i32_0 = arith.constant 0 : i32
    %c0_i32_1 = arith.constant 0 : i32
    return %c0_i32, %c0_i32_0 : i32, i32
  }
  func.func @transform_3(%arg0: i32) -> (i32, i32) {
    %c0_i32 = arith.constant 0 : i32
    %c0_i32_0 = arith.constant 0 : i32
    %c0_i32_1 = arith.constant 0 : i32
    return %c0_i32, %c0_i32_0 : i32, i32
  }
  func.func @transform_4(%arg0: i32) -> (i32, i32) {
    %c0_i32 = arith.constant 0 : i32
    %c0_i32_0 = arith.constant 0 : i32
    %c0_i32_1 = arith.constant 0 : i32
    return %c0_i32, %c0_i32_0 : i32, i32
  }
  func.func @transform_5(%arg0: i32) -> (i32, i32) {
    %c0_i32 = arith.constant 0 : i32
    %c0_i32_0 = arith.constant 0 : i32
    %c0_i32_1 = arith.constant 0 : i32
    return %c0_i32, %c0_i32_0 : i32, i32
  }
  func.func @transform_6(%arg0: i32) -> (i32, i32) {
    %c0_i32 = arith.constant 0 : i32
    %c0_i32_0 = arith.constant 0 : i32
    %c0_i32_1 = arith.constant 0 : i32
    return %c0_i32, %c0_i32_0 : i32, i32
  }
  func.func @transform_7(%arg0: i32) -> (i32, i32) {
    %c0_i32 = arith.constant 0 : i32
    %c0_i32_0 = arith.constant 0 : i32
    %c0_i32_1 = arith.constant 0 : i32
    return %c0_i32, %c0_i32_0 : i32, i32
  }
  func.func @transform_8(%arg0: i32) -> (i32, i32) {
    %c0_i32 = arith.constant 0 : i32
    %c0_i32_0 = arith.constant 0 : i32
    %c0_i32_1 = arith.constant 0 : i32
    return %c0_i32, %c0_i32_0 : i32, i32
  }
  func.func @transform_9(%arg0: i32) -> (i32, i32) {
    %c0_i32 = arith.constant 0 : i32
    %c0_i32_0 = arith.constant 0 : i32
    %c0_i32_1 = arith.constant 0 : i32
    return %c0_i32, %c0_i32_0 : i32, i32
  }
  func.func @transform_10(%arg0: i32) -> (i32, i32, i32) {
    %c0_i32 = arith.constant 0 : i32
    %c0_i32_0 = arith.constant 0 : i32
    %c0_i32_1 = arith.constant 0 : i32
    %c0_i32_2 = arith.constant 0 : i32
    return %c0_i32, %c0_i32_0, %c0_i32_1 : i32, i32, i32
  }
  func.func @transform_11(%arg0: i32) -> (i32, i32) {
    %c0_i32 = arith.constant 0 : i32
    %c0_i32_0 = arith.constant 0 : i32
    %c0_i32_1 = arith.constant 0 : i32
    return %c0_i32, %c0_i32_0 : i32, i32
  }
  func.func @transform_12(%arg0: i32) -> (i32, i32) {
    %c0_i32 = arith.constant 0 : i32
    %c0_i32_0 = arith.constant 0 : i32
    %c0_i32_1 = arith.constant 0 : i32
    return %c0_i32, %c0_i32_0 : i32, i32
  }
  func.func @transform_13(%arg0: i32) -> (i32, i32) {
    %c0_i32 = arith.constant 0 : i32
    %c0_i32_0 = arith.constant 0 : i32
    %c0_i32_1 = arith.constant 0 : i32
    return %c0_i32, %c0_i32_0 : i32, i32
  }
  func.func @transform_14(%arg0: i32) -> (i32, i32) {
    %c0_i32 = arith.constant 0 : i32
    %c0_i32_0 = arith.constant 0 : i32
    %c0_i32_1 = arith.constant 0 : i32
    return %c0_i32, %c0_i32_0 : i32, i32
  }
  func.func @transform_15(%arg0: i32) -> (i32, i32) {
    %c0_i32 = arith.constant 0 : i32
    %c0_i32_0 = arith.constant 0 : i32
    %c0_i32_1 = arith.constant 0 : i32
    return %c0_i32, %c0_i32_0 : i32, i32
  }
  func.func @transform_16(%arg0: i32) -> (i32, i32) {
    %c0_i32 = arith.constant 0 : i32
    %c0_i32_0 = arith.constant 0 : i32
    %c0_i32_1 = arith.constant 0 : i32
    return %c0_i32, %c0_i32_0 : i32, i32
  }
  func.func @transform_17(%arg0: i32) -> (i32, i32) {
    %c0_i32 = arith.constant 0 : i32
    %c0_i32_0 = arith.constant 0 : i32
    %c0_i32_1 = arith.constant 0 : i32
    return %c0_i32, %c0_i32_0 : i32, i32
  }
  func.func @transform_18(%arg0: i32) -> (i32, i32, i32) {
    %c0_i32 = arith.constant 0 : i32
    %c0_i32_0 = arith.constant 0 : i32
    %c0_i32_1 = arith.constant 0 : i32
    return %arg0, %c0_i32, %c0_i32_0 : i32, i32, i32
  }
}

</mosaic_0001>

<bundles_post_ra>
// kernel: tpu_custom_call.1
= control target key start
LH: loop header
LB: loop body
LE: loop exit
PB: predicated region body
PF: predicated region fallthrough
CT: control target
= control target key end

     0   :  { %s2298_s0 = inlined_call_operand.hbm [shape: f32[2,8,32], index: 0, kind: input, shape index: {}]   ;;  %s2299_s1 = inlined_call_operand.hbm [shape: f32[2,1,8], index: 1, kind: input, shape index: {}]   ;;  %s2300_s2 = inlined_call_operand.vmem [shape: f32[1,32], index: 2, kind: input, shape index: {}]   ;;  %s2301_s3 = inlined_call_operand.hbm [shape: f32[1,32], index: 3, kind: input, shape index: {}]   ;;  %s2302_s4 = inlined_call_operand.vmem [shape: f32[32,32], index: 4, kind: input, shape index: {}]   ;;  %s2303_s5 = inlined_call_operand.vmem [shape: f32[32,32], index: 5, kind: input, shape index: {}]   ;;  %s2304_s6 = inlined_call_operand.vmem [shape: f32[32,32], index: 6, kind: input, shape index: {}]   ;;  %s2305_s7 = inlined_call_operand.vmem [shape: f32[1,32], index: 7, kind: input, shape index: {}]   ;;  %s2306_s8 = inlined_call_operand.vmem [shape: f32[1,32], index: 8, kind: input, shape index: {}]   ;;  %s2307_s9 = inlined_call_operand.vmem [shape: f32[1,32], index: 9, kind: input, shape index: {}]   ;;  %s2308_s10 = inlined_call_operand.hbm [shape: f32[4,8,32], index: 10, kind: input, shape index: {}]   ;;  %s2309_s11 = inlined_call_operand.vmem [shape: f32[1,32], index: 11, kind: input, shape index: {}]   ;;  %s2310_s12 = inlined_call_operand.vmem [shape: f32[1,32], index: 12, kind: input, shape index: {}]   ;;  %s2311_s13 = inlined_call_operand.vmem [shape: f32[1,32], index: 13, kind: input, shape index: {}]   ;;  %s2312_s14 = inlined_call_operand.hbm [shape: f32[32,64], index: 14, kind: input, shape index: {}]   ;;  %s2313_s15 = inlined_call_operand.vmem [shape: f32[1,64], index: 15, kind: input, shape index: {}]   ;;  %s2314_s16 = inlined_call_operand.vmem [shape: f32[64,32], index: 16, kind: input, shape index: {}]   ;;  %s2315_s17 = inlined_call_operand.vmem [shape: f32[1,32], index: 17, kind: input, shape index: {}]   ;;  %s2316_s18 = inlined_call_operand.hbm [shape: f32[2,8,32], index: 18, kind: output, shape index: {}]  }
   0x1   :  { %2329 = sst [smem:[#allocation28_spill]] %s2298_s0 }
   0x2   :  { %2330 = sst [smem:[#allocation29_spill]] %s2299_s1 }
   0x3   :  { %2331 = sst [smem:[#allocation30_spill]] %s2300_s2 }
   0x4   :  { %2332 = sst [smem:[#allocation31_spill]] %s2301_s3 }
   0x5   :  { %2333 = sst [smem:[#allocation32_spill]] %s2308_s10 }
   0x6   :  { %2334 = sst [smem:[#allocation33_spill]] %s2310_s12 }
   0x7   :  { %2335 = sst [smem:[#allocation34_spill]] %s2311_s13 }
   0x8   :  { %2336 = sst [smem:[#allocation35_spill]] %s2312_s14 }
   0x9   :  { %2337 = sst [smem:[#allocation36_spill]] %s2313_s15 }
   0xa   :  { %2338 = sst [smem:[#allocation37_spill]] %s2314_s16 }
   0xb   :  { %2339 = sst [smem:[#allocation38_spill]] %s2315_s17 }
   0xc   :  { %2340 = sst [smem:[#allocation39_spill]] %s2316_s18 }
   0xd   :  { %23 = vsyncpa [#allocation7], 0 }
   0xe   :  { %25 = vsyncpa [#allocation7 + $0x1], 0 }
   0xf   :  { %26 = vsyncpa [#allocation10], 0 }
  0x10   :  { %28 = vsyncpa [#allocation10 + $0x1], 0 }
  0x11   :  { %29 = vsyncpa [#allocation13], 0 }
  0x12   :  { %30 = vsyncpa [#allocation8], 0 }
  0x13   :  { %32 = vsyncpa [#allocation8 + $0x1], 0  ;;  %s1936_s27 = smov 0   ;;  %s1938_s28 = smov 0  }
  0x14   :  { %s1940_s29 = smov 0   ;;  %s1942_s30 = smov 0  }
  0x15 LB: > { %2341 = sst [smem:[#allocation21_spill]] %s1816_s27  ;;  %s1957_s0 = sadd.s32 4294967295, %s1828_s30   ;;  %s1828_s30 = sphi %s1942_s30, %s2371_s30   ;;  %s1824_s29 = sphi %s1940_s29, %s2373_s29   ;;  %s1820_s28 = sphi %s1938_s28, %s2375_s28   ;;  %s1816_s27 = sphi %s1936_s27, %s2374_s27  }
  0x16   : > { %2342 = sst [smem:[#allocation22_spill]] %s1824_s29  ;;  %s1437_s19 = sadd.s32 4294967294, %s1828_s30  }
  0x17   : > { %2343 = sst [smem:[#allocation23_spill]] %s1828_s30  ;;  %p58_p0 = scmp.ne.s32.totalorder %s1820_s28, %s1816_s27 }
  0x18   : > { %p59_p1 = scmp.eq.s32.totalorder %s1957_s0, 0  ;;  %p444_p2 = scmp.eq.s32.totalorder %s1957_s0, 1 }
  0x19   : > { %p450_p3 = scmp.eq.s32.totalorder %s1437_s19, 1  ;;  %p1438_p5 = scmp.ge.s32.totalorder %s1828_s30, 1 }
  0x1a   : > { %p1966_p4 = por %p59_p1, %p58_p0  ;;  %p457_p7 = scmp.lt.s32.totalorder %s1828_s30, 3 }
  0x1b   : > { %p1971_p6 = por %p450_p3, %p58_p0  ;;  %s2347_s3 = sld [smem:[#allocation31_spill]] }
  0x1c   : > { %p1979_p8 = pnand %p1438_p5, %p457_p7  ;;  %s1830_s24 = smov [#allocation11]  }
  0x1d   : > { %s2345_s20 = scalar_select %p1971_p6, 1, 0 }
  0x1e   : > { %p1494_p10 = pneg %p1979_p8  ;;  %s474_s25 = sshll.u32 %s1830_s24, 4  ;;  %s475_s25 = int_to_ptr.vmem [resolvable:$true] %s474_s25 }
  0x1f   : > { %2346 = sst [smem:[#allocation24_spill]] %s2345_s20  ;;  %s1831_s22 = smov [#allocation12]  }
  0x20   : > { %s2349_s10 = sld [smem:[#allocation32_spill]]  ;;  %p1991_p11 = pnand %p1494_p10, %p59_p1 }
  0x21   : > { %s472_s2 = sshll.u32 %s2347_s3, 4  ;;  %s503_s3 = sshll.u32 %s1831_s22, 4  ;;  %s473_s2 = int_to_ptr.hbm [resolvable:$true] %s472_s2  ;;  %s504_s3 = int_to_ptr.vmem [resolvable:$true] %s503_s3 }
  0x22   : > { %1497 = dma.hbm_to_vmem [thread:$0]  (!%p1991_p11), %s473_s2, 16, %s475_s25, [#allocation10]  }
  0x23   : > { %s1832_s24 = smov 128   ;;  %s1833_s26 = smov 8  }
  0x24   : > { %s2351_s14 = sld [smem:[#allocation35_spill]]  ;;  %s1834_s22 = smov [#allocation14]  }
  0x25   : > { %s526_s18 = sshll.u32 %s1834_s22, 4  ;;  %s2005_s2 = sadd.s32 1, %s1828_s30   ;;  %s527_s18 = int_to_ptr.vmem [resolvable:$true] %s526_s18 }
  0x26   : > { %s501_s20 = sshll.u32 %s2349_s10, 4  ;;  %2352 = sst [smem:[#allocation25_spill]] %s2005_s2  ;;  %s502_s20 = int_to_ptr.hbm [resolvable:$true] %s501_s20 }
  0x27   : > { %1500 = dma.hbm_to_vmem [thread:$0]  (!%p1991_p11), %s502_s20, 512, %s504_s3, [#allocation13], %s1832_s24, %s1832_s24, %s1833_s26  }
  0x28   : > { %s42_s25 = ssub.s32 %s1828_s30, %s2005_s2  ;;  %s45_s17 = sadd.s32 1, %s1824_s29 }
  0x29   : > { %p43_p12 = scmp.eq.s32.totalorder %s42_s25, 0  ;;  %p52_p13 = scmp.ne.s32.totalorder %s1824_s29, %s1820_s28 }
  0x2a   : > { %s524_s27 = sshll.u32 %s2351_s14, 4  ;;  %p53_p0 = scmp.eq.s32.totalorder %s1828_s30, 0  ;;  %s525_s27 = int_to_ptr.hbm [resolvable:$true] %s524_s27 }
  0x2b   : > { %1503 = dma.hbm_to_vmem [thread:$0]  (!%p1991_p11), %s525_s27, 512, %s527_s18, [#allocation13], %s1832_s24, %s1832_s24, %s1833_s26  }
  0x2c   : > { %p1518_p3 = scmp.lt.s32.totalorder %s1828_s30, 2  ;;  %p54_p5 = por %p53_p0, %p52_p13 }
  0x2d   : > { %s2015_s3 = scalar_select %p43_p12, %s1824_s29, %s45_s17  }
  0x2e   : > { %p2019_p7 = por %p444_p2, %p52_p13  ;;  %s2024_s18 = sand.u32 1, %s1824_s29  }
  0x2f   : > { %2353 = sst [smem:[#allocation26_spill]] %s2015_s3  ;;  %s1444_s27 = sshll.u32 %s1828_s30, 3 }
  0x30   : > { %s2354_s10 = scalar_select %p2019_p7, 1, 0 }
  0x31   : > { %s1443_s20 = sshll.u32 %s2024_s18, 3  ;;  %s2356_s26 = sld [smem:[#allocation28_spill]] }
  0x32   : > { %2355 = sst [smem:[#allocation27_spill]] %s2354_s10  ;;  %s553_s25 = scalar_lea.vmem [#allocation6], %s1443_s20 }
  0x33   : > { %s561_s17 = sshll.u32 %s553_s25, 4  ;;  %p2033_p2 = pnand %p1518_p3, %p54_p5  ;;  %s562_s17 = int_to_ptr.vmem [resolvable:$true] %s561_s17 }
  0x34   : > { %s568_s3 = sand.u32 1, %s1828_s30   ;;  %s2358_s10 = sld [smem:[#allocation29_spill]] }
  0x35   : > { %s550_s16 = scalar_lea.sflag [#allocation7], %s2024_s18  ;;  %p1694_p11 = pneg %p2033_p2 }
  0x37   : > { %s557_s19 = scalar_lea.hbm %s2356_s26, %s1444_s27 }
  0x38   : > { %s559_s22 = sshll.u32 %s557_s19, 4  ;;  %s1697_s19 = scalar_lea.hbm %s2356_s26, 16  ;;  %s560_s22 = int_to_ptr.hbm [resolvable:$true] %s559_s22 }
  0x39   : > { %s1690_s21 = sshra.s32 %s560_s22, 4  ;;  %s1691_s21 = int_to_ptr.hbm [resolvable:$true] %s1690_s21 }
  0x3a   : > { %s574_s15 = scalar_lea.hbm %s2358_s10, %s1828_s30  ;;  %s1692_s27 = scalar_lea.hbm %s1691_s21, 8 }
  0x3b   : > { %p1693_p10 = scmp.ne.s32.totalorder %s1691_s21, %s1692_s27  ;;  %p1698_p0 = scmp.lt.s32.totalorder %s1691_s21, %s2356_s26 }
  0x3c   : > { %p1699_p3 = scmp.lt.s32.totalorder %s1697_s19, %s1692_s27 }
  0x3d   : > { %p1695_p12 = pnand %p1694_p11, %p1693_p10 }
  0x3e   : > { %p1700_p5 = por %p1699_p3, %p1698_p0 }
  0x3f   : > { %p1696_p13 = pneg %p1695_p12 }
  0x41   : > { %p1701_p9 = pnand %p1700_p5, %p1696_p13 }
  0x43   : > { %1704 = shalt.err (!%p1701_p9)
}
  0x44   : > { %1507 = dma.hbm_to_vmem [thread:$0]  (!%p2033_p2), %s560_s22, 128, %s562_s17, %s550_s16  }
  0x45   : > { %s576_s29 = sshll.u32 %s574_s15, 4  ;;  %s571_s2 = scalar_lea.vmem [#allocation9], %s2024_s18  ;;  %s577_s29 = int_to_ptr.hbm [resolvable:$true] %s576_s29 }
  0x46   : > { %s578_s30 = sshll.u32 %s571_s2, 4  ;;  %s569_s20 = scalar_lea.sflag [#allocation10], %s568_s3  ;;  %s579_s30 = int_to_ptr.vmem [resolvable:$true] %s578_s30 }
  0x47   : > { %s1720_s24 = sshra.s32 %s577_s29, 4  ;;  %s1727_s27 = scalar_lea.hbm %s2358_s10, 2  ;;  %s1721_s24 = int_to_ptr.hbm [resolvable:$true] %s1720_s24 }
  0x48   : > { %s1722_s12 = scalar_lea.hbm %s1721_s24, 1  ;;  %p1728_p9 = scmp.lt.s32.totalorder %s1721_s24, %s2358_s10 }
  0x49   : > { %p1723_p10 = scmp.ne.s32.totalorder %s1721_s24, %s1722_s12  ;;  %p1729_p0 = scmp.lt.s32.totalorder %s1727_s27, %s1722_s12 }
  0x4b   : > { %p1725_p12 = pnand %p1723_p10, %p1694_p11  ;;  %p1730_p3 = por %p1729_p0, %p1728_p9 }
  0x4d   : > { %p1726_p13 = pneg %p1725_p12 }
  0x4f   : > { %p1731_p5 = pnand %p1730_p3, %p1726_p13 }
  0x51   : > { %1734 = shalt.err (!%p1731_p5)
}
  0x52   : > { %1510 = dma.hbm_to_vmem [thread:$0]  (!%p2033_p2), %s577_s29, 16, %s579_s30, %s569_s20  }
  0x53   : > { %587 = sbr.rel (%p1979_p8) target bundleno = 2372 (0x944), region = 92  ;;  %s2071_s15 = sand.u32 (!%p1979_p8), 1, %s1820_s28  }
  0x54   : > { %s1446_s3 = sshll.u32 (!%p1979_p8), %s2071_s15, 3  ;;  %s590_s18 = scalar_lea.sflag (!%p1979_p8), [#allocation7], %s2071_s15 }
  0x55   : > { %s593_s12 = scalar_lea.vmem (!%p1979_p8), [#allocation6], %s1446_s3 }
  0x58   : > { %1795 = dma.done.wait (%p1966_p4), %s590_s18, 128  }
  0x59   : > { %1797 = vsyncadd (%p1966_p4), %s590_s18, 4294967168  ;;  %s599_s14 = sand.u32 1, %s1957_s0   ;;  %s602_s23 = scalar_lea.vmem [#allocation9], %s2071_s15 }
  0x5a   : > { %s600_s30 = scalar_lea.sflag [#allocation10], %s599_s14 }
  0x5b   : > { %1799 = dma.done.wait (%p1966_p4), %s600_s30, 16  }
  0x5c   : > { %1801 = vsyncadd (%p1966_p4), %s600_s30, 4294967280 }
  0x5d   : > { %1803 = dma.done.wait (%p59_p1), [#allocation10], 16  }
  0x5e   : > { %1805 = vsyncadd (%p59_p1), [#allocation10], 4294967280 }
  0x5f   : > { %1807 = dma.done.wait (%p59_p1), [#allocation13], 1024  }
  0x60   : > { %1809 = vsyncadd (%p59_p1), [#allocation13], 4294966272  ;;  %vm681_vm0 = vcmask 261120   ;;  %v2095_v0 = vld [vmem:[%s593_s12] sm:$0xff]  ;;  %v1835_v2 = vmov 32.0   ;;  %v722_v14 = vld [vmem:[%s2302_s4 + $0x18] sm:$0xff] }
  0x61   : > { %v682_v1 = vsel %vm681_vm0, %v2095_v0, 0.0  ;;  %1576 = vrcp.f32 %v1835_v2  ;;  %v754_v15 = vld [vmem:[%s2303_s5 + $0x18] sm:$0xff]  ;;  %742 = vmatpush.msra.mxu0 %v722_v14  ;;  %v721_v17 = vld [vmem:[%s2302_s4 + $0x10] sm:$0xff]  ;;  %v720_v20 = vld [vmem:[%s2302_s4 + $0x8] sm:$0xff]  ;;  %s2359_s21 = sld [smem:[#allocation30_spill]]  ;;  %vm817_vm5 = vcmask 64512  }
  0x62   : > { %683 = vadd.xlane.f32.xlu0 %v682_v1  ;;  %v782_v16 = vld [vmem:[%s2304_s6 + $0x18] sm:$0xff]  ;;  %771 = vmatpush.msra.mxu1 %v754_v15  ;;  %v753_v18 = vld [vmem:[%s2303_s5 + $0x10] sm:$0xff]  ;;  %v752_v21 = vld [vmem:[%s2303_s5 + $0x8] sm:$0xff]  ;;  %s1836_s30 = smov 120   ;;  %v1837_v57 = vmov -1e+09  }
  0x63   : > { %v781_v19 = vld [vmem:[%s2304_s6 + $0x10] sm:$0xff]  ;;  %799 = vmatpush.msra.mxu2 %v782_v16  ;;  %743 = vmatpush.msra.mxu0 %v721_v17  ;;  %v780_v22 = vld [vmem:[%s2304_s6 + $0x8] sm:$0xff]  ;;  %v719_v23 = vld [vmem:[%s2302_s4] sm:$0xff]  ;;  %s1839_s1 = smov 104   ;;  %s2360_s2 = sld [smem:[#allocation33_spill]]  ;;  %vm1278_vm10 = vcmask 523264  }
  0x64   : > { %772 = vmatpush.msra.mxu1 %v753_v18  ;;  %v751_v24 = vld [vmem:[%s2303_s5] sm:$0xff]  ;;  %v1567_v38 = vld [vmem:[#allocation11] ss:$0 sm:$0xff]  ;;  %s2361_s13 = sld [smem:[#allocation34_spill]]  ;;  %s1473_s16 = sshll.u32 %s1957_s0, 3 }
  0x65   : > { %800 = vmatpush.msra.mxu2 %v781_v19  ;;  %744 = vmatpush.msra.mxu0 %v720_v20  ;;  %v779_v25 = vld [vmem:[%s2304_s6] sm:$0xff]  ;;  %s2362_s19 = sld [smem:[#allocation37_spill]]  ;;  %s674_s25 = scalar_lea.vmem [#allocation15], %s1446_s3 }
  0x66   : > { %773 = vmatpush.msra.mxu1 %v752_v21  ;;  %v1568_v41 = vld [vmem:[%s2305_s7] ss:$0 sm:$0xff]  ;;  %s2363_s27 = sld [smem:[#allocation36_spill]]  ;;  %s1317_s29 = sshll.u32 %s674_s25, 4  ;;  %s1318_s29 = int_to_ptr.vmem [resolvable:$true] %s1317_s29 }
  0x67   : > { %v1577_v3 = vpop.eup %1576  ;;  %801 = vmatpush.msra.mxu2 %v780_v22  ;;  %745 = vmatpush.msra.mxu0 %v719_v23  ;;  %v1566_v35 = vld [vmem:[%s2359_s21] ss:$0 sm:$0xff]  ;;  %s2364_s14 = sld [smem:[#allocation38_spill]]  ;;  %s1305_s0 = scalar_lea.sflag [#allocation8], %s2071_s15 }
  0x68   : > { %v686_v4 = vmul.f32 32.0, %v1577_v3  ;;  %vm690_vm1 = vweird.f32 %v1577_v3  ;;  %774 = vmatpush.msra.mxu1 %v751_v24  ;;  %v1569_v42 = vld [vmem:[%s2306_s8] ss:$0 sm:$0xff] }
  0x69   : > { %802 = vmatpush.msra.mxu2 %v779_v25  ;;  %v1570_v48 = vld [vmem:[%s2307_s9] ss:$0 sm:$0xff] }
  0x6a   : > { %v687_v5 = vsub.f32 1.0, %v686_v4  ;;  %v676_v55 = vld [vmem:[%s602_s23] sm:$0x1]  ;;  %s1838_s23 = smov 112  }
  0x6b   : > { %vm677_vm6 = vcmp.gt.f32.partialorder %v676_v55, 0.0 }
  0x6c   : > { %v688_v6 = vmul.f32 %v1577_v3, %v687_v5  ;;  %v678_v58 = vsel %vm677_vm6, 0.0, %v1837_v57 }
  0x6d   : > { %v2170_v59 = vperm.slane %v678_v58, 0  ;;  %v1066_v58 = vld [vmem:[#allocation12 + $0x10] sm:$0xff] }
  0x6e   : > { %v689_v7 = vadd.f32 %v1577_v3, %v688_v6 }
  0x70   : > { %v2099_v8 = vsel %vm690_vm1, %v1577_v3, %v689_v7 }
  0xd5   : > { %v684_v9 = vpop.xlane.xlu0 %683 }
  0xd6   : > { %v692_v10 = vmul.f32 %v2099_v8, %v684_v9  ;;  %v879_v9 = vld [vmem:[#allocation12] sm:$0xff] }
  0xd8   : > { %v693_v11 = vsub.f32 %v2095_v0, %v692_v10  ;;  %v973_v10 = vld [vmem:[#allocation12 + $0x8] sm:$0xff] }
  0xda   : > { %v694_v12 = vmul.f32 %v693_v11, %v693_v11 }
  0xdc   : > { %v695_v13 = vsel %vm681_vm0, %v694_v12, 0.0 }
  0xdd   : > { %696 = vadd.xlane.f32.xlu0 %v695_v13 }
 0x150   : > { %v697_v26 = vpop.xlane.xlu0 %696 }
 0x151   : > { %v698_v27 = vmul.f32 %v697_v26, %v2099_v8 }
 0x153   : > { %v699_v28 = vadd.f32 1e-12, %v698_v27  ;;  %v1840_v27 = vmov 0.0  }
 0x154   : > { %810 = vst.msk [vmem:[#allocation5] sm:$0xff] %vm681_vm0, %v1840_v27 }
 0x155   : > { %1578 = vrsqrt.f32 %v699_v28  ;;  %vm706_vm3 = vweird.f32 %v699_v28 }
 0x15b   : > { %v1579_v29 = vpop.eup %1578 }
 0x15c   : > { %v701_v30 = vmul.f32 %v1579_v29, %v699_v28  ;;  %vm707_vm2 = vweird.f32 %v1579_v29 }
 0x15d   : > { %vm708_vm4 = vmor %vm706_vm3, %vm707_vm2 }
 0x15e   : > { %v702_v31 = vmul.f32 %v1579_v29, %v701_v30 }
 0x160   : > { %v703_v32 = vmul.f32 0.5, %v702_v31 }
 0x162   : > { %v704_v33 = vsub.f32 1.5, %v703_v32 }
 0x164   : > { %v705_v34 = vmul.f32 %v1579_v29, %v704_v33 }
 0x166   : > { %v709_v36 = vsel %vm708_vm4, %v1579_v29, %v705_v34  ;;  %v878_v29 = vld [vmem:[#allocation5] sm:$0xff] }
 0x167   : > { %v710_v37 = vmul.f32 %v709_v36, %v693_v11 }
 0x169   : > { %v714_v39 = vmul.f32 %v1566_v35, %v710_v37 }
 0x16b   : > { %v718_v40 = vadd.f32 %v1567_v38, %v714_v39 }
 0x16d   : > { %1451 = vmatmul.msk.f32.vlgmr.msra.gmra.mxu0 %vm681_vm0, %v718_v40  ;;  %1452 = vmatmul.msk.f32.vlgmr.msra.gmra.mxu1 %vm681_vm0, %v718_v40 }
 0x16e   : > { %1453 = vmatmul.msk.f32.vlgmr.msra.gmra.mxu2 %vm681_vm0, %v718_v40 }
 0x1ea   : > { %v747_v43 = vpop.f32.mrf.mxu0  ;;  %v776_v44 = vpop.f32.mrf.mxu1 }
 0x1eb   : > { %v748_v45 = vadd.f32 %v1568_v41, %v747_v43  ;;  %v777_v46 = vadd.f32 %v1569_v42, %v776_v44 }
 0x1ed   : > { %v750_v47 = vmul.f32 0.35355338, %v748_v45  ;;  %808 = vst.msk [vmem:[#allocation3] sm:$0xff] %vm681_vm0, %v777_v46 }
 0x1ef   : > { %807 = vst.msk [vmem:[#allocation2] sm:$0xff] %vm681_vm0, %v750_v47 }
 0x1f1   : > { %v804_v49 = vpop.f32.mrf.mxu2 }
 0x1f2   : > { %v805_v50 = vadd.f32 %v1570_v48, %v804_v49 }
 0x1f4   : > { %809 = vst.msk [vmem:[#allocation4] sm:$0xff] %vm681_vm0, %v805_v50  ;;  %v812_v51 = vld [vmem:[#allocation3] sm:$0xff] }
 0x1f5   : > { %907 = vrot.lane.b32.xlu1 %v812_v51, %s1836_s30  ;;  %1454 = vmatpush.xpose.msk.msrb.mxu0 %vm817_vm5, %v812_v51 }
 0x1f6   : > { %v811_v52 = vld [vmem:[#allocation2] sm:$0xff] }
 0x1f8   : > { %1455 = vmatmul.msk.f32.vlgmr.msrb.gmra.mxu0 %vm817_vm5, %v811_v52 }
 0x1f9   : > { %898 = vmatpush.msra.mxu0 %v879_v9 }
 0x1fb   : > { %v2162_v53 = vld [vmem:[#allocation4] sm:$0xff] }
 0x1fc   : > { %873 = vmatpush.msra.mxu3 %v2162_v53 }
 0x1fd   : > { %905 = vrot.lane.b32.xlu1 %v811_v52, %s1836_s30 }
 0x1fe   : > { %992 = vmatpush.msrb.mxu3 %v973_v10 }
 0x267   : > { %v908_v54 = vpop.permute.xlu1 %907 }
 0x268   : > { %1458 = vmatpush.xpose.msk.msrb.mxu1 %vm817_vm5, %v908_v54 }
 0x26f   : > { %v906_v56 = vpop.permute.xlu1 %905 }
 0x270   : > { %1459 = vmatmul.msk.f32.vlgmr.msrb.gmra.mxu1 %vm817_vm5, %v906_v56 }
 0x275   : > { %v841_v60 = vpop.f32.mrf.mxu0 }
 0x276   : > { %v842_v61 = vadd.f32 %v841_v60, %v2170_v59 }
 0x278   : > { %v844_v62 = vsel %vm817_vm5, %v842_v61, -inf }
 0x279   : > { %845 = vmax.xlane.f32.xlu2 %v844_v62 }
 0x2ec   : > { %v846_v63 = vpop.xlane.xlu2 %845 }
 0x2ed   : > { %v847_v1 = vsub.f32 %v842_v61, %v846_v63  ;;  %v930_v2 = vpop.f32.mrf.mxu1 }
 0x2ee   : > { %v931_v3 = vadd.f32 %v930_v2, %v2170_v59 }
 0x2ef   : > { %v848_v4 = vmul.f32 1.442695, %v847_v1 }
 0x2f0   : > { %v933_v5 = vsel %vm817_vm5, %v931_v3, -inf }
 0x2f1   : > { %1580 = vpow2.f32 %v848_v4  ;;  %934 = vmax.xlane.f32.xlu2 %v933_v5 }
 0x2f7   : > { %v1581_v6 = vpop.eup %1580 }
 0x2f8   : > { %v850_v7 = vsel %vm817_vm5, %v1581_v6, 0.0 }
 0x2f9   : > { %851 = vadd.xlane.f32.xlu0 %v850_v7  ;;  %v1571_v7 = vld [vmem:[%s2309_s11] ss:$0 sm:$0xff] }
 0x309   : > { %945 = vrot.lane.b32.xlu2 %v2162_v53, %s1836_s30 }
 0x30d   : > { %1001 = vrot.lane.b32.xlu0 %v812_v51, %s1838_s23 }
 0x311   : > { %999 = vrot.lane.b32.xlu2 %v811_v52, %s1838_s23 }
 0x315   : > { %1094 = vrot.lane.b32.xlu0 %v812_v51, %s1839_s1 }
 0x319   : > { %1092 = vrot.lane.b32.xlu2 %v811_v52, %s1839_s1 }
 0x364   : > { %v935_v11 = vpop.xlane.xlu2 %934 }
 0x365   : > { %v936_v12 = vsub.f32 %v931_v3, %v935_v11 }
 0x367   : > { %v937_v13 = vmul.f32 1.442695, %v936_v12 }
 0x369   : > { %1582 = vpow2.f32 %v937_v13 }
 0x36c   : > { %v852_v14 = vpop.xlane.xlu0 %851  ;;  %v946_v15 = vpop.permute.xlu2 %945 }
 0x36d   : > { %1584 = vrcp.f32 %v852_v14  ;;  %966 = vmatpush.msrb.mxu2 %v946_v15 }
 0x36f   : > { %v1583_v16 = vpop.eup %1582  ;;  %1085 = vmatpush.msra.mxu2 %v1066_v58 }
 0x370   : > { %v939_v17 = vsel %vm817_vm5, %v1583_v16, 0.0 }
 0x371   : > { %940 = vadd.xlane.f32.xlu1 %v939_v17 }
 0x373   : > { %v1585_v18 = vpop.eup %1584 }
 0x374   : > { %v854_v19 = vmul.f32 %v1585_v18, %v1581_v6  ;;  %v1000_v26 = vpop.permute.xlu2 %999 }
 0x376   : > { %1456 = vmatmul.msk.f32.vlgmr.msra.gmra.mxu3 %vm817_vm5, %v854_v19  ;;  %v1229_v19 = vld [vmem:[#allocation14 + $0x18] sm:$0xff] }
 0x37c   : > { %v1093_v32 = vpop.permute.xlu2 %1092 }
 0x37f   : > { %v1002_v20 = vpop.permute.xlu0 %1001 }
 0x380   : > { %1462 = vmatpush.xpose.msk.msrb.mxu0 %vm817_vm5, %v1002_v20  ;;  %v1227_v20 = vld [vmem:[#allocation14 + $0x8] sm:$0xff] }
 0x387   : > { %v1095_v21 = vpop.permute.xlu0 %1094 }
 0x388   : > { %1466 = vmatpush.xpose.msk.msra.mxu3 %vm817_vm5, %v1095_v21  ;;  %v1226_v21 = vld [vmem:[#allocation14] sm:$0xff] }
 0x3e4   : > { %v941_v22 = vpop.xlane.xlu1 %940 }
 0x3e5   : > { %1586 = vrcp.f32 %v941_v22 }
 0x3eb   : > { %v1587_v23 = vpop.eup %1586 }
 0x3ec   : > { %v943_v24 = vmul.f32 %v1587_v23, %v1583_v16 }
 0x3ee   : > { %1460 = vmatmul.msk.f32.vlgmr.msrb.gmra.mxu2 %vm817_vm5, %v943_v24 }
 0x3ef   : > { %1249 = vmatpush.msrb.mxu2 %v1229_v19 }
 0x3f9   : > { %v875_v25 = vpop.f32.mrf.mxu3 }
 0x3fa   : > { %1457 = vmatmul.msk.f32.vlgmr.msra.gmra.mxu0 %vm817_vm5, %v875_v25 }
 0x402   : > { %1463 = vmatmul.msk.f32.vlgmr.msrb.gmra.mxu0 %vm817_vm5, %v1000_v26 }
 0x471   : > { %v968_v28 = vpop.f32.mrf.mxu2 }
 0x472   : > { %1461 = vmatmul.msk.f32.vlgmr.msrb.gmra.mxu3 %vm817_vm5, %v968_v28 }
 0x477   : > { %v900_v30 = vpop.f32.mrf.mxu0 }
 0x478   : > { %v903_v31 = vadd.f32 %v900_v30, %v878_v29 }
 0x47a   : > { %904 = vst.msk [vmem:[#allocation5] sm:$0xff] %vm681_vm0, %v903_v31  ;;  %1467 = vmatmul.msk.f32.vlgmr.msra.gmra.mxu3 %vm817_vm5, %v1093_v32  ;;  %v1572_v31 = vld [vmem:[%s2360_s2] ss:$0 sm:$0xff] }
 0x47f   : > { %v1024_v33 = vpop.f32.mrf.mxu0 }
 0x480   : > { %v1025_v34 = vadd.f32 %v1024_v33, %v2170_v59 }
 0x481   : > { %v971_v36 = vld [vmem:[#allocation5] sm:$0xff] }
 0x482   : > { %v1027_v35 = vsel %vm817_vm5, %v1025_v34, -inf }
 0x483   : > { %1028 = vmax.xlane.f32.xlu0 %v1027_v35 }
 0x497   : > { %1131 = vrot.lane.b32.xlu0 %v2162_v53, %s1839_s1  ;;  %s2365_s1 = sld [smem:[#allocation39_spill]] }
 0x49d   : > { %s1315_s17 = scalar_lea.hbm %s2365_s1, %s1473_s16  ;;  %s1770_s3 = scalar_lea.hbm %s2365_s1, 16 }
 0x49e   : > { %s1319_s2 = sshll.u32 %s1315_s17, 4  ;;  %s1320_s2 = int_to_ptr.hbm [resolvable:$true] %s1319_s2 }
 0x49f   : > { %s1764_s20 = sshra.s32 %s1320_s2, 4  ;;  %s1765_s20 = int_to_ptr.hbm [resolvable:$true] %s1764_s20 }
 0x4a0   : > { %s1766_s24 = scalar_lea.hbm %s1765_s20, 8  ;;  %p1771_p2 = scmp.lt.s32.totalorder %s1765_s20, %s2365_s1 }
 0x4a1   : > { %p1767_p1 = scmp.ne.s32.totalorder %s1765_s20, %s1766_s24  ;;  %p1772_p11 = scmp.lt.s32.totalorder %s1770_s3, %s1766_s24 }
 0x4a3   : > { %p1768_p4 = pnand %p1767_p1, %p2019_p7  ;;  %p1773_p10 = por %p1772_p11, %p1771_p2 }
 0x4a5   : > { %p1769_p8 = pneg %p1768_p4 }
 0x4a7   : > { %p1774_p12 = pnand %p1773_p10, %p1769_p8 }
 0x4f5   : > { %v994_v37 = vpop.f32.mrf.mxu3 }
 0x4f6   : > { %v997_v38 = vadd.f32 %v994_v37, %v971_v36  ;;  %v1029_v39 = vpop.xlane.xlu0 %1028  ;;  %v1273_v36 = vld [vmem:[%s2362_s19 + $0x38] sm:$0xff]  ;;  %v1272_v37 = vld [vmem:[%s2362_s19 + $0x30] sm:$0xff] }
 0x4f7   : > { %v1030_v40 = vsub.f32 %v1025_v34, %v1029_v39  ;;  %1290 = vmatpush.msrb.mxu3 %v1273_v36  ;;  %v1270_v39 = vld [vmem:[%s2362_s19 + $0x20] sm:$0xff] }
 0x4f8   : > { %998 = vst.msk [vmem:[#allocation5] sm:$0xff] %vm681_vm0, %v997_v38  ;;  %v1271_v38 = vld [vmem:[%s2362_s19 + $0x28] sm:$0xff] }
 0x4f9   : > { %v1031_v41 = vmul.f32 1.442695, %v1030_v40  ;;  %1291 = vmatpush.msrb.mxu3 %v1272_v37  ;;  %v1269_v40 = vld [vmem:[%s2362_s19 + $0x18] sm:$0xff] }
 0x4fb   : > { %1588 = vpow2.f32 %v1031_v41  ;;  %1292 = vmatpush.msrb.mxu3 %v1271_v38  ;;  %v1268_v41 = vld [vmem:[%s2362_s19 + $0x10] sm:$0xff] }
 0x4fd   : > { %v1117_v42 = vpop.f32.mrf.mxu3  ;;  %1293 = vmatpush.msrb.mxu3 %v1270_v39 }
 0x4fe   : > { %v1118_v43 = vadd.f32 %v1117_v42, %v2170_v59  ;;  %v1159_v59 = vld [vmem:[#allocation12 + $0x18] sm:$0xff] }
 0x4ff   : > { %v1064_v1 = vld [vmem:[#allocation5] sm:$0xff]  ;;  %1294 = vmatpush.msrb.mxu3 %v1269_v40  ;;  %v1267_v42 = vld [vmem:[%s2362_s19 + $0x8] sm:$0xff] }
 0x500   : > { %v1120_v44 = vsel %vm817_vm5, %v1118_v43, -inf }
 0x501   : > { %v1589_v45 = vpop.eup %1588  ;;  %1121 = vmax.xlane.f32.xlu2 %v1120_v44  ;;  %1295 = vmatpush.msrb.mxu3 %v1268_v41  ;;  %v1574_v44 = vld [vmem:[%s2363_s27] ss:$0 sm:$0xff] }
 0x502   : > { %v1033_v46 = vsel %vm817_vm5, %v1589_v45, 0.0 }
 0x503   : > { %1034 = vadd.xlane.f32.xlu1 %v1033_v46  ;;  %1296 = vmatpush.msrb.mxu3 %v1267_v42 }
 0x509   : > { %v1132_v47 = vpop.permute.xlu0 %1131 }
 0x50a   : > { %1152 = vmatpush.msra.mxu0 %v1132_v47 }
 0x51c   : > { %1038 = vrot.lane.b32.xlu1 %v2162_v53, %s1838_s23 }
 0x574   : > { %v1122_v48 = vpop.xlane.xlu2 %1121 }
 0x575   : > { %v1123_v49 = vsub.f32 %v1118_v43, %v1122_v48  ;;  %v1266_v43 = vld [vmem:[%s2362_s19] sm:$0xff] }
 0x576   : > { %v1035_v54 = vpop.xlane.xlu1 %1034  ;;  %1297 = vmatpush.msrb.mxu3 %v1266_v43 }
 0x577   : > { %v1124_v50 = vmul.f32 1.442695, %v1123_v49 }
 0x579   : > { %1590 = vpow2.f32 %v1124_v50 }
 0x57a   : > { %1592 = vrcp.f32 %v1035_v54 }
 0x57f   : > { %v1591_v51 = vpop.eup %1590 }
 0x580   : > { %v1126_v52 = vsel %vm817_vm5, %v1591_v51, 0.0  ;;  %v1593_v55 = vpop.eup %1592 }
 0x581   : > { %1127 = vadd.xlane.f32.xlu1 %v1126_v52  ;;  %v1037_v56 = vmul.f32 %v1593_v55, %v1589_v45 }
 0x58e   : > { %v1039_v57 = vpop.permute.xlu1 %1038 }
 0x58f   : > { %1059 = vmatpush.msra.mxu1 %v1039_v57  ;;  %v1575_v57 = vld [vmem:[%s2364_s14] ss:$0 sm:$0xff] }
 0x590   : > { %1464 = vmatmul.msk.f32.vlgmr.msra.gmra.mxu1 %vm817_vm5, %v1037_v56 }
 0x591   : > { %1178 = vmatpush.msrb.mxu1 %v1159_v59 }
 0x5f4   : > { %v1128_v53 = vpop.xlane.xlu1 %1127 }
 0x5f5   : > { %1594 = vrcp.f32 %v1128_v53 }
 0x5fb   : > { %v1595_v60 = vpop.eup %1594 }
 0x5fc   : > { %v1130_v61 = vmul.f32 %v1595_v60, %v1591_v51 }
 0x5fe   : > { %1468 = vmatmul.msk.f32.vlgmr.msra.gmra.mxu0 %vm817_vm5, %v1130_v61 }
 0x60d   : > { %v1061_v62 = vpop.f32.mrf.mxu1 }
 0x60e   : > { %1465 = vmatmul.msk.f32.vlgmr.msra.gmra.mxu2 %vm817_vm5, %v1061_v62 }
 0x67b   : > { %v1154_v63 = vpop.f32.mrf.mxu0 }
 0x67c   : > { %1469 = vmatmul.msk.f32.vlgmr.msrb.gmra.mxu1 %vm817_vm5, %v1154_v63 }
 0x691   : > { %v1087_v2 = vpop.f32.mrf.mxu2 }
 0x692   : > { %v1090_v3 = vadd.f32 %v1087_v2, %v1064_v1 }
 0x694   : > { %1091 = vst.msk [vmem:[#allocation5] sm:$0xff] %vm681_vm0, %v1090_v3 }
 0x69b   : > { %v1157_v4 = vld [vmem:[#allocation5] sm:$0xff] }
 0x6f9   : > { %v1180_v5 = vpop.f32.mrf.mxu1 }
 0x6fa   : > { %v1183_v6 = vadd.f32 %v1180_v5, %v1157_v4 }
 0x6fc   : > { %1184 = vst.msk [vmem:[#allocation5] sm:$0xff] %vm681_vm0, %v1183_v6 }
 0x703   : > { %v1185_v9 = vld [vmem:[#allocation5] sm:$0xff] }
 0x704   : > { %v1186_v10 = vadd.f32 %v1185_v9, %v2095_v0  ;;  %v1228_v0 = vld [vmem:[#allocation14 + $0x10] sm:$0xff] }
 0x705   : > { %1250 = vmatpush.msrb.mxu2 %v1228_v0 }
 0x706   : > { %v1191_v11 = vadd.f32 %v1571_v7, %v1186_v10 }
 0x707   : > { %1251 = vmatpush.msrb.mxu2 %v1227_v20 }
 0x708   : > { %1192 = vst.msk [vmem:[#allocation5] sm:$0xff] %vm681_vm0, %v1191_v11 }
 0x709   : > { %1252 = vmatpush.msrb.mxu2 %v1226_v21 }
 0x70f   : > { %v2216_v12 = vld [vmem:[#allocation5] sm:$0xff] }
 0x710   : > { %v1196_v13 = vsel %vm681_vm0, %v2216_v12, 0.0 }
 0x711   : > { %1197 = vadd.xlane.f32.xlu2 %v1196_v13 }
 0x784   : > { %v1198_v14 = vpop.xlane.xlu2 %1197 }
 0x785   : > { %v1199_v15 = vmul.f32 %v1198_v14, %v2099_v8 }
 0x787   : > { %v1200_v16 = vsub.f32 %v2216_v12, %v1199_v15 }
 0x789   : > { %v1201_v17 = vmul.f32 %v1200_v16, %v1200_v16 }
 0x78b   : > { %v1202_v18 = vsel %vm681_vm0, %v1201_v17, 0.0 }
 0x78c   : > { %1203 = vadd.xlane.f32.xlu2 %v1202_v18 }
 0x7ff   : > { %v1204_v22 = vpop.xlane.xlu2 %1203 }
 0x800   : > { %v1205_v23 = vmul.f32 %v1204_v22, %v2099_v8  ;;  %v1573_v8 = vld [vmem:[%s2361_s13] ss:$0 sm:$0xff] }
 0x802   : > { %v1206_v24 = vadd.f32 1e-12, %v1205_v23 }
 0x804   : > { %1596 = vrsqrt.f32 %v1206_v24  ;;  %vm1213_vm8 = vweird.f32 %v1206_v24 }
 0x80a   : > { %v1597_v25 = vpop.eup %1596 }
 0x80b   : > { %v1208_v26 = vmul.f32 %v1597_v25, %v1206_v24  ;;  %vm1214_vm7 = vweird.f32 %v1597_v25 }
 0x80c   : > { %vm1215_vm9 = vmor %vm1213_vm8, %vm1214_vm7 }
 0x80d   : > { %v1209_v27 = vmul.f32 %v1597_v25, %v1208_v26 }
 0x80f   : > { %v1210_v28 = vmul.f32 0.5, %v1209_v27 }
 0x811   : > { %v1211_v29 = vsub.f32 1.5, %v1210_v28 }
 0x813   : > { %v1212_v30 = vmul.f32 %v1597_v25, %v1211_v29 }
 0x815   : > { %v1216_v32 = vsel %vm1215_vm9, %v1597_v25, %v1212_v30 }
 0x816   : > { %v1217_v33 = vmul.f32 %v1216_v32, %v1200_v16 }
 0x818   : > { %v1221_v34 = vmul.f32 %v1572_v31, %v1217_v33 }
 0x81a   : > { %v1225_v35 = vadd.f32 %v1573_v8, %v1221_v34 }
 0x81c   : > { %1470 = vmatmul.msk.f32.vlgmr.msrb.gmra.mxu2 %vm681_vm0, %v1225_v35 }
 0x89f   : > { %v1254_v45 = vpop.f32.mrf.mxu2 }
 0x8a0   : > { %v1255_v46 = vadd.f32 %v1574_v44, %v1254_v45 }
 0x8a2   : > { %v1257_v47 = vmul.f32 %v1255_v46, %v1255_v46 }
 0x8a4   : > { %v1258_v48 = vmul.f32 %v1257_v47, %v1255_v46 }
 0x8a6   : > { %v1259_v49 = vmul.f32 0.044715, %v1258_v48 }
 0x8a8   : > { %v1260_v50 = vadd.f32 %v1259_v49, %v1255_v46 }
 0x8aa   : > { %v1261_v51 = vmul.f32 0.7978846, %v1260_v50 }
 0x8ac   : > { %1598 = vtanh.f32 %v1261_v51 }
 0x8b2   : > { %v1599_v52 = vpop.eup %1598 }
 0x8b3   : > { %v1263_v54 = vadd.f32 1.0, %v1599_v52 }
 0x8b5   : > { %v1264_v55 = vmul.f32 0.5, %v1263_v54 }
 0x8b7   : > { %v1265_v56 = vmul.f32 %v1264_v55, %v1255_v46 }
 0x8b9   : > { %1471 = vmatmul.msk.f32.vlgmr.msrb.gmra.mxu3 %vm1278_vm10, %v1265_v56 }
 0x93c   : > { %v1299_v58 = vpop.f32.mrf.mxu3 }
 0x93d   : > { %v1300_v59 = vadd.f32 %v1575_v57, %v1299_v58 }
 0x93f   : > { %v1302_v53 = vadd.f32 %v1300_v59, %v2216_v12 }
 0x941   : > { %1303 = vst.msk [vmem:[%s674_s25] sm:$0xff] %vm681_vm0, %v1302_v53 }
 0x942   : > { %1777 = shalt.err (!%p1774_p12)
}
 0x943   : > { %1492 = dma.vmem_to_hbm [thread:$0]  (%p2019_p7), %s1318_s29, 128, %s1320_s2, %s1305_s0  }
 0x944 PF: > { %s2367_s15 = sld [smem:[#allocation21_spill]] }
 0x945   : > { %s2369_s12 = sld [smem:[#allocation23_spill]] }
 0x94a   : > { %s1331_s14 = sand.u32 1, %s2367_s15  }
 0x94b   : > { %p2370_p13 = scmp.ge.s32.totalorder %s2369_s12, 2  ;;  %s1332_s30 = scalar_lea.sflag [#allocation8], %s1331_s14 }
 0x94d   : > { %p1512_p9 = pnand %p2370_p13, %p1971_p6 }
 0x94f   : > { %p1513_p0 = pneg %p1512_p9 }
 0x951   : > { %1811 = dma.done.wait (%p1513_p0), %s1332_s30, 128  }
 0x952   : > { %1813 = vsyncadd (%p1513_p0), %s1332_s30, 4294967168  ;;  %s2371_s30 = sld [smem:[#allocation25_spill]]  ;;  %s2374_s27 = smov %s1820_s28 }
 0x953   : > { %s2372_s23 = sld [smem:[#allocation22_spill]] }
 0x954   : > { %s2373_s29 = sld [smem:[#allocation26_spill]] }
 0x958   : > { %p35_p3 = scmp.ge.s32.totalorder %s2371_s30, 4  }
 0x959   : > { %s2375_s28 = smov %s2372_s23 }
 0x95a   :  { %37 = sbr.rel (!%p35_p3) target bundleno = 21 (0x15), region = 165 }
 0x95f   :  { %1338 = vsyncpa [#allocation7], 1 }
 0x960   :  { %1340 = vsyncpa [#allocation7 + $0x1], 1 }
 0x961   :  { %1341 = vsyncpa [#allocation10], 1 }
 0x962   :  { %1343 = vsyncpa [#allocation10 + $0x1], 1 }
 0x963   :  { %1344 = vsyncpa [#allocation13], 1 }
 0x964   :  { %1345 = vsyncpa [#allocation8], 1 }
 0x965   :  { %1347 = vsyncpa [#allocation8 + $0x1], 1 }

// kernel: tpu_custom_call.1
= control target key start
LH: loop header
LB: loop body
LE: loop exit
PB: predicated region body
PF: predicated region fallthrough
CT: control target
= control target key end

     0   :  { %s2298_s0 = inlined_call_operand.hbm [shape: f32[2,8,32], index: 0, kind: input, shape index: {}]   ;;  %s2299_s1 = inlined_call_operand.hbm [shape: f32[2,1,8], index: 1, kind: input, shape index: {}]   ;;  %s2300_s2 = inlined_call_operand.vmem [shape: f32[1,32], index: 2, kind: input, shape index: {}]   ;;  %s2301_s3 = inlined_call_operand.hbm [shape: f32[1,32], index: 3, kind: input, shape index: {}]   ;;  %s2302_s4 = inlined_call_operand.vmem [shape: f32[32,32], index: 4, kind: input, shape index: {}]   ;;  %s2303_s5 = inlined_call_operand.vmem [shape: f32[32,32], index: 5, kind: input, shape index: {}]   ;;  %s2304_s6 = inlined_call_operand.vmem [shape: f32[32,32], index: 6, kind: input, shape index: {}]   ;;  %s2305_s7 = inlined_call_operand.vmem [shape: f32[1,32], index: 7, kind: input, shape index: {}]   ;;  %s2306_s8 = inlined_call_operand.vmem [shape: f32[1,32], index: 8, kind: input, shape index: {}]   ;;  %s2307_s9 = inlined_call_operand.vmem [shape: f32[1,32], index: 9, kind: input, shape index: {}]   ;;  %s2308_s10 = inlined_call_operand.hbm [shape: f32[4,8,32], index: 10, kind: input, shape index: {}]   ;;  %s2309_s11 = inlined_call_operand.vmem [shape: f32[1,32], index: 11, kind: input, shape index: {}]   ;;  %s2310_s12 = inlined_call_operand.vmem [shape: f32[1,32], index: 12, kind: input, shape index: {}]   ;;  %s2311_s13 = inlined_call_operand.vmem [shape: f32[1,32], index: 13, kind: input, shape index: {}]   ;;  %s2312_s14 = inlined_call_operand.hbm [shape: f32[32,64], index: 14, kind: input, shape index: {}]   ;;  %s2313_s15 = inlined_call_operand.vmem [shape: f32[1,64], index: 15, kind: input, shape index: {}]   ;;  %s2314_s16 = inlined_call_operand.vmem [shape: f32[64,32], index: 16, kind: input, shape index: {}]   ;;  %s2315_s17 = inlined_call_operand.vmem [shape: f32[1,32], index: 17, kind: input, shape index: {}]   ;;  %s2316_s18 = inlined_call_operand.hbm [shape: f32[2,8,32], index: 18, kind: output, shape index: {}]  }
   0x1   :  { %2329 = sst [smem:[#allocation28_spill]] %s2298_s0 }
   0x2   :  { %2330 = sst [smem:[#allocation29_spill]] %s2299_s1 }
   0x3   :  { %2331 = sst [smem:[#allocation30_spill]] %s2300_s2 }
   0x4   :  { %2332 = sst [smem:[#allocation31_spill]] %s2301_s3 }
   0x5   :  { %2333 = sst [smem:[#allocation32_spill]] %s2308_s10 }
   0x6   :  { %2334 = sst [smem:[#allocation33_spill]] %s2310_s12 }
   0x7   :  { %2335 = sst [smem:[#allocation34_spill]] %s2311_s13 }
   0x8   :  { %2336 = sst [smem:[#allocation35_spill]] %s2312_s14 }
   0x9   :  { %2337 = sst [smem:[#allocation36_spill]] %s2313_s15 }
   0xa   :  { %2338 = sst [smem:[#allocation37_spill]] %s2314_s16 }
   0xb   :  { %2339 = sst [smem:[#allocation38_spill]] %s2315_s17 }
   0xc   :  { %2340 = sst [smem:[#allocation39_spill]] %s2316_s18 }
   0xd   :  { %23 = vsyncpa [#allocation7], 0 }
   0xe   :  { %25 = vsyncpa [#allocation7 + $0x1], 0 }
   0xf   :  { %26 = vsyncpa [#allocation10], 0 }
  0x10   :  { %28 = vsyncpa [#allocation10 + $0x1], 0 }
  0x11   :  { %29 = vsyncpa [#allocation13], 0 }
  0x12   :  { %30 = vsyncpa [#allocation8], 0 }
  0x13   :  { %32 = vsyncpa [#allocation8 + $0x1], 0  ;;  %s1936_s27 = smov 0   ;;  %s1938_s28 = smov 0  }
  0x14   :  { %s1940_s29 = smov 0   ;;  %s1942_s30 = smov 0  }
  0x15 LB: > { %2341 = sst [smem:[#allocation21_spill]] %s1816_s27  ;;  %s1957_s0 = sadd.s32 4294967295, %s1828_s30   ;;  %s1828_s30 = sphi %s1942_s30, %s2371_s30   ;;  %s1824_s29 = sphi %s1940_s29, %s2373_s29   ;;  %s1820_s28 = sphi %s1938_s28, %s2375_s28   ;;  %s1816_s27 = sphi %s1936_s27, %s2374_s27  }
  0x16   : > { %2342 = sst [smem:[#allocation22_spill]] %s1824_s29  ;;  %s1437_s19 = sadd.s32 4294967294, %s1828_s30  }
  0x17   : > { %2343 = sst [smem:[#allocation23_spill]] %s1828_s30  ;;  %p58_p0 = scmp.ne.s32.totalorder %s1820_s28, %s1816_s27 }
  0x18   : > { %p59_p1 = scmp.eq.s32.totalorder %s1957_s0, 0  ;;  %p444_p2 = scmp.eq.s32.totalorder %s1957_s0, 1 }
  0x19   : > { %p450_p3 = scmp.eq.s32.totalorder %s1437_s19, 1  ;;  %p1438_p5 = scmp.ge.s32.totalorder %s1828_s30, 1 }
  0x1a   : > { %p1966_p4 = por %p59_p1, %p58_p0  ;;  %p457_p7 = scmp.lt.s32.totalorder %s1828_s30, 3 }
  0x1b   : > { %p1971_p6 = por %p450_p3, %p58_p0  ;;  %s2347_s3 = sld [smem:[#allocation31_spill]] }
  0x1c   : > { %p1979_p8 = pnand %p1438_p5, %p457_p7  ;;  %s1830_s24 = smov [#allocation11]  }
  0x1d   : > { %s2345_s20 = scalar_select %p1971_p6, 1, 0 }
  0x1e   : > { %p1494_p10 = pneg %p1979_p8  ;;  %s474_s25 = sshll.u32 %s1830_s24, 4  ;;  %s475_s25 = int_to_ptr.vmem [resolvable:$true] %s474_s25 }
  0x1f   : > { %2346 = sst [smem:[#allocation24_spill]] %s2345_s20  ;;  %s1831_s22 = smov [#allocation12]  }
  0x20   : > { %s2349_s10 = sld [smem:[#allocation32_spill]]  ;;  %p1991_p11 = pnand %p1494_p10, %p59_p1 }
  0x21   : > { %s472_s2 = sshll.u32 %s2347_s3, 4  ;;  %s503_s3 = sshll.u32 %s1831_s22, 4  ;;  %s473_s2 = int_to_ptr.hbm [resolvable:$true] %s472_s2  ;;  %s504_s3 = int_to_ptr.vmem [resolvable:$true] %s503_s3 }
  0x22   : > { %1497 = dma.hbm_to_vmem [thread:$0]  (!%p1991_p11), %s473_s2, 16, %s475_s25, [#allocation10]  }
  0x23   : > { %s1832_s24 = smov 128   ;;  %s1833_s26 = smov 8  }
  0x24   : > { %s2351_s14 = sld [smem:[#allocation35_spill]]  ;;  %s1834_s22 = smov [#allocation14]  }
  0x25   : > { %s526_s18 = sshll.u32 %s1834_s22, 4  ;;  %s2005_s2 = sadd.s32 1, %s1828_s30   ;;  %s527_s18 = int_to_ptr.vmem [resolvable:$true] %s526_s18 }
  0x26   : > { %s501_s20 = sshll.u32 %s2349_s10, 4  ;;  %2352 = sst [smem:[#allocation25_spill]] %s2005_s2  ;;  %s502_s20 = int_to_ptr.hbm [resolvable:$true] %s501_s20 }
  0x27   : > { %1500 = dma.hbm_to_vmem [thread:$0]  (!%p1991_p11), %s502_s20, 512, %s504_s3, [#allocation13], %s1832_s24, %s1832_s24, %s1833_s26  }
  0x28   : > { %s42_s25 = ssub.s32 %s1828_s30, %s2005_s2  ;;  %s45_s17 = sadd.s32 1, %s1824_s29 }
  0x29   : > { %p43_p12 = scmp.eq.s32.totalorder %s42_s25, 0  ;;  %p52_p13 = scmp.ne.s32.totalorder %s1824_s29, %s1820_s28 }
  0x2a   : > { %s524_s27 = sshll.u32 %s2351_s14, 4  ;;  %p53_p0 = scmp.eq.s32.totalorder %s1828_s30, 0  ;;  %s525_s27 = int_to_ptr.hbm [resolvable:$true] %s524_s27 }
  0x2b   : > { %1503 = dma.hbm_to_vmem [thread:$0]  (!%p1991_p11), %s525_s27, 512, %s527_s18, [#allocation13], %s1832_s24, %s1832_s24, %s1833_s26  }
  0x2c   : > { %p1518_p3 = scmp.lt.s32.totalorder %s1828_s30, 2  ;;  %p54_p5 = por %p53_p0, %p52_p13 }
  0x2d   : > { %s2015_s3 = scalar_select %p43_p12, %s1824_s29, %s45_s17  }
  0x2e   : > { %p2019_p7 = por %p444_p2, %p52_p13  ;;  %s2024_s18 = sand.u32 1, %s1824_s29  }
  0x2f   : > { %2353 = sst [smem:[#allocation26_spill]] %s2015_s3  ;;  %s1444_s27 = sshll.u32 %s1828_s30, 3 }
  0x30   : > { %s2354_s10 = scalar_select %p2019_p7, 1, 0 }
  0x31   : > { %s1443_s20 = sshll.u32 %s2024_s18, 3  ;;  %s2356_s26 = sld [smem:[#allocation28_spill]] }
  0x32   : > { %2355 = sst [smem:[#allocation27_spill]] %s2354_s10  ;;  %s553_s25 = scalar_lea.vmem [#allocation6], %s1443_s20 }
  0x33   : > { %s561_s17 = sshll.u32 %s553_s25, 4  ;;  %p2033_p2 = pnand %p1518_p3, %p54_p5  ;;  %s562_s17 = int_to_ptr.vmem [resolvable:$true] %s561_s17 }
  0x34   : > { %s568_s3 = sand.u32 1, %s1828_s30   ;;  %s2358_s10 = sld [smem:[#allocation29_spill]] }
  0x35   : > { %s550_s16 = scalar_lea.sflag [#allocation7], %s2024_s18  ;;  %p1694_p11 = pneg %p2033_p2 }
  0x37   : > { %s557_s19 = scalar_lea.hbm %s2356_s26, %s1444_s27 }
  0x38   : > { %s559_s22 = sshll.u32 %s557_s19, 4  ;;  %s1697_s19 = scalar_lea.hbm %s2356_s26, 16  ;;  %s560_s22 = int_to_ptr.hbm [resolvable:$true] %s559_s22 }
  0x39   : > { %s1690_s21 = sshra.s32 %s560_s22, 4  ;;  %s1691_s21 = int_to_ptr.hbm [resolvable:$true] %s1690_s21 }
  0x3a   : > { %s574_s15 = scalar_lea.hbm %s2358_s10, %s1828_s30  ;;  %s1692_s27 = scalar_lea.hbm %s1691_s21, 8 }
  0x3b   : > { %p1693_p10 = scmp.ne.s32.totalorder %s1691_s21, %s1692_s27  ;;  %p1698_p0 = scmp.lt.s32.totalorder %s1691_s21, %s2356_s26 }
  0x3c   : > { %p1699_p3 = scmp.lt.s32.totalorder %s1697_s19, %s1692_s27 }
  0x3d   : > { %p1695_p12 = pnand %p1694_p11, %p1693_p10 }
  0x3e   : > { %p1700_p5 = por %p1699_p3, %p1698_p0 }
  0x3f   : > { %p1696_p13 = pneg %p1695_p12 }
  0x41   : > { %p1701_p9 = pnand %p1700_p5, %p1696_p13 }
  0x43   : > { %1704 = shalt.err (!%p1701_p9)
}
  0x44   : > { %1507 = dma.hbm_to_vmem [thread:$0]  (!%p2033_p2), %s560_s22, 128, %s562_s17, %s550_s16  }
  0x45   : > { %s576_s29 = sshll.u32 %s574_s15, 4  ;;  %s571_s2 = scalar_lea.vmem [#allocation9], %s2024_s18  ;;  %s577_s29 = int_to_ptr.hbm [resolvable:$true] %s576_s29 }
  0x46   : > { %s578_s30 = sshll.u32 %s571_s2, 4  ;;  %s569_s20 = scalar_lea.sflag [#allocation10], %s568_s3  ;;  %s579_s30 = int_to_ptr.vmem [resolvable:$true] %s578_s30 }
  0x47   : > { %s1720_s24 = sshra.s32 %s577_s29, 4  ;;  %s1727_s27 = scalar_lea.hbm %s2358_s10, 2  ;;  %s1721_s24 = int_to_ptr.hbm [resolvable:$true] %s1720_s24 }
  0x48   : > { %s1722_s12 = scalar_lea.hbm %s1721_s24, 1  ;;  %p1728_p9 = scmp.lt.s32.totalorder %s1721_s24, %s2358_s10 }
  0x49   : > { %p1723_p10 = scmp.ne.s32.totalorder %s1721_s24, %s1722_s12  ;;  %p1729_p0 = scmp.lt.s32.totalorder %s1727_s27, %s1722_s12 }
  0x4b   : > { %p1725_p12 = pnand %p1723_p10, %p1694_p11  ;;  %p1730_p3 = por %p1729_p0, %p1728_p9 }
  0x4d   : > { %p1726_p13 = pneg %p1725_p12 }
  0x4f   : > { %p1731_p5 = pnand %p1730_p3, %p1726_p13 }
  0x51   : > { %1734 = shalt.err (!%p1731_p5)
}
  0x52   : > { %1510 = dma.hbm_to_vmem [thread:$0]  (!%p2033_p2), %s577_s29, 16, %s579_s30, %s569_s20  }
  0x53   : > { %587 = sbr.rel (%p1979_p8) target bundleno = 2372 (0x944), region = 92  ;;  %s2071_s15 = sand.u32 (!%p1979_p8), 1, %s1820_s28  }
  0x54   : > { %s1446_s3 = sshll.u32 (!%p1979_p8), %s2071_s15, 3  ;;  %s590_s18 = scalar_lea.sflag (!%p1979_p8), [#allocation7], %s2071_s15 }
  0x55   : > { %s593_s12 = scalar_lea.vmem (!%p1979_p8), [#allocation6], %s1446_s3 }
  0x58   : > { %1795 = dma.done.wait (%p1966_p4), %s590_s18, 128  }
  0x59   : > { %1797 = vsyncadd (%p1966_p4), %s590_s18, 4294967168  ;;  %s599_s14 = sand.u32 1, %s1957_s0   ;;  %s602_s23 = scalar_lea.vmem [#allocation9], %s2071_s15 }
  0x5a   : > { %s600_s30 = scalar_lea.sflag [#allocation10], %s599_s14 }
  0x5b   : > { %1799 = dma.done.wait (%p1966_p4), %s600_s30, 16  }
  0x5c   : > { %1801 = vsyncadd (%p1966_p4), %s600_s30, 4294967280 }
  0x5d   : > { %1803 = dma.done.wait (%p59_p1), [#allocation10], 16  }
  0x5e   : > { %1805 = vsyncadd (%p59_p1), [#allocation10], 4294967280 }
  0x5f   : > { %1807 = dma.done.wait (%p59_p1), [#allocation13], 1024  }
  0x60   : > { %1809 = vsyncadd (%p59_p1), [#allocation13], 4294966272  ;;  %vm681_vm0 = vcmask 261120   ;;  %v2095_v0 = vld [vmem:[%s593_s12] sm:$0xff]  ;;  %v1835_v2 = vmov 32.0   ;;  %v722_v14 = vld [vmem:[%s2302_s4 + $0x18] sm:$0xff] }
  0x61   : > { %v682_v1 = vsel %vm681_vm0, %v2095_v0, 0.0  ;;  %1576 = vrcp.f32 %v1835_v2  ;;  %v754_v15 = vld [vmem:[%s2303_s5 + $0x18] sm:$0xff]  ;;  %742 = vmatpush.msra.mxu0 %v722_v14  ;;  %v721_v17 = vld [vmem:[%s2302_s4 + $0x10] sm:$0xff]  ;;  %v720_v20 = vld [vmem:[%s2302_s4 + $0x8] sm:$0xff]  ;;  %s2359_s21 = sld [smem:[#allocation30_spill]]  ;;  %vm817_vm5 = vcmask 64512  }
  0x62   : > { %683 = vadd.xlane.f32.xlu0 %v682_v1  ;;  %v782_v16 = vld [vmem:[%s2304_s6 + $0x18] sm:$0xff]  ;;  %771 = vmatpush.msra.mxu1 %v754_v15  ;;  %v753_v18 = vld [vmem:[%s2303_s5 + $0x10] sm:$0xff]  ;;  %v752_v21 = vld [vmem:[%s2303_s5 + $0x8] sm:$0xff]  ;;  %s1836_s30 = smov 120   ;;  %v1837_v57 = vmov -1e+09  }
  0x63   : > { %v781_v19 = vld [vmem:[%s2304_s6 + $0x10] sm:$0xff]  ;;  %799 = vmatpush.msra.mxu2 %v782_v16  ;;  %743 = vmatpush.msra.mxu0 %v721_v17  ;;  %v780_v22 = vld [vmem:[%s2304_s6 + $0x8] sm:$0xff]  ;;  %v719_v23 = vld [vmem:[%s2302_s4] sm:$0xff]  ;;  %s1839_s1 = smov 104   ;;  %s2360_s2 = sld [smem:[#allocation33_spill]]  ;;  %vm1278_vm10 = vcmask 523264  }
  0x64   : > { %772 = vmatpush.msra.mxu1 %v753_v18  ;;  %v751_v24 = vld [vmem:[%s2303_s5] sm:$0xff]  ;;  %v1567_v38 = vld [vmem:[#allocation11] ss:$0 sm:$0xff]  ;;  %s2361_s13 = sld [smem:[#allocation34_spill]]  ;;  %s1473_s16 = sshll.u32 %s1957_s0, 3 }
  0x65   : > { %800 = vmatpush.msra.mxu2 %v781_v19  ;;  %744 = vmatpush.msra.mxu0 %v720_v20  ;;  %v779_v25 = vld [vmem:[%s2304_s6] sm:$0xff]  ;;  %s2362_s19 = sld [smem:[#allocation37_spill]]  ;;  %s674_s25 = scalar_lea.vmem [#allocation15], %s1446_s3 }
  0x66   : > { %773 = vmatpush.msra.mxu1 %v752_v21  ;;  %v1568_v41 = vld [vmem:[%s2305_s7] ss:$0 sm:$0xff]  ;;  %s2363_s27 = sld [smem:[#allocation36_spill]]  ;;  %s1317_s29 = sshll.u32 %s674_s25, 4  ;;  %s1318_s29 = int_to_ptr.vmem [resolvable:$true] %s1317_s29 }
  0x67   : > { %v1577_v3 = vpop.eup %1576  ;;  %801 = vmatpush.msra.mxu2 %v780_v22  ;;  %745 = vmatpush.msra.mxu0 %v719_v23  ;;  %v1566_v35 = vld [vmem:[%s2359_s21] ss:$0 sm:$0xff]  ;;  %s2364_s14 = sld [smem:[#allocation38_spill]]  ;;  %s1305_s0 = scalar_lea.sflag [#allocation8], %s2071_s15 }
  0x68   : > { %v686_v4 = vmul.f32 32.0, %v1577_v3  ;;  %vm690_vm1 = vweird.f32 %v1577_v3  ;;  %774 = vmatpush.msra.mxu1 %v751_v24  ;;  %v1569_v42 = vld [vmem:[%s2306_s8] ss:$0 sm:$0xff] }
  0x69   : > { %802 = vmatpush.msra.mxu2 %v779_v25  ;;  %v1570_v48 = vld [vmem:[%s2307_s9] ss:$0 sm:$0xff] }
  0x6a   : > { %v687_v5 = vsub.f32 1.0, %v686_v4  ;;  %v676_v55 = vld [vmem:[%s602_s23] sm:$0x1]  ;;  %s1838_s23 = smov 112  }
  0x6b   : > { %vm677_vm6 = vcmp.gt.f32.partialorder %v676_v55, 0.0 }
  0x6c   : > { %v688_v6 = vmul.f32 %v1577_v3, %v687_v5  ;;  %v678_v58 = vsel %vm677_vm6, 0.0, %v1837_v57 }
  0x6d   : > { %v2170_v59 = vperm.slane %v678_v58, 0  ;;  %v1066_v58 = vld [vmem:[#allocation12 + $0x10] sm:$0xff] }
  0x6e   : > { %v689_v7 = vadd.f32 %v1577_v3, %v688_v6 }
  0x70   : > { %v2099_v8 = vsel %vm690_vm1, %v1577_v3, %v689_v7 }
  0xd5   : > { %v684_v9 = vpop.xlane.xlu0 %683 }
  0xd6   : > { %v692_v10 = vmul.f32 %v2099_v8, %v684_v9  ;;  %v879_v9 = vld [vmem:[#allocation12] sm:$0xff] }
  0xd8   : > { %v693_v11 = vsub.f32 %v2095_v0, %v692_v10  ;;  %v973_v10 = vld [vmem:[#allocation12 + $0x8] sm:$0xff] }
  0xda   : > { %v694_v12 = vmul.f32 %v693_v11, %v693_v11 }
  0xdc   : > { %v695_v13 = vsel %vm681_vm0, %v694_v12, 0.0 }
  0xdd   : > { %696 = vadd.xlane.f32.xlu0 %v695_v13 }
 0x150   : > { %v697_v26 = vpop.xlane.xlu0 %696 }
 0x151   : > { %v698_v27 = vmul.f32 %v697_v26, %v2099_v8 }
 0x153   : > { %v699_v28 = vadd.f32 1e-12, %v698_v27  ;;  %v1840_v27 = vmov 0.0  }
 0x154   : > { %810 = vst.msk [vmem:[#allocation5] sm:$0xff] %vm681_vm0, %v1840_v27 }
 0x155   : > { %1578 = vrsqrt.f32 %v699_v28  ;;  %vm706_vm3 = vweird.f32 %v699_v28 }
 0x15b   : > { %v1579_v29 = vpop.eup %1578 }
 0x15c   : > { %v701_v30 = vmul.f32 %v1579_v29, %v699_v28  ;;  %vm707_vm2 = vweird.f32 %v1579_v29 }
 0x15d   : > { %vm708_vm4 = vmor %vm706_vm3, %vm707_vm2 }
 0x15e   : > { %v702_v31 = vmul.f32 %v1579_v29, %v701_v30 }
 0x160   : > { %v703_v32 = vmul.f32 0.5, %v702_v31 }
 0x162   : > { %v704_v33 = vsub.f32 1.5, %v703_v32 }
 0x164   : > { %v705_v34 = vmul.f32 %v1579_v29, %v704_v33 }
 0x166   : > { %v709_v36 = vsel %vm708_vm4, %v1579_v29, %v705_v34  ;;  %v878_v29 = vld [vmem:[#allocation5] sm:$0xff] }
 0x167   : > { %v710_v37 = vmul.f32 %v709_v36, %v693_v11 }
 0x169   : > { %v714_v39 = vmul.f32 %v1566_v35, %v710_v37 }
 0x16b   : > { %v718_v40 = vadd.f32 %v1567_v38, %v714_v39 }
 0x16d   : > { %1451 = vmatmul.msk.f32.vlgmr.msra.gmra.mxu0 %vm681_vm0, %v718_v40  ;;  %1452 = vmatmul.msk.f32.vlgmr.msra.gmra.mxu1 %vm681_vm0, %v718_v40 }
 0x16e   : > { %1453 = vmatmul.msk.f32.vlgmr.msra.gmra.mxu2 %vm681_vm0, %v718_v40 }
 0x1ea   : > { %v747_v43 = vpop.f32.mrf.mxu0  ;;  %v776_v44 = vpop.f32.mrf.mxu1 }
 0x1eb   : > { %v748_v45 = vadd.f32 %v1568_v41, %v747_v43  ;;  %v777_v46 = vadd.f32 %v1569_v42, %v776_v44 }
 0x1ed   : > { %v750_v47 = vmul.f32 0.35355338, %v748_v45  ;;  %808 = vst.msk [vmem:[#allocation3] sm:$0xff] %vm681_vm0, %v777_v46 }
 0x1ef   : > { %807 = vst.msk [vmem:[#allocation2] sm:$0xff] %vm681_vm0, %v750_v47 }
 0x1f1   : > { %v804_v49 = vpop.f32.mrf.mxu2 }
 0x1f2   : > { %v805_v50 = vadd.f32 %v1570_v48, %v804_v49 }
 0x1f4   : > { %809 = vst.msk [vmem:[#allocation4] sm:$0xff] %vm681_vm0, %v805_v50  ;;  %v812_v51 = vld [vmem:[#allocation3] sm:$0xff] }
 0x1f5   : > { %907 = vrot.lane.b32.xlu1 %v812_v51, %s1836_s30  ;;  %1454 = vmatpush.xpose.msk.msrb.mxu0 %vm817_vm5, %v812_v51 }
 0x1f6   : > { %v811_v52 = vld [vmem:[#allocation2] sm:$0xff] }
 0x1f8   : > { %1455 = vmatmul.msk.f32.vlgmr.msrb.gmra.mxu0 %vm817_vm5, %v811_v52 }
 0x1f9   : > { %898 = vmatpush.msra.mxu0 %v879_v9 }
 0x1fb   : > { %v2162_v53 = vld [vmem:[#allocation4] sm:$0xff] }
 0x1fc   : > { %873 = vmatpush.msra.mxu3 %v2162_v53 }
 0x1fd   : > { %905 = vrot.lane.b32.xlu1 %v811_v52, %s1836_s30 }
 0x1fe   : > { %992 = vmatpush.msrb.mxu3 %v973_v10 }
 0x267   : > { %v908_v54 = vpop.permute.xlu1 %907 }
 0x268   : > { %1458 = vmatpush.xpose.msk.msrb.mxu1 %vm817_vm5, %v908_v54 }
 0x26f   : > { %v906_v56 = vpop.permute.xlu1 %905 }
 0x270   : > { %1459 = vmatmul.msk.f32.vlgmr.msrb.gmra.mxu1 %vm817_vm5, %v906_v56 }
 0x275   : > { %v841_v60 = vpop.f32.mrf.mxu0 }
 0x276   : > { %v842_v61 = vadd.f32 %v841_v60, %v2170_v59 }
 0x278   : > { %v844_v62 = vsel %vm817_vm5, %v842_v61, -inf }
 0x279   : > { %845 = vmax.xlane.f32.xlu2 %v844_v62 }
 0x2ec   : > { %v846_v63 = vpop.xlane.xlu2 %845 }
 0x2ed   : > { %v847_v1 = vsub.f32 %v842_v61, %v846_v63  ;;  %v930_v2 = vpop.f32.mrf.mxu1 }
 0x2ee   : > { %v931_v3 = vadd.f32 %v930_v2, %v2170_v59 }
 0x2ef   : > { %v848_v4 = vmul.f32 1.442695, %v847_v1 }
 0x2f0   : > { %v933_v5 = vsel %vm817_vm5, %v931_v3, -inf }
 0x2f1   : > { %1580 = vpow2.f32 %v848_v4  ;;  %934 = vmax.xlane.f32.xlu2 %v933_v5 }
 0x2f7   : > { %v1581_v6 = vpop.eup %1580 }
 0x2f8   : > { %v850_v7 = vsel %vm817_vm5, %v1581_v6, 0.0 }
 0x2f9   : > { %851 = vadd.xlane.f32.xlu0 %v850_v7  ;;  %v1571_v7 = vld [vmem:[%s2309_s11] ss:$0 sm:$0xff] }
 0x309   : > { %945 = vrot.lane.b32.xlu2 %v2162_v53, %s1836_s30 }
 0x30d   : > { %1001 = vrot.lane.b32.xlu0 %v812_v51, %s1838_s23 }
 0x311   : > { %999 = vrot.lane.b32.xlu2 %v811_v52, %s1838_s23 }
 0x315   : > { %1094 = vrot.lane.b32.xlu0 %v812_v51, %s1839_s1 }
 0x319   : > { %1092 = vrot.lane.b32.xlu2 %v811_v52, %s1839_s1 }
 0x364   : > { %v935_v11 = vpop.xlane.xlu2 %934 }
 0x365   : > { %v936_v12 = vsub.f32 %v931_v3, %v935_v11 }
 0x367   : > { %v937_v13 = vmul.f32 1.442695, %v936_v12 }
 0x369   : > { %1582 = vpow2.f32 %v937_v13 }
 0x36c   : > { %v852_v14 = vpop.xlane.xlu0 %851  ;;  %v946_v15 = vpop.permute.xlu2 %945 }
 0x36d   : > { %1584 = vrcp.f32 %v852_v14  ;;  %966 = vmatpush.msrb.mxu2 %v946_v15 }
 0x36f   : > { %v1583_v16 = vpop.eup %1582  ;;  %1085 = vmatpush.msra.mxu2 %v1066_v58 }
 0x370   : > { %v939_v17 = vsel %vm817_vm5, %v1583_v16, 0.0 }
 0x371   : > { %940 = vadd.xlane.f32.xlu1 %v939_v17 }
 0x373   : > { %v1585_v18 = vpop.eup %1584 }
 0x374   : > { %v854_v19 = vmul.f32 %v1585_v18, %v1581_v6  ;;  %v1000_v26 = vpop.permute.xlu2 %999 }
 0x376   : > { %1456 = vmatmul.msk.f32.vlgmr.msra.gmra.mxu3 %vm817_vm5, %v854_v19  ;;  %v1229_v19 = vld [vmem:[#allocation14 + $0x18] sm:$0xff] }
 0x37c   : > { %v1093_v32 = vpop.permute.xlu2 %1092 }
 0x37f   : > { %v1002_v20 = vpop.permute.xlu0 %1001 }
 0x380   : > { %1462 = vmatpush.xpose.msk.msrb.mxu0 %vm817_vm5, %v1002_v20  ;;  %v1227_v20 = vld [vmem:[#allocation14 + $0x8] sm:$0xff] }
 0x387   : > { %v1095_v21 = vpop.permute.xlu0 %1094 }
 0x388   : > { %1466 = vmatpush.xpose.msk.msra.mxu3 %vm817_vm5, %v1095_v21  ;;  %v1226_v21 = vld [vmem:[#allocation14] sm:$0xff] }
 0x3e4   : > { %v941_v22 = vpop.xlane.xlu1 %940 }
 0x3e5   : > { %1586 = vrcp.f32 %v941_v22 }
 0x3eb   : > { %v1587_v23 = vpop.eup %1586 }
 0x3ec   : > { %v943_v24 = vmul.f32 %v1587_v23, %v1583_v16 }
 0x3ee   : > { %1460 = vmatmul.msk.f32.vlgmr.msrb.gmra.mxu2 %vm817_vm5, %v943_v24 }
 0x3ef   : > { %1249 = vmatpush.msrb.mxu2 %v1229_v19 }
 0x3f9   : > { %v875_v25 = vpop.f32.mrf.mxu3 }
 0x3fa   : > { %1457 = vmatmul.msk.f32.vlgmr.msra.gmra.mxu0 %vm817_vm5, %v875_v25 }
 0x402   : > { %1463 = vmatmul.msk.f32.vlgmr.msrb.gmra.mxu0 %vm817_vm5, %v1000_v26 }
 0x471   : > { %v968_v28 = vpop.f32.mrf.mxu2 }
 0x472   : > { %1461 = vmatmul.msk.f32.vlgmr.msrb.gmra.mxu3 %vm817_vm5, %v968_v28 }
 0x477   : > { %v900_v30 = vpop.f32.mrf.mxu0 }
 0x478   : > { %v903_v31 = vadd.f32 %v900_v30, %v878_v29 }
 0x47a   : > { %904 = vst.msk [vmem:[#allocation5] sm:$0xff] %vm681_vm0, %v903_v31  ;;  %1467 = vmatmul.msk.f32.vlgmr.msra.gmra.mxu3 %vm817_vm5, %v1093_v32  ;;  %v1572_v31 = vld [vmem:[%s2360_s2] ss:$0 sm:$0xff] }
 0x47f   : > { %v1024_v33 = vpop.f32.mrf.mxu0 }
 0x480   : > { %v1025_v34 = vadd.f32 %v1024_v33, %v2170_v59 }
 0x481   : > { %v971_v36 = vld [vmem:[#allocation5] sm:$0xff] }
 0x482   : > { %v1027_v35 = vsel %vm817_vm5, %v1025_v34, -inf }
 0x483   : > { %1028 = vmax.xlane.f32.xlu0 %v1027_v35 }
 0x497   : > { %1131 = vrot.lane.b32.xlu0 %v2162_v53, %s1839_s1  ;;  %s2365_s1 = sld [smem:[#allocation39_spill]] }
 0x49d   : > { %s1315_s17 = scalar_lea.hbm %s2365_s1, %s1473_s16  ;;  %s1770_s3 = scalar_lea.hbm %s2365_s1, 16 }
 0x49e   : > { %s1319_s2 = sshll.u32 %s1315_s17, 4  ;;  %s1320_s2 = int_to_ptr.hbm [resolvable:$true] %s1319_s2 }
 0x49f   : > { %s1764_s20 = sshra.s32 %s1320_s2, 4  ;;  %s1765_s20 = int_to_ptr.hbm [resolvable:$true] %s1764_s20 }
 0x4a0   : > { %s1766_s24 = scalar_lea.hbm %s1765_s20, 8  ;;  %p1771_p2 = scmp.lt.s32.totalorder %s1765_s20, %s2365_s1 }
 0x4a1   : > { %p1767_p1 = scmp.ne.s32.totalorder %s1765_s20, %s1766_s24  ;;  %p1772_p11 = scmp.lt.s32.totalorder %s1770_s3, %s1766_s24 }
 0x4a3   : > { %p1768_p4 = pnand %p1767_p1, %p2019_p7  ;;  %p1773_p10 = por %p1772_p11, %p1771_p2 }
 0x4a5   : > { %p1769_p8 = pneg %p1768_p4 }
 0x4a7   : > { %p1774_p12 = pnand %p1773_p10, %p1769_p8 }
 0x4f5   : > { %v994_v37 = vpop.f32.mrf.mxu3 }
 0x4f6   : > { %v997_v38 = vadd.f32 %v994_v37, %v971_v36  ;;  %v1029_v39 = vpop.xlane.xlu0 %1028  ;;  %v1273_v36 = vld [vmem:[%s2362_s19 + $0x38] sm:$0xff]  ;;  %v1272_v37 = vld [vmem:[%s2362_s19 + $0x30] sm:$0xff] }
 0x4f7   : > { %v1030_v40 = vsub.f32 %v1025_v34, %v1029_v39  ;;  %1290 = vmatpush.msrb.mxu3 %v1273_v36  ;;  %v1270_v39 = vld [vmem:[%s2362_s19 + $0x20] sm:$0xff] }
 0x4f8   : > { %998 = vst.msk [vmem:[#allocation5] sm:$0xff] %vm681_vm0, %v997_v38  ;;  %v1271_v38 = vld [vmem:[%s2362_s19 + $0x28] sm:$0xff] }
 0x4f9   : > { %v1031_v41 = vmul.f32 1.442695, %v1030_v40  ;;  %1291 = vmatpush.msrb.mxu3 %v1272_v37  ;;  %v1269_v40 = vld [vmem:[%s2362_s19 + $0x18] sm:$0xff] }
 0x4fb   : > { %1588 = vpow2.f32 %v1031_v41  ;;  %1292 = vmatpush.msrb.mxu3 %v1271_v38  ;;  %v1268_v41 = vld [vmem:[%s2362_s19 + $0x10] sm:$0xff] }
 0x4fd   : > { %v1117_v42 = vpop.f32.mrf.mxu3  ;;  %1293 = vmatpush.msrb.mxu3 %v1270_v39 }
 0x4fe   : > { %v1118_v43 = vadd.f32 %v1117_v42, %v2170_v59  ;;  %v1159_v59 = vld [vmem:[#allocation12 + $0x18] sm:$0xff] }
 0x4ff   : > { %v1064_v1 = vld [vmem:[#allocation5] sm:$0xff]  ;;  %1294 = vmatpush.msrb.mxu3 %v1269_v40  ;;  %v1267_v42 = vld [vmem:[%s2362_s19 + $0x8] sm:$0xff] }
 0x500   : > { %v1120_v44 = vsel %vm817_vm5, %v1118_v43, -inf }
 0x501   : > { %v1589_v45 = vpop.eup %1588  ;;  %1121 = vmax.xlane.f32.xlu2 %v1120_v44  ;;  %1295 = vmatpush.msrb.mxu3 %v1268_v41  ;;  %v1574_v44 = vld [vmem:[%s2363_s27] ss:$0 sm:$0xff] }
 0x502   : > { %v1033_v46 = vsel %vm817_vm5, %v1589_v45, 0.0 }
 0x503   : > { %1034 = vadd.xlane.f32.xlu1 %v1033_v46  ;;  %1296 = vmatpush.msrb.mxu3 %v1267_v42 }
 0x509   : > { %v1132_v47 = vpop.permute.xlu0 %1131 }
 0x50a   : > { %1152 = vmatpush.msra.mxu0 %v1132_v47 }
 0x51c   : > { %1038 = vrot.lane.b32.xlu1 %v2162_v53, %s1838_s23 }
 0x574   : > { %v1122_v48 = vpop.xlane.xlu2 %1121 }
 0x575   : > { %v1123_v49 = vsub.f32 %v1118_v43, %v1122_v48  ;;  %v1266_v43 = vld [vmem:[%s2362_s19] sm:$0xff] }
 0x576   : > { %v1035_v54 = vpop.xlane.xlu1 %1034  ;;  %1297 = vmatpush.msrb.mxu3 %v1266_v43 }
 0x577   : > { %v1124_v50 = vmul.f32 1.442695, %v1123_v49 }
 0x579   : > { %1590 = vpow2.f32 %v1124_v50 }
 0x57a   : > { %1592 = vrcp.f32 %v1035_v54 }
 0x57f   : > { %v1591_v51 = vpop.eup %1590 }
 0x580   : > { %v1126_v52 = vsel %vm817_vm5, %v1591_v51, 0.0  ;;  %v1593_v55 = vpop.eup %1592 }
 0x581   : > { %1127 = vadd.xlane.f32.xlu1 %v1126_v52  ;;  %v1037_v56 = vmul.f32 %v1593_v55, %v1589_v45 }
 0x58e   : > { %v1039_v57 = vpop.permute.xlu1 %1038 }
 0x58f   : > { %1059 = vmatpush.msra.mxu1 %v1039_v57  ;;  %v1575_v57 = vld [vmem:[%s2364_s14] ss:$0 sm:$0xff] }
 0x590   : > { %1464 = vmatmul.msk.f32.vlgmr.msra.gmra.mxu1 %vm817_vm5, %v1037_v56 }
 0x591   : > { %1178 = vmatpush.msrb.mxu1 %v1159_v59 }
 0x5f4   : > { %v1128_v53 = vpop.xlane.xlu1 %1127 }
 0x5f5   : > { %1594 = vrcp.f32 %v1128_v53 }
 0x5fb   : > { %v1595_v60 = vpop.eup %1594 }
 0x5fc   : > { %v1130_v61 = vmul.f32 %v1595_v60, %v1591_v51 }
 0x5fe   : > { %1468 = vmatmul.msk.f32.vlgmr.msra.gmra.mxu0 %vm817_vm5, %v1130_v61 }
 0x60d   : > { %v1061_v62 = vpop.f32.mrf.mxu1 }
 0x60e   : > { %1465 = vmatmul.msk.f32.vlgmr.msra.gmra.mxu2 %vm817_vm5, %v1061_v62 }
 0x67b   : > { %v1154_v63 = vpop.f32.mrf.mxu0 }
 0x67c   : > { %1469 = vmatmul.msk.f32.vlgmr.msrb.gmra.mxu1 %vm817_vm5, %v1154_v63 }
 0x691   : > { %v1087_v2 = vpop.f32.mrf.mxu2 }
 0x692   : > { %v1090_v3 = vadd.f32 %v1087_v2, %v1064_v1 }
 0x694   : > { %1091 = vst.msk [vmem:[#allocation5] sm:$0xff] %vm681_vm0, %v1090_v3 }
 0x69b   : > { %v1157_v4 = vld [vmem:[#allocation5] sm:$0xff] }
 0x6f9   : > { %v1180_v5 = vpop.f32.mrf.mxu1 }
 0x6fa   : > { %v1183_v6 = vadd.f32 %v1180_v5, %v1157_v4 }
 0x6fc   : > { %1184 = vst.msk [vmem:[#allocation5] sm:$0xff] %vm681_vm0, %v1183_v6 }
 0x703   : > { %v1185_v9 = vld [vmem:[#allocation5] sm:$0xff] }
 0x704   : > { %v1186_v10 = vadd.f32 %v1185_v9, %v2095_v0  ;;  %v1228_v0 = vld [vmem:[#allocation14 + $0x10] sm:$0xff] }
 0x705   : > { %1250 = vmatpush.msrb.mxu2 %v1228_v0 }
 0x706   : > { %v1191_v11 = vadd.f32 %v1571_v7, %v1186_v10 }
 0x707   : > { %1251 = vmatpush.msrb.mxu2 %v1227_v20 }
 0x708   : > { %1192 = vst.msk [vmem:[#allocation5] sm:$0xff] %vm681_vm0, %v1191_v11 }
 0x709   : > { %1252 = vmatpush.msrb.mxu2 %v1226_v21 }
 0x70f   : > { %v2216_v12 = vld [vmem:[#allocation5] sm:$0xff] }
 0x710   : > { %v1196_v13 = vsel %vm681_vm0, %v2216_v12, 0.0 }
 0x711   : > { %1197 = vadd.xlane.f32.xlu2 %v1196_v13 }
 0x784   : > { %v1198_v14 = vpop.xlane.xlu2 %1197 }
 0x785   : > { %v1199_v15 = vmul.f32 %v1198_v14, %v2099_v8 }
 0x787   : > { %v1200_v16 = vsub.f32 %v2216_v12, %v1199_v15 }
 0x789   : > { %v1201_v17 = vmul.f32 %v1200_v16, %v1200_v16 }
 0x78b   : > { %v1202_v18 = vsel %vm681_vm0, %v1201_v17, 0.0 }
 0x78c   : > { %1203 = vadd.xlane.f32.xlu2 %v1202_v18 }
 0x7ff   : > { %v1204_v22 = vpop.xlane.xlu2 %1203 }
 0x800   : > { %v1205_v23 = vmul.f32 %v1204_v22, %v2099_v8  ;;  %v1573_v8 = vld [vmem:[%s2361_s13] ss:$0 sm:$0xff] }
 0x802   : > { %v1206_v24 = vadd.f32 1e-12, %v1205_v23 }
 0x804   : > { %1596 = vrsqrt.f32 %v1206_v24  ;;  %vm1213_vm8 = vweird.f32 %v1206_v24 }
 0x80a   : > { %v1597_v25 = vpop.eup %1596 }
 0x80b   : > { %v1208_v26 = vmul.f32 %v1597_v25, %v1206_v24  ;;  %vm1214_vm7 = vweird.f32 %v1597_v25 }
 0x80c   : > { %vm1215_vm9 = vmor %vm1213_vm8, %vm1214_vm7 }
 0x80d   : > { %v1209_v27 = vmul.f32 %v1597_v25, %v1208_v26 }
 0x80f   : > { %v1210_v28 = vmul.f32 0.5, %v1209_v27 }
 0x811   : > { %v1211_v29 = vsub.f32 1.5, %v1210_v28 }
 0x813   : > { %v1212_v30 = vmul.f32 %v1597_v25, %v1211_v29 }
 0x815   : > { %v1216_v32 = vsel %vm1215_vm9, %v1597_v25, %v1212_v30 }
 0x816   : > { %v1217_v33 = vmul.f32 %v1216_v32, %v1200_v16 }
 0x818   : > { %v1221_v34 = vmul.f32 %v1572_v31, %v1217_v33 }
 0x81a   : > { %v1225_v35 = vadd.f32 %v1573_v8, %v1221_v34 }
 0x81c   : > { %1470 = vmatmul.msk.f32.vlgmr.msrb.gmra.mxu2 %vm681_vm0, %v1225_v35 }
 0x89f   : > { %v1254_v45 = vpop.f32.mrf.mxu2 }
 0x8a0   : > { %v1255_v46 = vadd.f32 %v1574_v44, %v1254_v45 }
 0x8a2   : > { %v1257_v47 = vmul.f32 %v1255_v46, %v1255_v46 }
 0x8a4   : > { %v1258_v48 = vmul.f32 %v1257_v47, %v1255_v46 }
 0x8a6   : > { %v1259_v49 = vmul.f32 0.044715, %v1258_v48 }
 0x8a8   : > { %v1260_v50 = vadd.f32 %v1259_v49, %v1255_v46 }
 0x8aa   : > { %v1261_v51 = vmul.f32 0.7978846, %v1260_v50 }
 0x8ac   : > { %1598 = vtanh.f32 %v1261_v51 }
 0x8b2   : > { %v1599_v52 = vpop.eup %1598 }
 0x8b3   : > { %v1263_v54 = vadd.f32 1.0, %v1599_v52 }
 0x8b5   : > { %v1264_v55 = vmul.f32 0.5, %v1263_v54 }
 0x8b7   : > { %v1265_v56 = vmul.f32 %v1264_v55, %v1255_v46 }
 0x8b9   : > { %1471 = vmatmul.msk.f32.vlgmr.msrb.gmra.mxu3 %vm1278_vm10, %v1265_v56 }
 0x93c   : > { %v1299_v58 = vpop.f32.mrf.mxu3 }
 0x93d   : > { %v1300_v59 = vadd.f32 %v1575_v57, %v1299_v58 }
 0x93f   : > { %v1302_v53 = vadd.f32 %v1300_v59, %v2216_v12 }
 0x941   : > { %1303 = vst.msk [vmem:[%s674_s25] sm:$0xff] %vm681_vm0, %v1302_v53 }
 0x942   : > { %1777 = shalt.err (!%p1774_p12)
}
 0x943   : > { %1492 = dma.vmem_to_hbm [thread:$0]  (%p2019_p7), %s1318_s29, 128, %s1320_s2, %s1305_s0  }
 0x944 PF: > { %s2367_s15 = sld [smem:[#allocation21_spill]] }
 0x945   : > { %s2369_s12 = sld [smem:[#allocation23_spill]] }
 0x94a   : > { %s1331_s14 = sand.u32 1, %s2367_s15  }
 0x94b   : > { %p2370_p13 = scmp.ge.s32.totalorder %s2369_s12, 2  ;;  %s1332_s30 = scalar_lea.sflag [#allocation8], %s1331_s14 }
 0x94d   : > { %p1512_p9 = pnand %p2370_p13, %p1971_p6 }
 0x94f   : > { %p1513_p0 = pneg %p1512_p9 }
 0x951   : > { %1811 = dma.done.wait (%p1513_p0), %s1332_s30, 128  }
 0x952   : > { %1813 = vsyncadd (%p1513_p0), %s1332_s30, 4294967168  ;;  %s2371_s30 = sld [smem:[#allocation25_spill]]  ;;  %s2374_s27 = smov %s1820_s28 }
 0x953   : > { %s2372_s23 = sld [smem:[#allocation22_spill]] }
 0x954   : > { %s2373_s29 = sld [smem:[#allocation26_spill]] }
 0x958   : > { %p35_p3 = scmp.ge.s32.totalorder %s2371_s30, 4  }
 0x959   : > { %s2375_s28 = smov %s2372_s23 }
 0x95a   :  { %37 = sbr.rel (!%p35_p3) target bundleno = 21 (0x15), region = 165 }
 0x95f   :  { %1338 = vsyncpa [#allocation7], 1 }
 0x960   :  { %1340 = vsyncpa [#allocation7 + $0x1], 1 }
 0x961   :  { %1341 = vsyncpa [#allocation10], 1 }
 0x962   :  { %1343 = vsyncpa [#allocation10 + $0x1], 1 }
 0x963   :  { %1344 = vsyncpa [#allocation13], 1 }
 0x964   :  { %1345 = vsyncpa [#allocation8], 1 }
 0x965   :  { %1347 = vsyncpa [#allocation8 + $0x1], 1 }

</bundles_post_ra>
